<compile_context>
chip_gen: v6e
topology: v6e:2x2x1
jax: 0.10.0
libtpu: 0.0.40
codegen_flags: <defaults>
</compile_context>

<pallas_src>
import functools
import math

import jax
import jax.numpy as jnp
from jax.experimental import pallas as pl
from jax.experimental.pallas import tpu as pltpu

# ---------------- small synthetic DistilBERT dims ----------------
VOCAB = 100
MAX_POS = 16
HIDDEN = 64            # real DistilBERT: 768 (concat -> 1536 in the torch head)
N_HEADS = 2
HEAD_DIM = HIDDEN // N_HEADS
FFN = 128
N_LAYERS = 2
LN_EPS = 1e-12
NUM_CLASSES = 2

# ---- lane-dense padded layout (128-lane vreg alignment) ----
HPAD = 128                            # hidden padded to a full lane tile
HEAD_PAD = 128                        # each head's Q/K/V slab is 128-lane aligned
QKV_COLS = 3 * N_HEADS * HEAD_PAD     # column order: [Qh0|Qh1|Kh0|Kh1|Vh0|Vh1]
CLS_PAD = 128                         # classifier logits padded to 128 lanes
NEG_INF = -1e9                        # additive mask (finite: no NaN rows)


# ---------------- the single fused forward kernel ----------------
def _fused_kernel(*refs, n_layers, b4, seq, b_orig):
    it = iter(refs)
    x_ref = next(it)       # [b4*seq, HPAD] f32 embeddings (pad lanes are zero)
    bias_ref = next(it)    # [b4*seq, b4*seq] f32 block-diag + key-mask bias
    emb_g = next(it)
    emb_b = next(it)
    layers = [tuple(next(it) for _ in range(12)) for _ in range(n_layers)]
    pre_w = next(it)       # [2*HPAD, 2*HPAD] bf16
    pre_b = next(it)
    cls_w = next(it)       # [2*HPAD, CLS_PAD] bf16
    cls_b = next(it)
    o_ref = next(it)       # [b_orig, CLS_PAD] f32
    x_sc = next(it)        # VMEM scratch [b4*seq, HPAD] f32 (CLS strided read)

    # lane-validity mask, hoisted once (pad lanes excluded from LN statistics)
    lane = jax.lax.broadcasted_iota(jnp.int32, (1, HPAD), 1)
    valid = (lane < HIDDEN).astype(jnp.float32)
    inv_h = 1.0 / HIDDEN

    def ln(x, g, b):
        # LayerNorm over the real HIDDEN features, f32, eps = 1e-12.
        mu = jnp.sum(x, axis=-1, keepdims=True) * inv_h
        d = (x - mu) * valid
        var = jnp.sum(d * d, axis=-1, keepdims=True) * inv_h
        return d * jax.lax.rsqrt(var + LN_EPS) * g + b      # pad lanes -> 0

    def mm(a_f32, w_bf16_ref_val):
        return jnp.dot(a_f32.astype(jnp.bfloat16), w_bf16_ref_val,
                       preferred_element_type=jnp.float32)

    bias = bias_ref[...]                       # loaded once, reused every layer
    x = ln(x_ref[...], emb_g[...], emb_b[...])  # [b4*seq, HPAD] f32

    for (qkv_w, qkv_b, ow, ob, g1, b1, f1w, f1b, f2w, f2b, g2, b2) in layers:
        # fused QKV projection: one GEMM -> [b4*seq, QKV_COLS]
        qkv = mm(x, qkv_w[...]) + qkv_b[...]

        # per-head attention over the full batched slab; cross-sequence
        # interaction removed by the (precomputed) block-diagonal bias.
        ctx_proj = None
        for h in range(N_HEADS):
            q = qkv[:, h * HEAD_PAD:(h + 1) * HEAD_PAD]
            k = qkv[:, (N_HEADS + h) * HEAD_PAD:(N_HEADS + h + 1) * HEAD_PAD]
            v = qkv[:, (2 * N_HEADS + h) * HEAD_PAD:(2 * N_HEADS + h + 1) * HEAD_PAD]
            # scores (1/sqrt(d) already folded into the Q weights)
            s = jax.lax.dot_general(
                q.astype(jnp.bfloat16), k.astype(jnp.bfloat16),
                (((1,), (1,)), ((), ())),
                preferred_element_type=jnp.float32)          # [b4*seq, b4*seq]
            s = s + bias
            s = s - jnp.max(s, axis=-1, keepdims=True)       # f32 softmax
            p = jnp.exp(s)
            p = p * pl.reciprocal(jnp.sum(p, axis=-1, keepdims=True), approx=True)
            ctx = jnp.dot(p.astype(jnp.bfloat16), v.astype(jnp.bfloat16),
                          preferred_element_type=jnp.float32)  # [b4*seq, HEAD_PAD]
            part = jnp.dot(ctx.astype(jnp.bfloat16),
                           ow[h * HEAD_PAD:(h + 1) * HEAD_PAD, :],
                           preferred_element_type=jnp.float32)  # [b4*seq, HPAD]
            ctx_proj = part if ctx_proj is None else ctx_proj + part

        attn_out = ctx_proj + ob[...]
        x = ln(attn_out + x, g1[...], b1[...])

        h1 = mm(x, f1w[...]) + f1b[...]
        h1 = jax.nn.gelu(h1, approximate=True)   # TODO(synk): HF uses exact erf GELU
        ffn_out = mm(h1, f2w[...]) + f2b[...]
        x = ln(ffn_out + x, g2[...], b2[...])

    # ---- CLS pooling via strided reads (row b*seq is the CLS token of seq b)
    x_sc[...] = x
    cls1 = x_sc[pl.ds(0, b_orig, stride=seq), :]               # pass 1  [B, HPAD]
    cls2 = x_sc[pl.ds(b_orig * seq, b_orig, stride=seq), :]    # pass 2  [B, HPAD]

    # pre_classifier on concat([cls1, cls2]) expressed as a split GEMM
    hh = (jnp.dot(cls1.astype(jnp.bfloat16), pre_w[0:HPAD, :],
                  preferred_element_type=jnp.float32)
          + jnp.dot(cls2.astype(jnp.bfloat16), pre_w[HPAD:2 * HPAD, :],
                    preferred_element_type=jnp.float32)
          + pre_b[...])
    hh = jnp.maximum(hh, 0.0)          # ReLU; Dropout(0.3) is identity in eval
    o_ref[...] = mm(hh, cls_w[...]) + cls_b[...]   # lane-dense [B, CLS_PAD] store


# ---------------- parameters (padded, lane-aligned layouts) ----------------
def init_params(key):
    keys = iter(jax.random.split(key, 4 + 6 * N_LAYERS))

    def rnd(shape):
        return jax.random.normal(next(keys), shape, jnp.float32) * 0.02

    def pad_cols(w, cols):
        return jnp.zeros((w.shape[0], cols), jnp.float32).at[:, :w.shape[1]].set(w)

    def pad_rows(w, rows):
        return jnp.zeros((rows, w.shape[1]), jnp.float32).at[:w.shape[0], :].set(w)

    scale = 1.0 / math.sqrt(HEAD_DIM)

    params = {
        "word_emb": pad_cols(rnd((VOCAB, HIDDEN)), HPAD),
        "pos_emb": pad_cols(rnd((MAX_POS, HIDDEN)), HPAD),
        "emb_ln_g": pad_cols(jnp.ones((1, HIDDEN), jnp.float32), HPAD),
        "emb_ln_b": jnp.zeros((1, HPAD), jnp.float32),
        "layers": [],
    }
    for _ in range(N_LAYERS):
        wq = rnd((HIDDEN, HIDDEN)) * scale        # fold 1/sqrt(d_head) into Wq
        wk = rnd((HIDDEN, HIDDEN))
        wv = rnd((HIDDEN, HIDDEN))
        wo = rnd((HIDDEN, HIDDEN))
        qkv_w = jnp.zeros((HPAD, QKV_COLS), jnp.float32)
        o_w = jnp.zeros((N_HEADS * HEAD_PAD, HPAD), jnp.float32)
        for h in range(N_HEADS):
            hc = slice(h * HEAD_DIM, (h + 1) * HEAD_DIM)
            q0 = h * HEAD_PAD
            k0 = (N_HEADS + h) * HEAD_PAD
            v0 = (2 * N_HEADS + h) * HEAD_PAD
            qkv_w = qkv_w.at[:HIDDEN, q0:q0 + HEAD_DIM].set(wq[:, hc])
            qkv_w = qkv_w.at[:HIDDEN, k0:k0 + HEAD_DIM].set(wk[:, hc])
            qkv_w = qkv_w.at[:HIDDEN, v0:v0 + HEAD_DIM].set(wv[:, hc])
            o_w = o_w.at[h * HEAD_PAD:h * HEAD_PAD + HEAD_DIM, :HIDDEN].set(wo[hc, :])
        params["layers"].append({
            "qkv_w": qkv_w.astype(jnp.bfloat16),
            "qkv_b": jnp.zeros((1, QKV_COLS), jnp.float32),
            "o_w": o_w.astype(jnp.bfloat16),
            "o_b": jnp.zeros((1, HPAD), jnp.float32),
            "ln1_g": pad_cols(jnp.ones((1, HIDDEN), jnp.float32), HPAD),
            "ln1_b": jnp.zeros((1, HPAD), jnp.float32),
            "f1_w": pad_rows(rnd((HIDDEN, FFN)), HPAD).astype(jnp.bfloat16),
            "f1_b": jnp.zeros((1, FFN), jnp.float32),
            "f2_w": pad_cols(rnd((FFN, HIDDEN)), HPAD).astype(jnp.bfloat16),
            "f2_b": jnp.zeros((1, HPAD), jnp.float32),
            "ln2_g": pad_cols(jnp.ones((1, HIDDEN), jnp.float32), HPAD),
            "ln2_b": jnp.zeros((1, HPAD), jnp.float32),
        })

    pw = rnd((2 * HIDDEN, 2 * HIDDEN))            # real pre_classifier weight
    pre_w = jnp.zeros((2 * HPAD, 2 * HPAD), jnp.float32)
    pre_w = pre_w.at[0:HIDDEN, 0:2 * HIDDEN].set(pw[0:HIDDEN, :])
    pre_w = pre_w.at[HPAD:HPAD + HIDDEN, 0:2 * HIDDEN].set(pw[HIDDEN:2 * HIDDEN, :])
    params["pre_w"] = pre_w.astype(jnp.bfloat16)
    params["pre_b"] = jnp.zeros((1, 2 * HPAD), jnp.float32)

    cw = rnd((2 * HIDDEN, NUM_CLASSES))           # real classifier weight
    cls_w = jnp.zeros((2 * HPAD, CLS_PAD), jnp.float32)
    cls_w = cls_w.at[0:2 * HIDDEN, 0:NUM_CLASSES].set(cw)
    params["cls_w"] = cls_w.astype(jnp.bfloat16)
    params["cls_b"] = jnp.zeros((1, CLS_PAD), jnp.float32)
    return params


# ---------------- module forward ----------------
def distillbert_fe_forward(params, input_ids, attention_mask, cats_ids, cats_mask):
    B, S = input_ids.shape
    # both encoder passes batched: first half = inputs, second half = cats globals
    ids = jnp.concatenate([input_ids, cats_ids], axis=0)          # [2B, S]
    mask = jnp.concatenate([attention_mask, cats_mask], axis=0)   # [2B, S]
    B4 = 2 * B
    N = B4 * S

    # embedding gather is JAX glue (not the hot path); activations already padded
    x = params["word_emb"][ids] + params["pos_emb"][None, :S, :]  # [2B, S, HPAD]
    x = x.reshape(N, HPAD).astype(jnp.float32)

    # combined block-diagonal (no cross-sequence attention) + key-padding
    # additive bias, built ONCE and reused by every layer / head in the kernel.
    key_bias = ((1.0 - mask.astype(jnp.float32)) * NEG_INF).reshape(1, N)
    seq_id = jnp.repeat(jnp.arange(B4, dtype=jnp.int32), S)
    same = seq_id[:, None] == seq_id[None, :]                     # [N, N]
    attn_bias = jnp.where(same, key_bias, NEG_INF).astype(jnp.float32)

    args = [x, attn_bias, params["emb_ln_g"], params["emb_ln_b"]]
    for lyr in params["layers"]:
        args += [lyr[k] for k in ("qkv_w", "qkv_b", "o_w", "o_b", "ln1_g", "ln1_b",
                                  "f1_w", "f1_b", "f2_w", "f2_b", "ln2_g", "ln2_b")]
    args += [params["pre_w"], params["pre_b"], params["cls_w"], params["cls_b"]]

    vmem_spec = pl.BlockSpec(memory_space=pltpu.MemorySpace.VMEM)
    logits_pad = pl.pallas_call(
        functools.partial(_fused_kernel, n_layers=N_LAYERS, b4=B4, seq=S, b_orig=B),
        out_shape=jax.ShapeDtypeStruct((B, CLS_PAD), jnp.float32),
        in_specs=[vmem_spec] * len(args),
        out_specs=vmem_spec,
        scratch_shapes=[pltpu.VMEM((N, HPAD), jnp.float32)],
        compiler_params=pltpu.CompilerParams(vmem_limit_bytes=32 * 1024 * 1024),
    )(*args)
    return logits_pad[:, :NUM_CLASSES]


if __name__ == "__main__":
    key = jax.random.PRNGKey(0)
    pkey, ikey, ckey = jax.random.split(key, 3)
    params = init_params(pkey)

    B, S = 2, 8
    input_ids = jax.random.randint(ikey, (B, S), 0, VOCAB, dtype=jnp.int32)
    attention_mask = jnp.ones((B, S), jnp.int32).at[:, -2:].set(0)
    # cats_ids / cats_mask are module-level globals in the original torch code
    cats_ids = jax.random.randint(ckey, (B, S), 0, VOCAB, dtype=jnp.int32)
    cats_mask = jnp.ones((B, S), jnp.int32)

    fwd = jax.jit(functools.partial(distillbert_fe_forward, params))
    logits = fwd(input_ids, attention_mask, cats_ids, cats_mask)
    jax.block_until_ready(logits)
    assert logits.shape == (B, NUM_CLASSES) and logits.dtype == jnp.float32
    assert bool(jnp.all(jnp.isfinite(logits)))
    print("KERNEL_OK")
</pallas_src>

<mosaic_0001>
module attributes {stable_mosaic.version = 11 : i64} {
  func.func @_fused_kernel(%arg0: memref<32x128xf32, #tpu.memory_space<vmem>>, %arg1: memref<32x32xf32, #tpu.memory_space<vmem>>, %arg2: memref<1x128xf32, #tpu.memory_space<vmem>>, %arg3: memref<1x128xf32, #tpu.memory_space<vmem>>, %arg4: memref<128x768xbf16, #tpu.memory_space<vmem>>, %arg5: memref<1x768xf32, #tpu.memory_space<vmem>>, %arg6: memref<256x128xbf16, #tpu.memory_space<vmem>>, %arg7: memref<1x128xf32, #tpu.memory_space<vmem>>, %arg8: memref<1x128xf32, #tpu.memory_space<vmem>>, %arg9: memref<1x128xf32, #tpu.memory_space<vmem>>, %arg10: memref<128x128xbf16, #tpu.memory_space<vmem>>, %arg11: memref<1x128xf32, #tpu.memory_space<vmem>>, %arg12: memref<128x128xbf16, #tpu.memory_space<vmem>>, %arg13: memref<1x128xf32, #tpu.memory_space<vmem>>, %arg14: memref<1x128xf32, #tpu.memory_space<vmem>>, %arg15: memref<1x128xf32, #tpu.memory_space<vmem>>, %arg16: memref<128x768xbf16, #tpu.memory_space<vmem>>, %arg17: memref<1x768xf32, #tpu.memory_space<vmem>>, %arg18: memref<256x128xbf16, #tpu.memory_space<vmem>>, %arg19: memref<1x128xf32, #tpu.memory_space<vmem>>, %arg20: memref<1x128xf32, #tpu.memory_space<vmem>>, %arg21: memref<1x128xf32, #tpu.memory_space<vmem>>, %arg22: memref<128x128xbf16, #tpu.memory_space<vmem>>, %arg23: memref<1x128xf32, #tpu.memory_space<vmem>>, %arg24: memref<128x128xbf16, #tpu.memory_space<vmem>>, %arg25: memref<1x128xf32, #tpu.memory_space<vmem>>, %arg26: memref<1x128xf32, #tpu.memory_space<vmem>>, %arg27: memref<1x128xf32, #tpu.memory_space<vmem>>, %arg28: memref<256x256xbf16, #tpu.memory_space<vmem>>, %arg29: memref<1x256xf32, #tpu.memory_space<vmem>>, %arg30: memref<256x128xbf16, #tpu.memory_space<vmem>>, %arg31: memref<1x128xf32, #tpu.memory_space<vmem>>, %arg32: memref<2x128xf32, #tpu.memory_space<vmem>>, %arg33: memref<32x128xf32, #tpu.memory_space<vmem>>) attributes {dimension_semantics = [], scalar_prefetch = 0 : i64, scratch_operands = 1 : i64, tpu.core_type = #tpu.core_type<tc>} {
    %0 = tpu.iota {dimensions = array<i32: 1>} : vector<1x128xi32>
    %c64_i32 = arith.constant 64 : i32
    %1 = vector.broadcast %c64_i32 : i32 to vector<1x128xi32>
    %2 = arith.cmpi slt, %0, %1 : vector<1x128xi32>
    %3 = arith.extui %2 : vector<1x128xi1> to vector<1x128xi32>
    %4 = arith.sitofp %3 : vector<1x128xi32> to vector<1x128xf32>
    %c0 = arith.constant 0 : index
    %c0_0 = arith.constant 0 : index
    %5 = vector.load %arg1[%c0, %c0_0] : memref<32x32xf32, #tpu.memory_space<vmem>>, vector<32x32xf32>
    %c0_1 = arith.constant 0 : index
    %c0_2 = arith.constant 0 : index
    %6 = vector.load %arg0[%c0_1, %c0_2] : memref<32x128xf32, #tpu.memory_space<vmem>>, vector<32x128xf32>
    %c0_3 = arith.constant 0 : index
    %c0_4 = arith.constant 0 : index
    %7 = vector.load %arg2[%c0_3, %c0_4] : memref<1x128xf32, #tpu.memory_space<vmem>>, vector<1x128xf32>
    %c0_5 = arith.constant 0 : index
    %c0_6 = arith.constant 0 : index
    %8 = vector.load %arg3[%c0_5, %c0_6] : memref<1x128xf32, #tpu.memory_space<vmem>>, vector<1x128xf32>
    %cst = arith.constant dense<0.000000e+00> : vector<32xf32>
    %9 = vector.multi_reduction <add>, %6, %cst [1] : vector<32x128xf32> to vector<32xf32>
    %10 = vector.shape_cast %9 : vector<32xf32> to vector<32x1xf32>
    %cst_7 = arith.constant 1.562500e-02 : f32
    %11 = vector.broadcast %cst_7 : f32 to vector<32x1xf32>
    %12 = arith.mulf %10, %11 : vector<32x1xf32>
    %13 = vector.broadcast %12 : vector<32x1xf32> to vector<32x128xf32>
    %14 = arith.subf %6, %13 : vector<32x128xf32>
    %15 = vector.broadcast %4 : vector<1x128xf32> to vector<32x128xf32>
    %16 = arith.mulf %14, %15 : vector<32x128xf32>
    %17 = arith.mulf %16, %16 : vector<32x128xf32>
    %cst_8 = arith.constant dense<0.000000e+00> : vector<32xf32>
    %18 = vector.multi_reduction <add>, %17, %cst_8 [1] : vector<32x128xf32> to vector<32xf32>
    %19 = vector.shape_cast %18 : vector<32xf32> to vector<32x1xf32>
    %cst_9 = arith.constant 1.562500e-02 : f32
    %20 = vector.broadcast %cst_9 : f32 to vector<32x1xf32>
    %21 = arith.mulf %19, %20 : vector<32x1xf32>
    %cst_10 = arith.constant 9.99999996E-13 : f32
    %22 = vector.broadcast %cst_10 : f32 to vector<32x1xf32>
    %23 = arith.addf %21, %22 : vector<32x1xf32>
    %24 = math.rsqrt %23 : vector<32x1xf32>
    %25 = vector.broadcast %24 : vector<32x1xf32> to vector<32x128xf32>
    %26 = arith.mulf %16, %25 : vector<32x128xf32>
    %27 = vector.broadcast %7 : vector<1x128xf32> to vector<32x128xf32>
    %28 = arith.mulf %26, %27 : vector<32x128xf32>
    %29 = vector.broadcast %8 : vector<1x128xf32> to vector<32x128xf32>
    %30 = arith.addf %28, %29 : vector<32x128xf32>
    %c0_11 = arith.constant 0 : index
    %c0_12 = arith.constant 0 : index
    %31 = vector.load %arg4[%c0_11, %c0_12] : memref<128x768xbf16, #tpu.memory_space<vmem>>, vector<128x768xbf16>
    %32 = arith.truncf %30 : vector<32x128xf32> to vector<32x128xbf16>
    %cst_13 = arith.constant dense<0.000000e+00> : vector<32x768xf32>
    %33 = tpu.matmul %32, %31, %cst_13 {dimension_numbers = #tpu.dot_dimension_numbers<[1], [0], [0], [1], [0, 0, 1, 1], [], []>} : vector<32x128xbf16>, vector<128x768xbf16>, vector<32x768xf32> -> vector<32x768xf32>
    %c0_14 = arith.constant 0 : index
    %c0_15 = arith.constant 0 : index
    %34 = vector.load %arg5[%c0_14, %c0_15] : memref<1x768xf32, #tpu.memory_space<vmem>>, vector<1x768xf32>
    %35 = vector.broadcast %34 : vector<1x768xf32> to vector<32x768xf32>
    %36 = arith.addf %33, %35 : vector<32x768xf32>
    %37 = vector.extract_strided_slice %36 {offsets = [0, 0], sizes = [32, 128], strides = [1, 1]} : vector<32x768xf32> to vector<32x128xf32>
    %38 = vector.extract_strided_slice %36 {offsets = [0, 256], sizes = [32, 128], strides = [1, 1]} : vector<32x768xf32> to vector<32x128xf32>
    %39 = vector.extract_strided_slice %36 {offsets = [0, 512], sizes = [32, 128], strides = [1, 1]} : vector<32x768xf32> to vector<32x128xf32>
    %40 = arith.truncf %37 : vector<32x128xf32> to vector<32x128xbf16>
    %41 = arith.truncf %38 : vector<32x128xf32> to vector<32x128xbf16>
    %cst_16 = arith.constant dense<0.000000e+00> : vector<32x32xf32>
    %42 = tpu.matmul %40, %41, %cst_16 {dimension_numbers = #tpu.dot_dimension_numbers<[1], [1], [0], [0], [0, 0, 1, 0], [], []>} : vector<32x128xbf16>, vector<32x128xbf16>, vector<32x32xf32> -> vector<32x32xf32>
    %43 = arith.addf %42, %5 : vector<32x32xf32>
    %cst_17 = arith.constant dense<0xFF800000> : vector<32xf32>
    %44 = vector.multi_reduction <maximumf>, %43, %cst_17 [1] : vector<32x32xf32> to vector<32xf32>
    %45 = vector.shape_cast %44 : vector<32xf32> to vector<32x1xf32>
    %46 = vector.broadcast %45 : vector<32x1xf32> to vector<32x32xf32>
    %47 = arith.subf %43, %46 : vector<32x32xf32>
    %48 = math.exp %47 : vector<32x32xf32>
    %cst_18 = arith.constant dense<0.000000e+00> : vector<32xf32>
    %49 = vector.multi_reduction <add>, %48, %cst_18 [1] : vector<32x32xf32> to vector<32xf32>
    %50 = vector.shape_cast %49 : vector<32xf32> to vector<32x1xf32>
    %51 = tpu.reciprocal %50 {approx = true} : vector<32x1xf32> -> vector<32x1xf32>
    %52 = vector.broadcast %51 : vector<32x1xf32> to vector<32x32xf32>
    %53 = arith.mulf %48, %52 : vector<32x32xf32>
    %54 = arith.truncf %53 : vector<32x32xf32> to vector<32x32xbf16>
    %55 = arith.truncf %39 : vector<32x128xf32> to vector<32x128xbf16>
    %cst_19 = arith.constant dense<0.000000e+00> : vector<32x128xf32>
    %56 = tpu.matmul %54, %55, %cst_19 {dimension_numbers = #tpu.dot_dimension_numbers<[1], [0], [0], [1], [0, 0, 1, 1], [], []>} : vector<32x32xbf16>, vector<32x128xbf16>, vector<32x128xf32> -> vector<32x128xf32>
    %57 = arith.truncf %56 : vector<32x128xf32> to vector<32x128xbf16>
    %c0_20 = arith.constant 0 : index
    %c0_21 = arith.constant 0 : index
    %58 = vector.load %arg6[%c0_20, %c0_21] : memref<256x128xbf16, #tpu.memory_space<vmem>>, vector<128x128xbf16>
    %cst_22 = arith.constant dense<0.000000e+00> : vector<32x128xf32>
    %59 = tpu.matmul %57, %58, %cst_22 {dimension_numbers = #tpu.dot_dimension_numbers<[1], [0], [0], [1], [0, 0, 1, 1], [], []>} : vector<32x128xbf16>, vector<128x128xbf16>, vector<32x128xf32> -> vector<32x128xf32>
    %60 = vector.extract_strided_slice %36 {offsets = [0, 128], sizes = [32, 128], strides = [1, 1]} : vector<32x768xf32> to vector<32x128xf32>
    %61 = vector.extract_strided_slice %36 {offsets = [0, 384], sizes = [32, 128], strides = [1, 1]} : vector<32x768xf32> to vector<32x128xf32>
    %62 = vector.extract_strided_slice %36 {offsets = [0, 640], sizes = [32, 128], strides = [1, 1]} : vector<32x768xf32> to vector<32x128xf32>
    %63 = arith.truncf %60 : vector<32x128xf32> to vector<32x128xbf16>
    %64 = arith.truncf %61 : vector<32x128xf32> to vector<32x128xbf16>
    %cst_23 = arith.constant dense<0.000000e+00> : vector<32x32xf32>
    %65 = tpu.matmul %63, %64, %cst_23 {dimension_numbers = #tpu.dot_dimension_numbers<[1], [1], [0], [0], [0, 0, 1, 0], [], []>} : vector<32x128xbf16>, vector<32x128xbf16>, vector<32x32xf32> -> vector<32x32xf32>
    %66 = arith.addf %65, %5 : vector<32x32xf32>
    %cst_24 = arith.constant dense<0xFF800000> : vector<32xf32>
    %67 = vector.multi_reduction <maximumf>, %66, %cst_24 [1] : vector<32x32xf32> to vector<32xf32>
    %68 = vector.shape_cast %67 : vector<32xf32> to vector<32x1xf32>
    %69 = vector.broadcast %68 : vector<32x1xf32> to vector<32x32xf32>
    %70 = arith.subf %66, %69 : vector<32x32xf32>
    %71 = math.exp %70 : vector<32x32xf32>
    %cst_25 = arith.constant dense<0.000000e+00> : vector<32xf32>
    %72 = vector.multi_reduction <add>, %71, %cst_25 [1] : vector<32x32xf32> to vector<32xf32>
    %73 = vector.shape_cast %72 : vector<32xf32> to vector<32x1xf32>
    %74 = tpu.reciprocal %73 {approx = true} : vector<32x1xf32> -> vector<32x1xf32>
    %75 = vector.broadcast %74 : vector<32x1xf32> to vector<32x32xf32>
    %76 = arith.mulf %71, %75 : vector<32x32xf32>
    %77 = arith.truncf %76 : vector<32x32xf32> to vector<32x32xbf16>
    %78 = arith.truncf %62 : vector<32x128xf32> to vector<32x128xbf16>
    %cst_26 = arith.constant dense<0.000000e+00> : vector<32x128xf32>
    %79 = tpu.matmul %77, %78, %cst_26 {dimension_numbers = #tpu.dot_dimension_numbers<[1], [0], [0], [1], [0, 0, 1, 1], [], []>} : vector<32x32xbf16>, vector<32x128xbf16>, vector<32x128xf32> -> vector<32x128xf32>
    %80 = arith.truncf %79 : vector<32x128xf32> to vector<32x128xbf16>
    %c128 = arith.constant 128 : index
    %c0_27 = arith.constant 0 : index
    %81 = vector.load %arg6[%c128, %c0_27] : memref<256x128xbf16, #tpu.memory_space<vmem>>, vector<128x128xbf16>
    %cst_28 = arith.constant dense<0.000000e+00> : vector<32x128xf32>
    %82 = tpu.matmul %80, %81, %cst_28 {dimension_numbers = #tpu.dot_dimension_numbers<[1], [0], [0], [1], [0, 0, 1, 1], [], []>} : vector<32x128xbf16>, vector<128x128xbf16>, vector<32x128xf32> -> vector<32x128xf32>
    %83 = arith.addf %59, %82 : vector<32x128xf32>
    %c0_29 = arith.constant 0 : index
    %c0_30 = arith.constant 0 : index
    %84 = vector.load %arg7[%c0_29, %c0_30] : memref<1x128xf32, #tpu.memory_space<vmem>>, vector<1x128xf32>
    %85 = vector.broadcast %84 : vector<1x128xf32> to vector<32x128xf32>
    %86 = arith.addf %83, %85 : vector<32x128xf32>
    %87 = arith.addf %86, %30 : vector<32x128xf32>
    %c0_31 = arith.constant 0 : index
    %c0_32 = arith.constant 0 : index
    %88 = vector.load %arg8[%c0_31, %c0_32] : memref<1x128xf32, #tpu.memory_space<vmem>>, vector<1x128xf32>
    %c0_33 = arith.constant 0 : index
    %c0_34 = arith.constant 0 : index
    %89 = vector.load %arg9[%c0_33, %c0_34] : memref<1x128xf32, #tpu.memory_space<vmem>>, vector<1x128xf32>
    %cst_35 = arith.constant dense<0.000000e+00> : vector<32xf32>
    %90 = vector.multi_reduction <add>, %87, %cst_35 [1] : vector<32x128xf32> to vector<32xf32>
    %91 = vector.shape_cast %90 : vector<32xf32> to vector<32x1xf32>
    %cst_36 = arith.constant 1.562500e-02 : f32
    %92 = vector.broadcast %cst_36 : f32 to vector<32x1xf32>
    %93 = arith.mulf %91, %92 : vector<32x1xf32>
    %94 = vector.broadcast %93 : vector<32x1xf32> to vector<32x128xf32>
    %95 = arith.subf %87, %94 : vector<32x128xf32>
    %96 = vector.broadcast %4 : vector<1x128xf32> to vector<32x128xf32>
    %97 = arith.mulf %95, %96 : vector<32x128xf32>
    %98 = arith.mulf %97, %97 : vector<32x128xf32>
    %cst_37 = arith.constant dense<0.000000e+00> : vector<32xf32>
    %99 = vector.multi_reduction <add>, %98, %cst_37 [1] : vector<32x128xf32> to vector<32xf32>
    %100 = vector.shape_cast %99 : vector<32xf32> to vector<32x1xf32>
    %cst_38 = arith.constant 1.562500e-02 : f32
    %101 = vector.broadcast %cst_38 : f32 to vector<32x1xf32>
    %102 = arith.mulf %100, %101 : vector<32x1xf32>
    %cst_39 = arith.constant 9.99999996E-13 : f32
    %103 = vector.broadcast %cst_39 : f32 to vector<32x1xf32>
    %104 = arith.addf %102, %103 : vector<32x1xf32>
    %105 = math.rsqrt %104 : vector<32x1xf32>
    %106 = vector.broadcast %105 : vector<32x1xf32> to vector<32x128xf32>
    %107 = arith.mulf %97, %106 : vector<32x128xf32>
    %108 = vector.broadcast %88 : vector<1x128xf32> to vector<32x128xf32>
    %109 = arith.mulf %107, %108 : vector<32x128xf32>
    %110 = vector.broadcast %89 : vector<1x128xf32> to vector<32x128xf32>
    %111 = arith.addf %109, %110 : vector<32x128xf32>
    %c0_40 = arith.constant 0 : index
    %c0_41 = arith.constant 0 : index
    %112 = vector.load %arg10[%c0_40, %c0_41] : memref<128x128xbf16, #tpu.memory_space<vmem>>, vector<128x128xbf16>
    %113 = arith.truncf %111 : vector<32x128xf32> to vector<32x128xbf16>
    %cst_42 = arith.constant dense<0.000000e+00> : vector<32x128xf32>
    %114 = tpu.matmul %113, %112, %cst_42 {dimension_numbers = #tpu.dot_dimension_numbers<[1], [0], [0], [1], [0, 0, 1, 1], [], []>} : vector<32x128xbf16>, vector<128x128xbf16>, vector<32x128xf32> -> vector<32x128xf32>
    %c0_43 = arith.constant 0 : index
    %c0_44 = arith.constant 0 : index
    %115 = vector.load %arg11[%c0_43, %c0_44] : memref<1x128xf32, #tpu.memory_space<vmem>>, vector<1x128xf32>
    %116 = vector.broadcast %115 : vector<1x128xf32> to vector<32x128xf32>
    %117 = arith.addf %114, %116 : vector<32x128xf32>
    %118 = arith.mulf %117, %117 : vector<32x128xf32>
    %119 = arith.mulf %117, %118 : vector<32x128xf32>
    %cst_45 = arith.constant 4.471500e-02 : f32
    %120 = vector.broadcast %cst_45 : f32 to vector<32x128xf32>
    %121 = arith.mulf %120, %119 : vector<32x128xf32>
    %122 = arith.addf %117, %121 : vector<32x128xf32>
    %cst_46 = arith.constant 0.797884583 : f32
    %123 = vector.broadcast %cst_46 : f32 to vector<32x128xf32>
    %124 = arith.mulf %123, %122 : vector<32x128xf32>
    %125 = math.tanh %124 : vector<32x128xf32>
    %cst_47 = arith.constant 1.000000e+00 : f32
    %126 = vector.broadcast %cst_47 : f32 to vector<32x128xf32>
    %127 = arith.addf %126, %125 : vector<32x128xf32>
    %cst_48 = arith.constant 5.000000e-01 : f32
    %128 = vector.broadcast %cst_48 : f32 to vector<32x128xf32>
    %129 = arith.mulf %128, %127 : vector<32x128xf32>
    %130 = arith.mulf %117, %129 : vector<32x128xf32>
    %c0_49 = arith.constant 0 : index
    %c0_50 = arith.constant 0 : index
    %131 = vector.load %arg12[%c0_49, %c0_50] : memref<128x128xbf16, #tpu.memory_space<vmem>>, vector<128x128xbf16>
    %132 = arith.truncf %130 : vector<32x128xf32> to vector<32x128xbf16>
    %cst_51 = arith.constant dense<0.000000e+00> : vector<32x128xf32>
    %133 = tpu.matmul %132, %131, %cst_51 {dimension_numbers = #tpu.dot_dimension_numbers<[1], [0], [0], [1], [0, 0, 1, 1], [], []>} : vector<32x128xbf16>, vector<128x128xbf16>, vector<32x128xf32> -> vector<32x128xf32>
    %c0_52 = arith.constant 0 : index
    %c0_53 = arith.constant 0 : index
    %134 = vector.load %arg13[%c0_52, %c0_53] : memref<1x128xf32, #tpu.memory_space<vmem>>, vector<1x128xf32>
    %135 = vector.broadcast %134 : vector<1x128xf32> to vector<32x128xf32>
    %136 = arith.addf %133, %135 : vector<32x128xf32>
    %137 = arith.addf %136, %111 : vector<32x128xf32>
    %c0_54 = arith.constant 0 : index
    %c0_55 = arith.constant 0 : index
    %138 = vector.load %arg14[%c0_54, %c0_55] : memref<1x128xf32, #tpu.memory_space<vmem>>, vector<1x128xf32>
    %c0_56 = arith.constant 0 : index
    %c0_57 = arith.constant 0 : index
    %139 = vector.load %arg15[%c0_56, %c0_57] : memref<1x128xf32, #tpu.memory_space<vmem>>, vector<1x128xf32>
    %cst_58 = arith.constant dense<0.000000e+00> : vector<32xf32>
    %140 = vector.multi_reduction <add>, %137, %cst_58 [1] : vector<32x128xf32> to vector<32xf32>
    %141 = vector.shape_cast %140 : vector<32xf32> to vector<32x1xf32>
    %cst_59 = arith.constant 1.562500e-02 : f32
    %142 = vector.broadcast %cst_59 : f32 to vector<32x1xf32>
    %143 = arith.mulf %141, %142 : vector<32x1xf32>
    %144 = vector.broadcast %143 : vector<32x1xf32> to vector<32x128xf32>
    %145 = arith.subf %137, %144 : vector<32x128xf32>
    %146 = vector.broadcast %4 : vector<1x128xf32> to vector<32x128xf32>
    %147 = arith.mulf %145, %146 : vector<32x128xf32>
    %148 = arith.mulf %147, %147 : vector<32x128xf32>
    %cst_60 = arith.constant dense<0.000000e+00> : vector<32xf32>
    %149 = vector.multi_reduction <add>, %148, %cst_60 [1] : vector<32x128xf32> to vector<32xf32>
    %150 = vector.shape_cast %149 : vector<32xf32> to vector<32x1xf32>
    %cst_61 = arith.constant 1.562500e-02 : f32
    %151 = vector.broadcast %cst_61 : f32 to vector<32x1xf32>
    %152 = arith.mulf %150, %151 : vector<32x1xf32>
    %cst_62 = arith.constant 9.99999996E-13 : f32
    %153 = vector.broadcast %cst_62 : f32 to vector<32x1xf32>
    %154 = arith.addf %152, %153 : vector<32x1xf32>
    %155 = math.rsqrt %154 : vector<32x1xf32>
    %156 = vector.broadcast %155 : vector<32x1xf32> to vector<32x128xf32>
    %157 = arith.mulf %147, %156 : vector<32x128xf32>
    %158 = vector.broadcast %138 : vector<1x128xf32> to vector<32x128xf32>
    %159 = arith.mulf %157, %158 : vector<32x128xf32>
    %160 = vector.broadcast %139 : vector<1x128xf32> to vector<32x128xf32>
    %161 = arith.addf %159, %160 : vector<32x128xf32>
    %c0_63 = arith.constant 0 : index
    %c0_64 = arith.constant 0 : index
    %162 = vector.load %arg16[%c0_63, %c0_64] : memref<128x768xbf16, #tpu.memory_space<vmem>>, vector<128x768xbf16>
    %163 = arith.truncf %161 : vector<32x128xf32> to vector<32x128xbf16>
    %cst_65 = arith.constant dense<0.000000e+00> : vector<32x768xf32>
    %164 = tpu.matmul %163, %162, %cst_65 {dimension_numbers = #tpu.dot_dimension_numbers<[1], [0], [0], [1], [0, 0, 1, 1], [], []>} : vector<32x128xbf16>, vector<128x768xbf16>, vector<32x768xf32> -> vector<32x768xf32>
    %c0_66 = arith.constant 0 : index
    %c0_67 = arith.constant 0 : index
    %165 = vector.load %arg17[%c0_66, %c0_67] : memref<1x768xf32, #tpu.memory_space<vmem>>, vector<1x768xf32>
    %166 = vector.broadcast %165 : vector<1x768xf32> to vector<32x768xf32>
    %167 = arith.addf %164, %166 : vector<32x768xf32>
    %168 = vector.extract_strided_slice %167 {offsets = [0, 0], sizes = [32, 128], strides = [1, 1]} : vector<32x768xf32> to vector<32x128xf32>
    %169 = vector.extract_strided_slice %167 {offsets = [0, 256], sizes = [32, 128], strides = [1, 1]} : vector<32x768xf32> to vector<32x128xf32>
    %170 = vector.extract_strided_slice %167 {offsets = [0, 512], sizes = [32, 128], strides = [1, 1]} : vector<32x768xf32> to vector<32x128xf32>
    %171 = arith.truncf %168 : vector<32x128xf32> to vector<32x128xbf16>
    %172 = arith.truncf %169 : vector<32x128xf32> to vector<32x128xbf16>
    %cst_68 = arith.constant dense<0.000000e+00> : vector<32x32xf32>
    %173 = tpu.matmul %171, %172, %cst_68 {dimension_numbers = #tpu.dot_dimension_numbers<[1], [1], [0], [0], [0, 0, 1, 0], [], []>} : vector<32x128xbf16>, vector<32x128xbf16>, vector<32x32xf32> -> vector<32x32xf32>
    %174 = arith.addf %173, %5 : vector<32x32xf32>
    %cst_69 = arith.constant dense<0xFF800000> : vector<32xf32>
    %175 = vector.multi_reduction <maximumf>, %174, %cst_69 [1] : vector<32x32xf32> to vector<32xf32>
    %176 = vector.shape_cast %175 : vector<32xf32> to vector<32x1xf32>
    %177 = vector.broadcast %176 : vector<32x1xf32> to vector<32x32xf32>
    %178 = arith.subf %174, %177 : vector<32x32xf32>
    %179 = math.exp %178 : vector<32x32xf32>
    %cst_70 = arith.constant dense<0.000000e+00> : vector<32xf32>
    %180 = vector.multi_reduction <add>, %179, %cst_70 [1] : vector<32x32xf32> to vector<32xf32>
    %181 = vector.shape_cast %180 : vector<32xf32> to vector<32x1xf32>
    %182 = tpu.reciprocal %181 {approx = true} : vector<32x1xf32> -> vector<32x1xf32>
    %183 = vector.broadcast %182 : vector<32x1xf32> to vector<32x32xf32>
    %184 = arith.mulf %179, %183 : vector<32x32xf32>
    %185 = arith.truncf %184 : vector<32x32xf32> to vector<32x32xbf16>
    %186 = arith.truncf %170 : vector<32x128xf32> to vector<32x128xbf16>
    %cst_71 = arith.constant dense<0.000000e+00> : vector<32x128xf32>
    %187 = tpu.matmul %185, %186, %cst_71 {dimension_numbers = #tpu.dot_dimension_numbers<[1], [0], [0], [1], [0, 0, 1, 1], [], []>} : vector<32x32xbf16>, vector<32x128xbf16>, vector<32x128xf32> -> vector<32x128xf32>
    %188 = arith.truncf %187 : vector<32x128xf32> to vector<32x128xbf16>
    %c0_72 = arith.constant 0 : index
    %c0_73 = arith.constant 0 : index
    %189 = vector.load %arg18[%c0_72, %c0_73] : memref<256x128xbf16, #tpu.memory_space<vmem>>, vector<128x128xbf16>
    %cst_74 = arith.constant dense<0.000000e+00> : vector<32x128xf32>
    %190 = tpu.matmul %188, %189, %cst_74 {dimension_numbers = #tpu.dot_dimension_numbers<[1], [0], [0], [1], [0, 0, 1, 1], [], []>} : vector<32x128xbf16>, vector<128x128xbf16>, vector<32x128xf32> -> vector<32x128xf32>
    %191 = vector.extract_strided_slice %167 {offsets = [0, 128], sizes = [32, 128], strides = [1, 1]} : vector<32x768xf32> to vector<32x128xf32>
    %192 = vector.extract_strided_slice %167 {offsets = [0, 384], sizes = [32, 128], strides = [1, 1]} : vector<32x768xf32> to vector<32x128xf32>
    %193 = vector.extract_strided_slice %167 {offsets = [0, 640], sizes = [32, 128], strides = [1, 1]} : vector<32x768xf32> to vector<32x128xf32>
    %194 = arith.truncf %191 : vector<32x128xf32> to vector<32x128xbf16>
    %195 = arith.truncf %192 : vector<32x128xf32> to vector<32x128xbf16>
    %cst_75 = arith.constant dense<0.000000e+00> : vector<32x32xf32>
    %196 = tpu.matmul %194, %195, %cst_75 {dimension_numbers = #tpu.dot_dimension_numbers<[1], [1], [0], [0], [0, 0, 1, 0], [], []>} : vector<32x128xbf16>, vector<32x128xbf16>, vector<32x32xf32> -> vector<32x32xf32>
    %197 = arith.addf %196, %5 : vector<32x32xf32>
    %cst_76 = arith.constant dense<0xFF800000> : vector<32xf32>
    %198 = vector.multi_reduction <maximumf>, %197, %cst_76 [1] : vector<32x32xf32> to vector<32xf32>
    %199 = vector.shape_cast %198 : vector<32xf32> to vector<32x1xf32>
    %200 = vector.broadcast %199 : vector<32x1xf32> to vector<32x32xf32>
    %201 = arith.subf %197, %200 : vector<32x32xf32>
    %202 = math.exp %201 : vector<32x32xf32>
    %cst_77 = arith.constant dense<0.000000e+00> : vector<32xf32>
    %203 = vector.multi_reduction <add>, %202, %cst_77 [1] : vector<32x32xf32> to vector<32xf32>
    %204 = vector.shape_cast %203 : vector<32xf32> to vector<32x1xf32>
    %205 = tpu.reciprocal %204 {approx = true} : vector<32x1xf32> -> vector<32x1xf32>
    %206 = vector.broadcast %205 : vector<32x1xf32> to vector<32x32xf32>
    %207 = arith.mulf %202, %206 : vector<32x32xf32>
    %208 = arith.truncf %207 : vector<32x32xf32> to vector<32x32xbf16>
    %209 = arith.truncf %193 : vector<32x128xf32> to vector<32x128xbf16>
    %cst_78 = arith.constant dense<0.000000e+00> : vector<32x128xf32>
    %210 = tpu.matmul %208, %209, %cst_78 {dimension_numbers = #tpu.dot_dimension_numbers<[1], [0], [0], [1], [0, 0, 1, 1], [], []>} : vector<32x32xbf16>, vector<32x128xbf16>, vector<32x128xf32> -> vector<32x128xf32>
    %211 = arith.truncf %210 : vector<32x128xf32> to vector<32x128xbf16>
    %c128_79 = arith.constant 128 : index
    %c0_80 = arith.constant 0 : index
    %212 = vector.load %arg18[%c128_79, %c0_80] : memref<256x128xbf16, #tpu.memory_space<vmem>>, vector<128x128xbf16>
    %cst_81 = arith.constant dense<0.000000e+00> : vector<32x128xf32>
    %213 = tpu.matmul %211, %212, %cst_81 {dimension_numbers = #tpu.dot_dimension_numbers<[1], [0], [0], [1], [0, 0, 1, 1], [], []>} : vector<32x128xbf16>, vector<128x128xbf16>, vector<32x128xf32> -> vector<32x128xf32>
    %214 = arith.addf %190, %213 : vector<32x128xf32>
    %c0_82 = arith.constant 0 : index
    %c0_83 = arith.constant 0 : index
    %215 = vector.load %arg19[%c0_82, %c0_83] : memref<1x128xf32, #tpu.memory_space<vmem>>, vector<1x128xf32>
    %216 = vector.broadcast %215 : vector<1x128xf32> to vector<32x128xf32>
    %217 = arith.addf %214, %216 : vector<32x128xf32>
    %218 = arith.addf %217, %161 : vector<32x128xf32>
    %c0_84 = arith.constant 0 : index
    %c0_85 = arith.constant 0 : index
    %219 = vector.load %arg20[%c0_84, %c0_85] : memref<1x128xf32, #tpu.memory_space<vmem>>, vector<1x128xf32>
    %c0_86 = arith.constant 0 : index
    %c0_87 = arith.constant 0 : index
    %220 = vector.load %arg21[%c0_86, %c0_87] : memref<1x128xf32, #tpu.memory_space<vmem>>, vector<1x128xf32>
    %cst_88 = arith.constant dense<0.000000e+00> : vector<32xf32>
    %221 = vector.multi_reduction <add>, %218, %cst_88 [1] : vector<32x128xf32> to vector<32xf32>
    %222 = vector.shape_cast %221 : vector<32xf32> to vector<32x1xf32>
    %cst_89 = arith.constant 1.562500e-02 : f32
    %223 = vector.broadcast %cst_89 : f32 to vector<32x1xf32>
    %224 = arith.mulf %222, %223 : vector<32x1xf32>
    %225 = vector.broadcast %224 : vector<32x1xf32> to vector<32x128xf32>
    %226 = arith.subf %218, %225 : vector<32x128xf32>
    %227 = vector.broadcast %4 : vector<1x128xf32> to vector<32x128xf32>
    %228 = arith.mulf %226, %227 : vector<32x128xf32>
    %229 = arith.mulf %228, %228 : vector<32x128xf32>
    %cst_90 = arith.constant dense<0.000000e+00> : vector<32xf32>
    %230 = vector.multi_reduction <add>, %229, %cst_90 [1] : vector<32x128xf32> to vector<32xf32>
    %231 = vector.shape_cast %230 : vector<32xf32> to vector<32x1xf32>
    %cst_91 = arith.constant 1.562500e-02 : f32
    %232 = vector.broadcast %cst_91 : f32 to vector<32x1xf32>
    %233 = arith.mulf %231, %232 : vector<32x1xf32>
    %cst_92 = arith.constant 9.99999996E-13 : f32
    %234 = vector.broadcast %cst_92 : f32 to vector<32x1xf32>
    %235 = arith.addf %233, %234 : vector<32x1xf32>
    %236 = math.rsqrt %235 : vector<32x1xf32>
    %237 = vector.broadcast %236 : vector<32x1xf32> to vector<32x128xf32>
    %238 = arith.mulf %228, %237 : vector<32x128xf32>
    %239 = vector.broadcast %219 : vector<1x128xf32> to vector<32x128xf32>
    %240 = arith.mulf %238, %239 : vector<32x128xf32>
    %241 = vector.broadcast %220 : vector<1x128xf32> to vector<32x128xf32>
    %242 = arith.addf %240, %241 : vector<32x128xf32>
    %c0_93 = arith.constant 0 : index
    %c0_94 = arith.constant 0 : index
    %243 = vector.load %arg22[%c0_93, %c0_94] : memref<128x128xbf16, #tpu.memory_space<vmem>>, vector<128x128xbf16>
    %244 = arith.truncf %242 : vector<32x128xf32> to vector<32x128xbf16>
    %cst_95 = arith.constant dense<0.000000e+00> : vector<32x128xf32>
    %245 = tpu.matmul %244, %243, %cst_95 {dimension_numbers = #tpu.dot_dimension_numbers<[1], [0], [0], [1], [0, 0, 1, 1], [], []>} : vector<32x128xbf16>, vector<128x128xbf16>, vector<32x128xf32> -> vector<32x128xf32>
    %c0_96 = arith.constant 0 : index
    %c0_97 = arith.constant 0 : index
    %246 = vector.load %arg23[%c0_96, %c0_97] : memref<1x128xf32, #tpu.memory_space<vmem>>, vector<1x128xf32>
    %247 = vector.broadcast %246 : vector<1x128xf32> to vector<32x128xf32>
    %248 = arith.addf %245, %247 : vector<32x128xf32>
    %249 = arith.mulf %248, %248 : vector<32x128xf32>
    %250 = arith.mulf %248, %249 : vector<32x128xf32>
    %cst_98 = arith.constant 4.471500e-02 : f32
    %251 = vector.broadcast %cst_98 : f32 to vector<32x128xf32>
    %252 = arith.mulf %251, %250 : vector<32x128xf32>
    %253 = arith.addf %248, %252 : vector<32x128xf32>
    %cst_99 = arith.constant 0.797884583 : f32
    %254 = vector.broadcast %cst_99 : f32 to vector<32x128xf32>
    %255 = arith.mulf %254, %253 : vector<32x128xf32>
    %256 = math.tanh %255 : vector<32x128xf32>
    %cst_100 = arith.constant 1.000000e+00 : f32
    %257 = vector.broadcast %cst_100 : f32 to vector<32x128xf32>
    %258 = arith.addf %257, %256 : vector<32x128xf32>
    %cst_101 = arith.constant 5.000000e-01 : f32
    %259 = vector.broadcast %cst_101 : f32 to vector<32x128xf32>
    %260 = arith.mulf %259, %258 : vector<32x128xf32>
    %261 = arith.mulf %248, %260 : vector<32x128xf32>
    %c0_102 = arith.constant 0 : index
    %c0_103 = arith.constant 0 : index
    %262 = vector.load %arg24[%c0_102, %c0_103] : memref<128x128xbf16, #tpu.memory_space<vmem>>, vector<128x128xbf16>
    %263 = arith.truncf %261 : vector<32x128xf32> to vector<32x128xbf16>
    %cst_104 = arith.constant dense<0.000000e+00> : vector<32x128xf32>
    %264 = tpu.matmul %263, %262, %cst_104 {dimension_numbers = #tpu.dot_dimension_numbers<[1], [0], [0], [1], [0, 0, 1, 1], [], []>} : vector<32x128xbf16>, vector<128x128xbf16>, vector<32x128xf32> -> vector<32x128xf32>
    %c0_105 = arith.constant 0 : index
    %c0_106 = arith.constant 0 : index
    %265 = vector.load %arg25[%c0_105, %c0_106] : memref<1x128xf32, #tpu.memory_space<vmem>>, vector<1x128xf32>
    %266 = vector.broadcast %265 : vector<1x128xf32> to vector<32x128xf32>
    %267 = arith.addf %264, %266 : vector<32x128xf32>
    %268 = arith.addf %267, %242 : vector<32x128xf32>
    %c0_107 = arith.constant 0 : index
    %c0_108 = arith.constant 0 : index
    %269 = vector.load %arg26[%c0_107, %c0_108] : memref<1x128xf32, #tpu.memory_space<vmem>>, vector<1x128xf32>
    %c0_109 = arith.constant 0 : index
    %c0_110 = arith.constant 0 : index
    %270 = vector.load %arg27[%c0_109, %c0_110] : memref<1x128xf32, #tpu.memory_space<vmem>>, vector<1x128xf32>
    %cst_111 = arith.constant dense<0.000000e+00> : vector<32xf32>
    %271 = vector.multi_reduction <add>, %268, %cst_111 [1] : vector<32x128xf32> to vector<32xf32>
    %272 = vector.shape_cast %271 : vector<32xf32> to vector<32x1xf32>
    %cst_112 = arith.constant 1.562500e-02 : f32
    %273 = vector.broadcast %cst_112 : f32 to vector<32x1xf32>
    %274 = arith.mulf %272, %273 : vector<32x1xf32>
    %275 = vector.broadcast %274 : vector<32x1xf32> to vector<32x128xf32>
    %276 = arith.subf %268, %275 : vector<32x128xf32>
    %277 = vector.broadcast %4 : vector<1x128xf32> to vector<32x128xf32>
    %278 = arith.mulf %276, %277 : vector<32x128xf32>
    %279 = arith.mulf %278, %278 : vector<32x128xf32>
    %cst_113 = arith.constant dense<0.000000e+00> : vector<32xf32>
    %280 = vector.multi_reduction <add>, %279, %cst_113 [1] : vector<32x128xf32> to vector<32xf32>
    %281 = vector.shape_cast %280 : vector<32xf32> to vector<32x1xf32>
    %cst_114 = arith.constant 1.562500e-02 : f32
    %282 = vector.broadcast %cst_114 : f32 to vector<32x1xf32>
    %283 = arith.mulf %281, %282 : vector<32x1xf32>
    %cst_115 = arith.constant 9.99999996E-13 : f32
    %284 = vector.broadcast %cst_115 : f32 to vector<32x1xf32>
    %285 = arith.addf %283, %284 : vector<32x1xf32>
    %286 = math.rsqrt %285 : vector<32x1xf32>
    %287 = vector.broadcast %286 : vector<32x1xf32> to vector<32x128xf32>
    %288 = arith.mulf %278, %287 : vector<32x128xf32>
    %289 = vector.broadcast %269 : vector<1x128xf32> to vector<32x128xf32>
    %290 = arith.mulf %288, %289 : vector<32x128xf32>
    %291 = vector.broadcast %270 : vector<1x128xf32> to vector<32x128xf32>
    %292 = arith.addf %290, %291 : vector<32x128xf32>
    %c0_116 = arith.constant 0 : index
    %c0_117 = arith.constant 0 : index
    %293 = vector.load %arg33[%c0_116, %c0_117] : memref<32x128xf32, #tpu.memory_space<vmem>>, vector<32x128xf32>
    tpu.vector_store %arg33[%c0_116, %c0_117], %292 {strides = array<i32>} : memref<32x128xf32, #tpu.memory_space<vmem>>, vector<32x128xf32>,
    %c0_118 = arith.constant 0 : index
    %c0_119 = arith.constant 0 : index
    %294 = tpu.strided_load %arg33[%c0_118, %c0_119] {strides = array<i32: 8, 1>} : memref<32x128xf32, #tpu.memory_space<vmem>>, vector<2x128xf32>
    %c16 = arith.constant 16 : index
    %c0_120 = arith.constant 0 : index
    %295 = tpu.strided_load %arg33[%c16, %c0_120] {strides = array<i32: 8, 1>} : memref<32x128xf32, #tpu.memory_space<vmem>>, vector<2x128xf32>
    %296 = arith.truncf %294 : vector<2x128xf32> to vector<2x128xbf16>
    %c0_121 = arith.constant 0 : index
    %c0_122 = arith.constant 0 : index
    %297 = vector.load %arg28[%c0_121, %c0_122] : memref<256x256xbf16, #tpu.memory_space<vmem>>, vector<128x256xbf16>
    %cst_123 = arith.constant dense<0.000000e+00> : vector<2x256xf32>
    %298 = tpu.matmul %296, %297, %cst_123 {dimension_numbers = #tpu.dot_dimension_numbers<[1], [0], [0], [1], [0, 0, 1, 1], [], []>} : vector<2x128xbf16>, vector<128x256xbf16>, vector<2x256xf32> -> vector<2x256xf32>
    %299 = arith.truncf %295 : vector<2x128xf32> to vector<2x128xbf16>
    %c128_124 = arith.constant 128 : index
    %c0_125 = arith.constant 0 : index
    %300 = vector.load %arg28[%c128_124, %c0_125] : memref<256x256xbf16, #tpu.memory_space<vmem>>, vector<128x256xbf16>
    %cst_126 = arith.constant dense<0.000000e+00> : vector<2x256xf32>
    %301 = tpu.matmul %299, %300, %cst_126 {dimension_numbers = #tpu.dot_dimension_numbers<[1], [0], [0], [1], [0, 0, 1, 1], [], []>} : vector<2x128xbf16>, vector<128x256xbf16>, vector<2x256xf32> -> vector<2x256xf32>
    %302 = arith.addf %298, %301 : vector<2x256xf32>
    %c0_127 = arith.constant 0 : index
    %c0_128 = arith.constant 0 : index
    %303 = vector.load %arg29[%c0_127, %c0_128] : memref<1x256xf32, #tpu.memory_space<vmem>>, vector<1x256xf32>
    %304 = vector.broadcast %303 : vector<1x256xf32> to vector<2x256xf32>
    %305 = arith.addf %302, %304 : vector<2x256xf32>
    %cst_129 = arith.constant 0.000000e+00 : f32
    %306 = vector.broadcast %cst_129 : f32 to vector<2x256xf32>
    %307 = arith.maximumf %305, %306 : vector<2x256xf32>
    %c0_130 = arith.constant 0 : index
    %c0_131 = arith.constant 0 : index
    %308 = vector.load %arg30[%c0_130, %c0_131] : memref<256x128xbf16, #tpu.memory_space<vmem>>, vector<256x128xbf16>
    %309 = arith.truncf %307 : vector<2x256xf32> to vector<2x256xbf16>
    %cst_132 = arith.constant dense<0.000000e+00> : vector<2x128xf32>
    %310 = tpu.matmul %309, %308, %cst_132 {dimension_numbers = #tpu.dot_dimension_numbers<[1], [0], [0], [1], [0, 0, 1, 1], [], []>} : vector<2x256xbf16>, vector<256x128xbf16>, vector<2x128xf32> -> vector<2x128xf32>
    %c0_133 = arith.constant 0 : index
    %c0_134 = arith.constant 0 : index
    %311 = vector.load %arg31[%c0_133, %c0_134] : memref<1x128xf32, #tpu.memory_space<vmem>>, vector<1x128xf32>
    %312 = vector.broadcast %311 : vector<1x128xf32> to vector<2x128xf32>
    %313 = arith.addf %310, %312 : vector<2x128xf32>
    %c0_135 = arith.constant 0 : index
    %c0_136 = arith.constant 0 : index
    %314 = vector.load %arg32[%c0_135, %c0_136] : memref<2x128xf32, #tpu.memory_space<vmem>>, vector<2x128xf32>
    tpu.vector_store %arg32[%c0_135, %c0_136], %313 {strides = array<i32>} : memref<2x128xf32, #tpu.memory_space<vmem>>, vector<2x128xf32>,
    return
  }
}

</mosaic_0001>

<bundles_post_ra>
// kernel: eq.8
= control target key start
LH: loop header
LB: loop body
LE: loop exit
PB: predicated region body
PF: predicated region fallthrough
CT: control target
= control target key end

     0   :  { %vm8_vm0 = vcmask 64512   ;;  %s40_s8 = smov 8   ;;  %s41_s9 = smov 16   ;;  %vm14_vm1 = vcmask 261312   ;;  %vm20_vm2 = vcmask 195712   ;;  %vm26_vm3 = vcmask 130112   ;;  %s58_s0 = inlined_call_operand.vmem [shape: s32[4,8], index: 0, kind: input, shape index: {}]   ;;  %s59_s1 = inlined_call_operand.vmem [shape: s32[32], index: 1, kind: output, shape index: {}]  }
   0x1   :  { %v5_v0 = vld [vmem:[%s58_s0] sm:$0xf]  ;;  %s39_s0 = smov 24  }
   0x2   :  { %6 = vst [vmem:[#allocation1] sm:$0xf] %v5_v0 }
   0x9   :  { %v11_v1 = vld [vmem:[#allocation1 + $0x3] sm:$0x1]   ;;  %v23_v2 = vld [vmem:[#allocation1 + $0x1] sm:$0x1]   ;;  %v7_v3 = vld [vmem:[#allocation1] sm:$0x1]  }
   0xa   :  { %12 = vrot.lane.b32.xlu0 %v11_v1, %s39_s0  ;;  %24 = vrot.lane.b32.xlu1 %v23_v2, %s40_s8  ;;  %v17_v4 = vld [vmem:[#allocation1 + $0x2] sm:$0x1]   ;;  %9 = vst.msk [vmem:[#allocation0] sm:$0x1] %vm8_vm0, %v7_v3  }
   0xe   :  { %18 = vrot.lane.b32.xlu0 %v17_v4, %s41_s9 }
  0x7c   :  { %v13_v5 = vpop.permute.xlu0 %12   ;;  %v25_v6 = vpop.permute.xlu1 %24  }
  0x7d   :  { %15 = vst.msk [vmem:[#allocation0] sm:$0x1] %vm14_vm1, %v13_v5  }
  0x80   :  { %v19_v7 = vpop.permute.xlu0 %18  }
  0x81   :  { %21 = vst.msk [vmem:[#allocation0] sm:$0x1] %vm20_vm2, %v19_v7  }
  0x82   :  { %27 = vst.msk [vmem:[#allocation0] sm:$0x1] %vm26_vm3, %v25_v6  }
  0x89   :  { %v32_v8 = vld [vmem:[#allocation0] sm:$0x1] }
  0x8a   :  { %35 = vst [vmem:[%s59_s1] sm:$0x1] %v32_v8 }

// kernel: distillbert_fe_forward.1
= control target key start
LH: loop header
LB: loop body
LE: loop exit
PB: predicated region body
PF: predicated region fallthrough
CT: control target
= control target key end

     0   :  { %s5010_s6 = smov 1   ;;  %s5011_s10 = smov 2   ;;  %s5707_s0 = inlined_call_operand.smem [shape: u32[33], index: -1, kind: input, shape index: {}] }
   0x1   :  { %s5067_s5 = sld [smem:[%s5707_s0]]   ;;  %s5012_s14 = smov 3  }
   0x2   :  { %s5072_s9 = sld [smem:[%s5707_s0 + %s5010_s6]]   ;;  %s5013_s18 = smov 4  }
   0x3   :  { %s5077_s13 = sld [smem:[%s5707_s0 + %s5011_s10]]   ;;  %s5014_s22 = smov 5  }
   0x4   :  { %s5082_s17 = sld [smem:[%s5707_s0 + %s5012_s14]]   ;;  %s5015_s26 = smov 6  }
   0x5   :  { %s5087_s21 = sld [smem:[%s5707_s0 + %s5013_s18]]   ;;  %s5016_s30 = smov 7  }
   0x6   :  { %s5092_s25 = sld [smem:[%s5707_s0 + %s5014_s22]]   ;;  %s5017_s4 = smov 8  }
   0x7   :  { %s5097_s29 = sld [smem:[%s5707_s0 + %s5015_s26]]   ;;  %s5018_s10 = smov 9  }
   0x8   :  { %s5102_s3 = sld [smem:[%s5707_s0 + %s5016_s30]]   ;;  %s5019_s15 = smov 10  }
   0x9   :  { %s5107_s8 = sld [smem:[%s5707_s0 + %s5017_s4]]   ;;  %s5020_s20 = smov 11  }
   0xa   :  { %s5112_s14 = sld [smem:[%s5707_s0 + %s5018_s10]]   ;;  %s5021_s26 = smov 12  }
   0xb   :  { %s5117_s19 = sld [smem:[%s5707_s0 + %s5019_s15]]   ;;  %s5022_s1 = smov 13  }
   0xc   :  { %s5122_s24 = sld [smem:[%s5707_s0 + %s5020_s20]]   ;;  %s5023_s7 = smov 14  }
   0xd   :  { %s5127_s30 = sld [smem:[%s5707_s0 + %s5021_s26]]   ;;  %s5024_s15 = smov 15  }
   0xe   :  { %s5132_s6 = sld [smem:[%s5707_s0 + %s5022_s1]]   ;;  %s5025_s22 = smov 16  }
   0xf   :  { %s5137_s12 = sld [smem:[%s5707_s0 + %s5023_s7]]   ;;  %s5026_s28 = smov 17  }
  0x10   :  { %5710 = sst [smem:[#allocation24_spill]] %s5112_s14  ;;  %s5027_s7 = smov 18  }
  0x11   :  { %s5142_s20 = sld [smem:[%s5707_s0 + %s5024_s15]]   ;;  %s5028_s15 = smov 19  }
  0x12   :  { %5711 = sst [smem:[#allocation25_spill]] %s5122_s24 }
  0x13   :  { %s5147_s27 = sld [smem:[%s5707_s0 + %s5025_s22]]   ;;  %s5029_s22 = smov 20  }
  0x14   :  { %5712 = sst [smem:[#allocation26_spill]] %s5132_s6 }
  0x15   :  { %5713 = sst [smem:[#allocation27_spill]] %s5137_s12 }
  0x16   :  { %s5152_s4 = sld [smem:[%s5707_s0 + %s5026_s28]]   ;;  %s5030_s28 = smov 21  }
  0x17   :  { %5714 = sst [smem:[#allocation28_spill]] %s5142_s20 }
  0x18   :  { %s5157_s12 = sld [smem:[%s5707_s0 + %s5027_s7]]   ;;  %s5031_s7 = smov 22  }
  0x19   :  { %5715 = sst [smem:[#allocation29_spill]] %s5147_s27 }
  0x1a   :  { %s5162_s20 = sld [smem:[%s5707_s0 + %s5028_s15]]   ;;  %s5032_s15 = smov 23  }
  0x1b   :  { %s5167_s27 = sld [smem:[%s5707_s0 + %s5029_s22]]   ;;  %s5033_s22 = smov 24  }
  0x1c   :  { %5716 = sst [smem:[#allocation30_spill]] %s5152_s4 }
  0x1d   :  { %s5172_s4 = sld [smem:[%s5707_s0 + %s5030_s28]]   ;;  %s5034_s28 = smov 25  }
  0x1e   :  { %s5177_s6 = sld [smem:[%s5707_s0 + %s5031_s7]]   ;;  %s5035_s7 = smov 26  }
  0x1f   :  { %s5197_s24 = sld [smem:[%s5707_s0 + %s5035_s7]]   ;;  %s5039_s7 = smov 30  }
  0x20   :  { %5717 = sst [smem:[#allocation31_spill]] %s5162_s20 }
  0x21   :  { %5718 = sst [smem:[#allocation32_spill]] %s5167_s27 }
  0x22   :  { %s5182_s20 = sld [smem:[%s5707_s0 + %s5032_s15]]   ;;  %s5036_s15 = smov 27  }
  0x23   :  { %5719 = sst [smem:[#allocation33_spill]] %s5172_s4 }
  0x24   :  { %s5187_s27 = sld [smem:[%s5707_s0 + %s5033_s22]]   ;;  %s5037_s22 = smov 28  }
  0x25   :  { %s5192_s4 = sld [smem:[%s5707_s0 + %s5034_s28]]   ;;  %s5038_s28 = smov 29  }
  0x26   :  { %5723 = sst [smem:[#allocation37_spill]] %s5197_s24 }
  0x27   :  { %s5217_s24 = sld [smem:[%s5707_s0 + %s5039_s7]]  }
  0x28   :  { %5720 = sst [smem:[#allocation34_spill]] %s5182_s20 }
  0x29   :  { %s5202_s20 = sld [smem:[%s5707_s0 + %s5036_s15]]   ;;  %s5040_s15 = smov 31  }
  0x2a   :  { %5721 = sst [smem:[#allocation35_spill]] %s5187_s27 }
  0x2b   :  { %5722 = sst [smem:[#allocation36_spill]] %s5192_s4 }
  0x2c   :  { %s5207_s27 = sld [smem:[%s5707_s0 + %s5037_s22]]   ;;  %s5041_s22 = smov 32  }
  0x2d   :  { %s5212_s4 = sld [smem:[%s5707_s0 + %s5038_s28]]  }
  0x2e   :  { %s5227_s14 = sld [smem:[%s5707_s0 + %s5041_s22]]  }
  0x2f   :  { %5724 = sst [smem:[#allocation38_spill]] %s5202_s20 }
  0x30   :  { %s5222_s20 = sld [smem:[%s5707_s0 + %s5040_s15]]  }
  0x31   :  { %70 = vsyncpa [#allocation4], 0 }
  0x32   :  { %71 = vsyncpa [#allocation7], 0 }
  0x33   :  { %72 = vsyncpa [#allocation10], 0 }
  0x34   :  { %73 = vsyncpa [#allocation13], 0 }
  0x35   :  { %74 = vsyncpa [#allocation16], 0 }
  0x36   :  { %75 = vsyncpa [#allocation5], 0  ;;  %s5042_s28 = smov [#allocation6]  }
  0x37   :  { %s103_s1 = sshll.u32 %s5042_s28, 4  ;;  %s104_s1 = int_to_ptr.vmem [resolvable:$true] %s103_s1 }
  0x38   :  { %s4826_s2 = scalar_lea.vmem %s104_s1, 2048  ;;  %p4831_p1 = scmp.lt.s32.totalorder %s104_s1, %s104_s1 }
  0x39   :  { %p4827_p0 = scmp.ne.s32.totalorder %s104_s1, %s4826_s2  ;;  %p4832_p2 = scmp.lt.s32.totalorder %s4826_s2, %s4826_s2 }
  0x3b   :  { %p4833_p3 = por %p4832_p2, %p4831_p1 }
  0x3d   :  { %p4834_p4 = pnand %p4833_p3, %p4827_p0 }
  0x3f   :  { %4837 = shalt.err (!%p4834_p4)
}
  0x40   :  { %s5043_s7 = smov 64   ;;  %s5044_s0 = smov 4  }
  0x41   :  { %109 = dma.hbm_to_vmem [thread:$0]  %s5097_s29, 2048, %s104_s1, [#allocation7], %s5043_s7, %s5043_s7, %s5044_s0  }
  0x42   :  { %s5045_s10 = smov [#allocation9]   ;;  %s5046_s15 = smov [#allocation12]  }
  0x43   :  { %s135_s11 = sshll.u32 %s5045_s10, 4  ;;  %s175_s16 = sshll.u32 %s5046_s15, 4  ;;  %s136_s11 = int_to_ptr.vmem [resolvable:$true] %s135_s11  ;;  %s176_s16 = int_to_ptr.vmem [resolvable:$true] %s175_s16 }
  0x44   :  { %s4846_s18 = scalar_lea.vmem %s136_s11, 1024  ;;  %p4851_p6 = scmp.lt.s32.totalorder %s136_s11, %s136_s11 }
  0x45   :  { %p4847_p5 = scmp.ne.s32.totalorder %s136_s11, %s4846_s18  ;;  %p4852_p7 = scmp.lt.s32.totalorder %s4846_s18, %s4846_s18 }
  0x47   :  { %p4853_p8 = por %p4852_p7, %p4851_p6 }
  0x49   :  { %p4854_p9 = pnand %p4853_p8, %p4847_p5 }
  0x4b   :  { %4857 = shalt.err (!%p4854_p9)
}
  0x4c   :  { %141 = dma.hbm_to_vmem [thread:$0]  %s5127_s30, 1024, %s136_s11, [#allocation10], %s5043_s7, %s5043_s7, %s5044_s0  }
  0x4d   :  { %s4866_s22 = scalar_lea.vmem %s176_s16, 1024  ;;  %p4871_p11 = scmp.lt.s32.totalorder %s176_s16, %s176_s16 }
  0x4e   :  { %p4867_p10 = scmp.ne.s32.totalorder %s176_s16, %s4866_s22  ;;  %p4872_p12 = scmp.lt.s32.totalorder %s4866_s22, %s4866_s22 }
  0x50   :  { %p4873_p13 = por %p4872_p12, %p4871_p11 }
  0x52   :  { %p4874_p0 = pnand %p4873_p13, %p4867_p10 }
  0x54   :  { %4877 = shalt.err (!%p4874_p0)
}
  0x55   :  { %181 = dma.hbm_to_vmem [thread:$0]  %s5177_s6, 1024, %s176_s16, [#allocation13], %s5043_s7, %s5043_s7, %s5044_s0  }
  0x56   :  { %s5047_s29 = smov [#allocation3]  }
  0x57   :  { %s89_s23 = sshll.u32 %s5047_s29, 4  ;;  %s90_s23 = int_to_ptr.vmem [resolvable:$true] %s89_s23 }
  0x58   :  { %s4886_s26 = scalar_lea.vmem %s90_s23, 6144  ;;  %p4891_p2 = scmp.lt.s32.totalorder %s90_s23, %s90_s23 }
  0x59   :  { %p4887_p1 = scmp.ne.s32.totalorder %s90_s23, %s4886_s26  ;;  %p4892_p3 = scmp.lt.s32.totalorder %s4886_s26, %s4886_s26 }
  0x5b   :  { %p4893_p4 = por %p4892_p3, %p4891_p2 }
  0x5d   :  { %p4894_p5 = pnand %p4893_p4, %p4887_p1 }
  0x5f   :  { %4897 = shalt.err (!%p4894_p5)
}
  0x60   :  { %s5048_s30 = smov 384   ;;  %s5049_s28 = smov 24  }
  0x61   :  { %95 = dma.hbm_to_vmem [thread:$0]  %s5087_s21, 6144, %s90_s23, [#allocation4], %s5048_s30, %s5048_s30, %s5049_s28  }
  0x62   :  { %s5050_s1 = smov [#allocation8]   ;;  %s5051_s10 = smov [#allocation11]  }
  0x63   :  { %s121_s2 = sshll.u32 %s5050_s1, 4  ;;  %s157_s11 = sshll.u32 %s5051_s10, 4  ;;  %s122_s2 = int_to_ptr.vmem [resolvable:$true] %s121_s2  ;;  %s158_s11 = int_to_ptr.vmem [resolvable:$true] %s157_s11 }
  0x64   :  { %s4906_s6 = scalar_lea.vmem %s122_s2, 1024  ;;  %p4911_p7 = scmp.lt.s32.totalorder %s122_s2, %s122_s2 }
  0x65   :  { %p4907_p6 = scmp.ne.s32.totalorder %s122_s2, %s4906_s6  ;;  %p4912_p8 = scmp.lt.s32.totalorder %s4906_s6, %s4906_s6 }
  0x67   :  { %p4913_p9 = por %p4912_p8, %p4911_p7 }
  0x69   :  { %p4914_p10 = pnand %p4913_p9, %p4907_p6 }
  0x6b   :  { %4917 = shalt.err (!%p4914_p10)
}
  0x6c   :  { %127 = dma.hbm_to_vmem [thread:$0]  %s5117_s19, 1024, %s122_s2, [#allocation7], %s5043_s7, %s5043_s7, %s5044_s0  }
  0x6d   :  { %s4926_s15 = scalar_lea.vmem %s158_s11, 2048  ;;  %p4931_p12 = scmp.lt.s32.totalorder %s158_s11, %s158_s11 }
  0x6e   :  { %p4927_p11 = scmp.ne.s32.totalorder %s158_s11, %s4926_s15  ;;  %p4932_p13 = scmp.lt.s32.totalorder %s4926_s15, %s4926_s15 }
  0x70   :  { %p4933_p0 = por %p4932_p13, %p4931_p12 }
  0x72   :  { %p4934_p1 = pnand %p4933_p0, %p4927_p11 }
  0x74   :  { %4937 = shalt.err (!%p4934_p1)
}
  0x75   :  { %163 = dma.hbm_to_vmem [thread:$0]  %s5157_s12, 2048, %s158_s11, [#allocation10], %s5043_s7, %s5043_s7, %s5044_s0  }
  0x76   :  { %s5052_s21 = smov [#allocation14]  }
  0x77   :  { %s197_s16 = sshll.u32 %s5052_s21, 4  ;;  %s198_s16 = int_to_ptr.vmem [resolvable:$true] %s197_s16 }
  0x78   :  { %s4946_s18 = scalar_lea.vmem %s198_s16, 4096  ;;  %p4951_p3 = scmp.lt.s32.totalorder %s198_s16, %s198_s16 }
  0x79   :  { %p4947_p2 = scmp.ne.s32.totalorder %s198_s16, %s4946_s18  ;;  %p4952_p4 = scmp.lt.s32.totalorder %s4946_s18, %s4946_s18 }
  0x7b   :  { %p4953_p5 = por %p4952_p4, %p4951_p3 }
  0x7d   :  { %p4954_p6 = pnand %p4953_p5, %p4947_p2 }
  0x7f   :  { %4957 = shalt.err (!%p4954_p6)
}
  0x80   :  { %s5053_s19 = smov 128   ;;  %s5054_s22 = smov 8  }
  0x81   :  { %203 = dma.hbm_to_vmem [thread:$0]  %s5207_s27, 4096, %s198_s16, [#allocation13], %s5053_s19, %s5053_s19, %s5054_s22  }
  0x82   :  { %s5055_s29 = smov [#allocation15]  }
  0x83   :  { %s211_s23 = sshll.u32 %s5055_s29, 4  ;;  %s212_s23 = int_to_ptr.vmem [resolvable:$true] %s211_s23 }
  0x84   :  { %s4966_s26 = scalar_lea.vmem %s212_s23, 2048  ;;  %p4971_p8 = scmp.lt.s32.totalorder %s212_s23, %s212_s23 }
  0x85   :  { %p4967_p7 = scmp.ne.s32.totalorder %s212_s23, %s4966_s26  ;;  %p4972_p9 = scmp.lt.s32.totalorder %s4966_s26, %s4966_s26 }
  0x87   :  { %p4973_p10 = por %p4972_p9, %p4971_p8 }
  0x89   :  { %p4974_p11 = pnand %p4973_p10, %p4967_p7 }
  0x8b   :  { %4977 = shalt.err (!%p4974_p11)
}
  0x8c   :  { %217 = dma.hbm_to_vmem [thread:$0]  %s5217_s24, 2048, %s212_s23, [#allocation16], %s5043_s7, %s5043_s7, %s5044_s0  }
  0x8d   :  { %4998 = dma.done.wait [#allocation4], 6144  }
  0x8e   :  { %4999 = vsyncadd [#allocation4], 4294961152 }
  0x8f   :  { %5000 = dma.done.wait [#allocation7], 3072  }
  0x90   :  { %5001 = vsyncadd [#allocation7], 4294964224 }
  0x91   :  { %5002 = dma.done.wait [#allocation10], 3072  }
  0x92   :  { %5003 = vsyncadd [#allocation10], 4294964224 }
  0x93   :  { %5004 = dma.done.wait [#allocation13], 5120  }
  0x94   :  { %5005 = vsyncadd [#allocation13], 4294962176 }
  0x95   :  { %5006 = dma.done.wait [#allocation16], 2048  }
  0x96   :  { %5007 = vsyncadd [#allocation16], 4294965248  ;;  %v254_v0 = vld [vmem:[%s5067_s5] sm:$0xff]  ;;  %v256_v1 = vld [vmem:[%s5067_s5 + $0x10] sm:$0xff]  ;;  %v245_v8 = vlaneseq  ;;  %v5056_v14 = vmov 0.0   ;;  %v5057_v54 = vmov 0  }
  0x97   :  { %v255_v2 = vld [vmem:[%s5067_s5 + $0x8] sm:$0xff]  ;;  %260 = vadd.xlane.f32.xlu0 %v254_v0  ;;  %264 = vadd.xlane.f32.xlu1 %v256_v1  ;;  %v257_v3 = vld [vmem:[%s5067_s5 + $0x18] sm:$0xff]  ;;  %vm862_vm1 = vcmask 261120   ;;  %s5725_s5 = sld [smem:[#allocation24_spill]] }
  0x98   :  { %v4422_v4 = vld [vmem:[#allocation3 + $0x154] ss:$24 sps:$4 sm:$0xff]   ;;  %v4424_v5 = vld [vmem:[#allocation3 + $0x150] ss:$24 sps:$4 sm:$0xff]   ;;  %v246_v9 = vand.u32 127, %v245_v8  ;;  %682 = vmatprep.mubr.bf16.mxu0 %v5057_v54  ;;  %735 = vmatprep.mubr.bf16.mxu1 %v5057_v54  ;;  %s5731_s24 = sld [smem:[#allocation30_spill]] }
  0x99   :  { %v4425_v6 = vld [vmem:[#allocation3 + $0x15c] ss:$24 sps:$4 sm:$0xff]   ;;  %v4427_v7 = vld [vmem:[#allocation3 + $0x158] ss:$24 sps:$4 sm:$0xff]   ;;  %650 = vmatprep.subr.bf16.mxu0 %v4422_v4  ;;  %v4431_v34 = vld [vmem:[#allocation3 + $0x12c] ss:$24 sps:$4 sm:$0xff]  }
  0x9a   :  { %703 = vmatprep.subr.bf16.mxu1 %v4425_v6  ;;  %651 = vmatpush1.bf16.msra.mxu0 %v4424_v5  ;;  %vm247_vm0 = vcmp.lt.s32.totalorder %v246_v9, 64  ;;  %v4428_v32 = vld [vmem:[#allocation3 + $0x124] ss:$24 sps:$4 sm:$0xff]   ;;  %v4430_v33 = vld [vmem:[#allocation3 + $0x120] ss:$24 sps:$4 sm:$0xff]   ;;  %s5733_s12 = sld [smem:[#allocation32_spill]] }
  0x9b   :  { %262 = vadd.xlane.f32.xlu0 %v255_v2  ;;  %266 = vadd.xlane.f32.xlu1 %v257_v3  ;;  %v5260_v15 = vsel %vm247_vm0, 1.0, %v5056_v14  ;;  %v4433_v35 = vld [vmem:[#allocation3 + $0x128] ss:$24 sps:$4 sm:$0xff]   ;;  %v4434_v36 = vld [vmem:[#allocation3 + $0xf4] ss:$24 sps:$4 sm:$0xff]   ;;  %s5734_s27 = sld [smem:[#allocation33_spill]] }
  0x9c   :  { %704 = vmatpush1.bf16.msra.mxu1 %v4427_v7  ;;  %652 = vmatprep.subr.bf16.mxu0 %v4428_v32  ;;  %v4436_v37 = vld [vmem:[#allocation3 + $0xf0] ss:$24 sps:$4 sm:$0xff]   ;;  %v4437_v38 = vld [vmem:[#allocation3 + $0xfc] ss:$24 sps:$4 sm:$0xff]   ;;  %v4442_v41 = vld [vmem:[#allocation3 + $0xc0] ss:$24 sps:$4 sm:$0xff]  }
  0x9d   :  { %705 = vmatprep.subr.bf16.mxu1 %v4431_v34  ;;  %v4439_v39 = vld [vmem:[#allocation3 + $0xf8] ss:$24 sps:$4 sm:$0xff]   ;;  %v4440_v40 = vld [vmem:[#allocation3 + $0xc4] ss:$24 sps:$4 sm:$0xff]   ;;  %v4445_v43 = vld [vmem:[#allocation3 + $0xc8] ss:$24 sps:$4 sm:$0xff]  }
  0x9e   :  { %653 = vmatpush1.bf16.msra.mxu0 %v4430_v33  ;;  %v4443_v42 = vld [vmem:[#allocation3 + $0xcc] ss:$24 sps:$4 sm:$0xff]   ;;  %v4448_v45 = vld [vmem:[#allocation3 + $0x90] ss:$24 sps:$4 sm:$0xff]   ;;  %v4449_v46 = vld [vmem:[#allocation3 + $0x9c] ss:$24 sps:$4 sm:$0xff]  }
  0x9f   :  { %654 = vmatprep.subr.bf16.mxu0 %v4434_v36  ;;  %v4446_v44 = vld [vmem:[#allocation3 + $0x94] ss:$24 sps:$4 sm:$0xff]   ;;  %v4451_v47 = vld [vmem:[#allocation3 + $0x98] ss:$24 sps:$4 sm:$0xff]   ;;  %v4452_v48 = vld [vmem:[#allocation3 + $0x64] ss:$24 sps:$4 sm:$0xff]  }
  0xa0   :  { %706 = vmatpush1.bf16.msra.mxu1 %v4433_v35  ;;  %v4455_v49 = vld [vmem:[#allocation3 + $0x6c] ss:$24 sps:$4 sm:$0xff]   ;;  %v4454_v50 = vld [vmem:[#allocation3 + $0x60] ss:$24 sps:$4 sm:$0xff]   ;;  %v4461_v53 = vld [vmem:[#allocation3 + $0x3c] ss:$24 sps:$4 sm:$0xff]  }
  0xa1   :  { %707 = vmatprep.subr.bf16.mxu1 %v4437_v38  ;;  %v4457_v51 = vld [vmem:[#allocation3 + $0x68] ss:$24 sps:$4 sm:$0xff]   ;;  %v4458_v52 = vld [vmem:[#allocation3 + $0x34] ss:$24 sps:$4 sm:$0xff]   ;;  %v4463_v56 = vld [vmem:[#allocation3 + $0x38] ss:$24 sps:$4 sm:$0xff]  }
  0xa2   :  { %655 = vmatpush1.bf16.msra.mxu0 %v4436_v37  ;;  %v4460_v55 = vld [vmem:[#allocation3 + $0x30] ss:$24 sps:$4 sm:$0xff]   ;;  %v4464_v57 = vld [vmem:[#allocation3 + $0x4] ss:$24 sps:$4 sm:$0xff]   ;;  %v4466_v59 = vld [vmem:[#allocation3] ss:$24 sps:$4 sm:$0xff]  }
  0xa3   :  { %656 = vmatprep.subr.bf16.mxu0 %v4440_v40  ;;  %v4467_v58 = vld [vmem:[#allocation3 + $0xc] ss:$24 sps:$4 sm:$0xff]   ;;  %v4469_v60 = vld [vmem:[#allocation3 + $0x8] ss:$24 sps:$4 sm:$0xff]   ;;  %s5735_s7 = sld [smem:[#allocation35_spill]] }
  0xa4   :  { %708 = vmatpush1.bf16.msra.mxu1 %v4439_v39  ;;  %v4472_v61 = vld [vmem:[#allocation3 + $0x164] ss:$24 sps:$4 sm:$0xff]   ;;  %v4473_v33 = vld [vmem:[#allocation3 + $0x130] ss:$24 sps:$4 sm:$0xff]   ;;  %v4476_v35 = vld [vmem:[#allocation3 + $0x100] ss:$24 sps:$4 sm:$0xff]  }
  0xa5   :  { %709 = vmatprep.subr.bf16.mxu1 %v4443_v42  ;;  %v4478_v34 = vld [vmem:[#allocation3 + $0x104] ss:$24 sps:$4 sm:$0xff]   ;;  %v4481_v37 = vld [vmem:[#allocation3 + $0xd4] ss:$24 sps:$4 sm:$0xff]   ;;  %v4479_v38 = vld [vmem:[#allocation3 + $0xd0] ss:$24 sps:$4 sm:$0xff]  }
  0xa6   :  { %657 = vmatpush1.bf16.msra.mxu0 %v4442_v41  ;;  %v4484_v39 = vld [vmem:[#allocation3 + $0xa4] ss:$24 sps:$4 sm:$0xff]   ;;  %v4482_v40 = vld [vmem:[#allocation3 + $0xa0] ss:$24 sps:$4 sm:$0xff]   ;;  %v4487_v41 = vld [vmem:[#allocation3 + $0x74] ss:$24 sps:$4 sm:$0xff]  }
  0xa7   :  { %658 = vmatprep.subr.bf16.mxu0 %v4446_v44  ;;  %v4485_v42 = vld [vmem:[#allocation3 + $0x70] ss:$24 sps:$4 sm:$0xff]   ;;  %v4488_v44 = vld [vmem:[#allocation3 + $0x40] ss:$24 sps:$4 sm:$0xff]   ;;  %s5736_s0 = sld [smem:[#allocation34_spill]] }
  0xa8   :  { %710 = vmatpush1.bf16.msra.mxu1 %v4445_v43  ;;  %v4490_v43 = vld [vmem:[#allocation3 + $0x44] ss:$24 sps:$4 sm:$0xff]   ;;  %s5737_s30 = sld [smem:[#allocation36_spill]] }
  0xa9   :  { %711 = vmatprep.subr.bf16.mxu1 %v4449_v46  ;;  %v4491_v46 = vld [vmem:[#allocation3 + $0x10] ss:$24 sps:$4 sm:$0xff]   ;;  %s5738_s28 = sld [smem:[#allocation37_spill]] }
  0xaa   :  { %659 = vmatpush1.bf16.msra.mxu0 %v4448_v45  ;;  %v4493_v45 = vld [vmem:[#allocation3 + $0x14] ss:$24 sps:$4 sm:$0xff]   ;;  %s5739_s1 = sld [smem:[#allocation38_spill]] }
  0xab   :  { %660 = vmatprep.subr.bf16.mxu0 %v4452_v48 }
  0xac   :  { %712 = vmatpush1.bf16.msra.mxu1 %v4451_v47  ;;  %v5307_v47 = vshrl.u32 %v245_v8, 7 }
  0xad   :  { %713 = vmatprep.subr.bf16.mxu1 %v4455_v49 }
  0xae   :  { %661 = vmatpush1.bf16.msra.mxu0 %v4454_v50  ;;  %v394_v48 = vsub.s32 3, %v5307_v47  ;;  %v5311_v49 = vsub.s32 0, %v5307_v47  ;;  %v378_v50 = vld [vmem:[%s5092_s25] sm:$0x3f]  ;;  %s5728_s25 = sld [smem:[#allocation29_spill]] }
  0xaf   :  { %662 = vmatprep.subr.bf16.mxu0 %v4458_v52 }
  0xb0   :  { %714 = vmatpush1.bf16.msra.mxu1 %v4457_v51  ;;  %v5315_v51 = vsub.s32 1, %v5307_v47  ;;  %v5319_v52 = vrot.slane %v378_v50, %v394_v48 }
  0xb1   :  { %715 = vmatprep.subr.bf16.mxu1 %v4461_v53 }
  0xb2   :  { %663 = vmatpush1.bf16.msra.mxu0 %v4460_v55 }
  0xb3   :  { %664 = vmatprep.subr.bf16.mxu0 %v4464_v57 }
  0xb4   :  { %716 = vmatpush1.bf16.msra.mxu1 %v4463_v56  ;;  %v383_v56 = vrot.slane %v378_v50, %v5311_v49 }
  0xb5   :  { %717 = vmatprep.subr.bf16.mxu1 %v4467_v58  ;;  %v387_v58 = vrot.slane %v378_v50, %v5315_v51 }
  0xb6   :  { %665 = vmatpush1.bf16.msra.mxu0 %v4466_v59 }
  0xb7   :  { %756 = vmatprep.subr.bf16.mxu0 %v4472_v61 }
  0xb8   :  { %718 = vmatpush1.bf16.msra.mxu1 %v4469_v60 }
 0x120   :  { %v261_v10 = vpop.xlane.xlu0 %260  ;;  %v265_v11 = vpop.xlane.xlu1 %264 }
 0x121   :  { %v268_v12 = vmul.f32 0.015625, %v261_v10  ;;  %v270_v13 = vmul.f32 0.015625, %v265_v11 }
 0x123   :  { %v272_v16 = vsub.f32 %v254_v0, %v268_v12  ;;  %v274_v17 = vsub.f32 %v256_v1, %v270_v13  ;;  %v3782_v13 = vld [vmem:[%s5077_s13] ss:$0 sm:$0xff]  ;;  %s5726_s13 = sld [smem:[#allocation25_spill]] }
 0x124   :  { %v263_v18 = vpop.xlane.xlu0 %262  ;;  %v267_v19 = vpop.xlane.xlu1 %266 }
 0x125   :  { %v269_v20 = vmul.f32 0.015625, %v263_v18  ;;  %v271_v21 = vmul.f32 0.015625, %v267_v19  ;;  %v5263_v22 = vmul.f32 %v5260_v15, %v272_v16  ;;  %v5266_v23 = vmul.f32 %v5260_v15, %v274_v17  ;;  %v3783_v19 = vld [vmem:[%s5082_s17] ss:$0 sm:$0xff]  ;;  %s5727_s17 = sld [smem:[#allocation26_spill]] }
 0x127   :  { %v273_v24 = vsub.f32 %v255_v2, %v269_v20  ;;  %v275_v25 = vsub.f32 %v257_v3, %v271_v21  ;;  %v280_v26 = vmul.f32 %v5263_v22, %v5263_v22  ;;  %v282_v27 = vmul.f32 %v5266_v23, %v5266_v23 }
 0x129   :  { %284 = vadd.xlane.f32.xlu0 %v280_v26  ;;  %v5273_v28 = vmul.f32 %v5260_v15, %v273_v24  ;;  %v5276_v29 = vmul.f32 %v5260_v15, %v275_v25 }
 0x12b   :  { %v281_v30 = vmul.f32 %v5273_v28, %v5273_v28  ;;  %v283_v31 = vmul.f32 %v5276_v29, %v5276_v29 }
 0x12d   :  { %288 = vadd.xlane.f32.xlu0 %v282_v27  ;;  %286 = vadd.xlane.f32.xlu1 %v281_v30  ;;  %v4470_v30 = vld [vmem:[#allocation3 + $0x160] ss:$24 sps:$4 sm:$0xff]  }
 0x131   :  { %290 = vadd.xlane.f32.xlu1 %v283_v31  ;;  %v4475_v31 = vld [vmem:[#allocation3 + $0x134] ss:$24 sps:$4 sm:$0xff]  }
 0x1b2   :  { %v285_v62 = vpop.xlane.xlu0 %284 }
 0x1b3   :  { %v292_v63 = vmul.f32 0.015625, %v285_v62 }
 0x1b5   :  { %v296_v0 = vadd.f32 1e-12, %v292_v63 }
 0x1b6   :  { %v287_v1 = vpop.xlane.xlu1 %286  ;;  %v289_v2 = vpop.xlane.xlu0 %288 }
 0x1b7   :  { %4694 = vrsqrt.f32 %v296_v0  ;;  %v293_v3 = vmul.f32 0.015625, %v287_v1  ;;  %v294_v4 = vmul.f32 0.015625, %v289_v2  ;;  %v390_v0 = vsub.s32 2, %v5307_v47 }
 0x1b9   :  { %v297_v5 = vadd.f32 1e-12, %v293_v3  ;;  %v298_v6 = vadd.f32 1e-12, %v294_v4 }
 0x1ba   :  { %v291_v7 = vpop.xlane.xlu1 %290 }
 0x1bb   :  { %4696 = vrsqrt.f32 %v297_v5  ;;  %v295_v9 = vmul.f32 0.015625, %v291_v7 }
 0x1bc   :  { %4698 = vrsqrt.f32 %v298_v6 }
 0x1bd   :  { %v299_v10 = vadd.f32 1e-12, %v295_v9 }
 0x1bf   :  { %4700 = vrsqrt.f32 %v299_v10 }
 0x1c4   :  { %v4695_v11 = vpop.eup %4694 }
 0x1c5   :  { %v304_v12 = vmul.f32 %v4695_v11, %v5263_v22 }
 0x1c7   :  { %v314_v17 = vmul.f32 %v3782_v13, %v304_v12 }
 0x1c8   :  { %v4697_v14 = vpop.eup %4696 }
 0x1c9   :  { %v305_v16 = vmul.f32 %v4697_v14, %v5273_v28  ;;  %v4699_v18 = vpop.eup %4698  ;;  %v5288_v24 = vadd.f32 %v3783_v19, %v314_v17  ;;  %v391_v14 = vrot.slane %v378_v50, %v390_v0 }
 0x1ca   :  { %v306_v26 = vmul.f32 %v4699_v18, %v5266_v23 }
 0x1cb   :  { %v315_v20 = vmul.f32 %v3782_v13, %v305_v16 }
 0x1cc   :  { %v4701_v21 = vpop.eup %4700  ;;  %v316_v28 = vmul.f32 %v3782_v13, %v306_v26 }
 0x1cd   :  { %v5290_v25 = vadd.f32 %v3783_v19, %v315_v20  ;;  %v307_v27 = vmul.f32 %v4701_v21, %v5276_v29 }
 0x1ce   :  { %v5300_v29 = vadd.f32 %v3783_v19, %v316_v28 }
 0x1cf   :  { %v376_v22 = vpack.c.bf16 %v5290_v25, %v5288_v24  ;;  %v317_v32 = vmul.f32 %v3782_v13, %v307_v27 }
 0x1d1   :  { %683 = vmatmul.mubr.bf16.vlgmr.msra.gmra.mxu0 %v376_v22  ;;  %736 = vmatmul.mubr.bf16.vlgmr.msra.gmra.mxu1 %v376_v22  ;;  %v5298_v23 = vadd.f32 %v3783_v19, %v317_v32 }
 0x1d2   :  { %757 = vmatpush1.bf16.msra.mxu0 %v4470_v30  ;;  %692 = vmatprep.mubr.bf16.mxu0 %v5057_v54 }
 0x1d3   :  { %758 = vmatprep.subr.bf16.mxu0 %v4475_v31  ;;  %745 = vmatprep.mubr.bf16.mxu1 %v5057_v54  ;;  %v377_v36 = vpack.c.bf16 %v5298_v23, %v5300_v29 }
 0x1d6   :  { %759 = vmatpush1.bf16.msra.mxu0 %v4473_v33 }
 0x1d7   :  { %760 = vmatprep.subr.bf16.mxu0 %v4478_v34 }
 0x1d9   :  { %693 = vmatmul.mubr.bf16.gmra.mxu0 %v377_v36  ;;  %746 = vmatmul.mubr.bf16.gmra.mxu1 %v377_v36 }
 0x1da   :  { %761 = vmatpush1.bf16.msra.mxu0 %v4476_v35  ;;  %788 = vmatprep.mubr.bf16.mxu0 %v5057_v54  ;;  %v402_v35 = vsub.s32 5, %v5307_v47 }
 0x1db   :  { %762 = vmatprep.subr.bf16.mxu0 %v4481_v37 }
 0x1de   :  { %763 = vmatpush1.bf16.msra.mxu0 %v4479_v38  ;;  %v5345_v38 = vrot.slane %v378_v50, %v402_v35 }
 0x1df   :  { %764 = vmatprep.subr.bf16.mxu0 %v4484_v39 }
 0x1e2   :  { %765 = vmatpush1.bf16.msra.mxu0 %v4482_v40 }
 0x1e3   :  { %766 = vmatprep.subr.bf16.mxu0 %v4487_v41  ;;  %v398_v41 = vsub.s32 4, %v5307_v47 }
 0x1e6   :  { %767 = vmatpush1.bf16.msra.mxu0 %v4485_v42 }
 0x1e7   :  { %768 = vmatprep.subr.bf16.mxu0 %v4490_v43 }
 0x1ea   :  { %769 = vmatpush1.bf16.msra.mxu0 %v4488_v44 }
 0x1eb   :  { %770 = vmatprep.subr.bf16.mxu0 %v4493_v45 }
 0x1ee   :  { %771 = vmatpush1.bf16.msra.mxu0 %v4491_v46 }
 0x1f1   :  { %789 = vmatmul.mubr.bf16.vlgmr.msra.gmra.mxu0 %v376_v22 }
 0x1f2   :  { %798 = vmatprep.mubr.bf16.mxu0 %v5057_v54 }
 0x1f9   :  { %799 = vmatmul.mubr.bf16.gmra.mxu0 %v377_v36 }
 0x291   :  { %v684_v53 = vpop.f32.mrf.mxu0  ;;  %v737_v55 = vpop.f32.mrf.mxu1 }
 0x292   :  { %v685_v62 = vadd.f32 %v684_v53, %v383_v56  ;;  %v738_v26 = vadd.f32 %v737_v55, %v391_v14  ;;  %v399_v53 = vrot.slane %v378_v50, %v398_v41 }
 0x293   :  { %v686_v57 = vpop.f32.mrf.mxu0  ;;  %v739_v8 = vpop.f32.mrf.mxu1 }
 0x294   :  { %v740_v59 = vadd.f32 %v739_v8, %v5319_v52  ;;  %v5325_v3 = vadd.f32 %v686_v57, %v387_v58 }
 0x295   :  { %v688_v60 = vpop.f32.mrf.mxu0  ;;  %v741_v61 = vpop.f32.mrf.mxu1 }
 0x296   :  { %v689_v63 = vadd.f32 %v688_v60, %v383_v56  ;;  %v742_v18 = vadd.f32 %v741_v61, %v391_v14 }
 0x297   :  { %v690_v1 = vpop.f32.mrf.mxu0  ;;  %v743_v2 = vpop.f32.mrf.mxu1 }
 0x298   :  { %v809_v4 = vpack.c.bf16 %v689_v63, %v685_v62  ;;  %v5327_v5 = vadd.f32 %v690_v1, %v387_v58  ;;  %v744_v6 = vadd.f32 %v743_v2, %v5319_v52  ;;  %v811_v31 = vpack.c.bf16 %v742_v18, %v738_v26  ;;  %v5362_v2 = vld [vmem:[%s5072_s9] sm:$0xff] }
 0x299   :  { %v694_v7 = vpop.f32.mrf.mxu0  ;;  %v747_v9 = vpop.f32.mrf.mxu1 }
 0x29a   :  { %v984_v10 = vpack.c.bf16 %v5327_v5, %v5325_v3  ;;  %v5332_v11 = vpack.c.bf16 %v744_v6, %v740_v59  ;;  %4153 = vmatprep.mubr.bf16.mxu1 %v809_v4  ;;  %v748_v19 = vadd.f32 %v747_v9, %v391_v14  ;;  %v695_v33 = vadd.f32 %v694_v7, %v383_v56  ;;  %v5365_v4 = vld [vmem:[%s5072_s9 + $0x10] sm:$0xff]  ;;  %v4500_v3 = vld [vmem:[#allocation6 + $0x8] sm:$0xff]   ;;  %v4501_v5 = vld [vmem:[#allocation6] sm:$0xff]  }
 0x29b   :  { %v696_v12 = vpop.f32.mrf.mxu0  ;;  %v749_v13 = vpop.f32.mrf.mxu1 }
 0x29c   :  { %v5336_v27 = vadd.f32 %v696_v12, %v387_v58  ;;  %v750_v63 = vadd.f32 %v749_v13, %v5319_v52  ;;  %v5369_v12 = vld [vmem:[%s5072_s9 + $0x8] sm:$0xff] }
 0x29d   :  { %v698_v16 = vpop.f32.mrf.mxu0  ;;  %v751_v17 = vpop.f32.mrf.mxu1 }
 0x29e   :  { %v752_v20 = vadd.f32 %v751_v17, %v391_v14  ;;  %v699_v28 = vadd.f32 %v698_v16, %v383_v56  ;;  %v5374_v14 = vld [vmem:[%s5072_s9 + $0x18] sm:$0xff] }
 0x29f   :  { %v700_v21 = vpop.f32.mrf.mxu0 }
 0x2a0   :  { %v812_v30 = vpack.c.bf16 %v752_v20, %v748_v19  ;;  %v5338_v22 = vadd.f32 %v700_v21, %v387_v58  ;;  %v810_v34 = vpack.c.bf16 %v699_v28, %v695_v33  ;;  %v753_v58 = vpop.f32.mrf.mxu1 }
 0x2a1   :  { %v754_v61 = vadd.f32 %v753_v58, %v5319_v52 }
 0x2a2   :  { %v985_v32 = vpack.c.bf16 %v5338_v22, %v5336_v27  ;;  %4149 = vmatprep.subr.bf16.mxu1 %v812_v30 }
 0x2a3   :  { %4150 = vmatpush3.bf16.xpose.msra.mxu1 %v812_v30  ;;  %v5358_v50 = vpack.c.bf16 %v754_v61, %v750_v63  ;;  %v4495_v61 = vld [vmem:[#allocation6 + $0x30] sm:$0xff]   ;;  %v4497_v63 = vld [vmem:[#allocation6 + $0x20] sm:$0xff]  }
 0x2a4   :  { %4151 = vmatprep.subr.bf16.mxu1 %v811_v31 }
 0x2ab   :  { %4152 = vmatpush3.bf16.xpose.msra.mxu1 %v811_v31 }
 0x2b1   :  { %v790_v36 = vpop.f32.mrf.mxu0 }
 0x2b2   :  { %4154 = vmatmul.mubr.bf16.vlgmr.msra.gmra.mxu1 %v810_v34  ;;  %v791_v59 = vadd.f32 %v790_v36, %v399_v53 }
 0x2b3   :  { %v792_v37 = vpop.f32.mrf.mxu0 }
 0x2b4   :  { %v793_v42 = vadd.f32 %v792_v37, %v5345_v38 }
 0x2b5   :  { %v794_v39 = vpop.f32.mrf.mxu0 }
 0x2b6   :  { %v795_v56 = vadd.f32 %v794_v39, %v399_v53 }
 0x2b7   :  { %v796_v40 = vpop.f32.mrf.mxu0 }
 0x2b8   :  { %v797_v43 = vadd.f32 %v796_v40, %v5345_v38  ;;  %v909_v62 = vpack.c.bf16 %v795_v56, %v791_v59 }
 0x2b9   :  { %v800_v44 = vpop.f32.mrf.mxu0 }
 0x2ba   :  { %v5350_v45 = vpack.c.bf16 %v797_v43, %v793_v42  ;;  %v801_v57 = vadd.f32 %v800_v44, %v399_v53 }
 0x2bb   :  { %v5352_v46 = vpop.f32.mrf.mxu0 }
 0x2bd   :  { %v804_v55 = vpop.f32.mrf.mxu0 }
 0x2be   :  { %v805_v8 = vadd.f32 %v804_v55, %v399_v53 }
 0x2c0   :  { %v910_v60 = vpack.c.bf16 %v805_v8, %v801_v57 }
 0x2c2   :  { %4157 = vmatprep.subr.bf16.mxu1 %v910_v60 }
 0x2c3   :  { %4158 = vmatpush3.bf16.msra.mxu1 %v910_v60  ;;  %v4494_v60 = vld [vmem:[#allocation6 + $0x38] sm:$0xff]  }
 0x2c4   :  { %4159 = vmatprep.subr.bf16.mxu1 %v909_v62  ;;  %4201 = vmatprep.subr.bf16.mxu0 %v4494_v60 }
 0x2c5   :  { %4202 = vmatpush3.bf16.msra.mxu0 %v4494_v60 }
 0x2c6   :  { %4203 = vmatprep.subr.bf16.mxu0 %v4495_v61 }
 0x2c7   :  { %4160 = vmatpush3.bf16.msra.mxu1 %v909_v62  ;;  %v4496_v62 = vld [vmem:[#allocation6 + $0x28] sm:$0xff]  }
 0x2c8   :  { %4165 = vmatprep.subr.bf16.mxu1 %v5358_v50 }
 0x2c9   :  { %4204 = vmatpush3.bf16.msra.mxu0 %v4495_v61 }
 0x2ca   :  { %4205 = vmatprep.subr.bf16.mxu0 %v4496_v62 }
 0x2cd   :  { %4206 = vmatpush3.bf16.msra.mxu0 %v4496_v62 }
 0x2ce   :  { %4207 = vmatprep.subr.bf16.mxu0 %v4497_v63 }
 0x2d1   :  { %4208 = vmatpush3.bf16.msra.mxu0 %v4497_v63 }
 0x372   :  { %v4155_v1 = vpop.f32.mrf.mxu1 }
 0x373   :  { %v856_v52 = vadd.f32 %v4155_v1, %v5365_v4  ;;  %v4498_v1 = vld [vmem:[#allocation6 + $0x18] sm:$0xff]  }
 0x374   :  { %v847_v6 = vpop.f32.mrf.mxu1  ;;  %4209 = vmatprep.subr.bf16.mxu0 %v4498_v1 }
 0x375   :  { %v848_v7 = vadd.f32 %v847_v6, %v5362_v2  ;;  %v869_v20 = vsel %vm862_vm1, %v856_v52, -inf  ;;  %v4499_v6 = vld [vmem:[#allocation6 + $0x10] sm:$0xff]   ;;  %4210 = vmatpush3.bf16.msra.mxu0 %v4498_v1 }
 0x376   :  { %v4156_v9 = vpop.f32.mrf.mxu1  ;;  %4211 = vmatprep.subr.bf16.mxu0 %v4499_v6 }
 0x377   :  { %v863_v13 = vsel %vm862_vm1, %v848_v7, -inf  ;;  %v859_v18 = vadd.f32 %v4156_v9, %v5374_v14 }
 0x378   :  { %v850_v16 = vpop.f32.mrf.mxu1  ;;  %864 = vmax.xlane.f32.xlu0 %v863_v13 }
 0x379   :  { %v851_v17 = vadd.f32 %v850_v16, %v5369_v12  ;;  %v872_v21 = vsel %vm862_vm1, %v859_v18, -inf  ;;  %4212 = vmatpush3.bf16.msra.mxu0 %v4499_v6 }
 0x37a   :  { %4213 = vmatprep.subr.bf16.mxu0 %v4500_v3 }
 0x37b   :  { %v866_v19 = vsel %vm862_vm1, %v851_v17, -inf }
 0x37c   :  { %867 = vmax.xlane.f32.xlu1 %v866_v19  ;;  %870 = vmax.xlane.f32.xlu0 %v869_v20 }
 0x37d   :  { %4214 = vmatpush3.bf16.msra.mxu0 %v4500_v3 }
 0x37e   :  { %4215 = vmatprep.subr.bf16.mxu0 %v4501_v5 }
 0x380   :  { %873 = vmax.xlane.f32.xlu1 %v872_v21 }
 0x381   :  { %4216 = vmatpush3.bf16.msra.mxu0 %v4501_v5 }
 0x401   :  { %v865_v26 = vpop.xlane.xlu0 %864 }
 0x402   :  { %v875_v30 = vsub.f32 %v848_v7, %v865_v26 }
 0x404   :  { %v879_v31 = vmul.f32 1.442695, %v875_v30 }
 0x405   :  { %v868_v28 = vpop.xlane.xlu1 %867  ;;  %v871_v33 = vpop.xlane.xlu0 %870 }
 0x406   :  { %4702 = vpow2.f32 %v879_v31  ;;  %v876_v34 = vsub.f32 %v851_v17, %v868_v28  ;;  %v877_v36 = vsub.f32 %v856_v52, %v871_v33  ;;  %v806_v33 = vpop.f32.mrf.mxu0 }
 0x408   :  { %v881_v37 = vmul.f32 1.442695, %v876_v34  ;;  %v883_v39 = vmul.f32 1.442695, %v877_v36  ;;  %v807_v34 = vadd.f32 %v806_v33, %v5345_v38  ;;  %v803_v36 = vadd.f32 %v5352_v46, %v5345_v38 }
 0x409   :  { %v874_v40 = vpop.xlane.xlu1 %873 }
 0x40a   :  { %4704 = vpow2.f32 %v881_v37  ;;  %v878_v42 = vsub.f32 %v859_v18, %v874_v40  ;;  %v1084_v37 = vpack.c.bf16 %v807_v34, %v803_v36 }
 0x40b   :  { %4706 = vpow2.f32 %v883_v39 }
 0x40c   :  { %v885_v43 = vmul.f32 1.442695, %v878_v42 }
 0x40e   :  { %4708 = vpow2.f32 %v885_v43 }
 0x413   :  { %v4703_v44 = vpop.eup %4702 }
 0x414   :  { %v887_v53 = vsel %vm862_vm1, %v4703_v44, 0.0 }
 0x415   :  { %888 = vadd.xlane.f32.xlu0 %v887_v53 }
 0x417   :  { %v4705_v55 = vpop.eup %4704 }
 0x418   :  { %v4707_v56 = vpop.eup %4706  ;;  %v890_v57 = vsel %vm862_vm1, %v4705_v55, 0.0 }
 0x419   :  { %891 = vadd.xlane.f32.xlu1 %v890_v57  ;;  %v893_v8 = vsel %vm862_vm1, %v4707_v56, 0.0 }
 0x41a   :  { %894 = vadd.xlane.f32.xlu0 %v893_v8 }
 0x41b   :  { %v4709_v58 = vpop.eup %4708 }
 0x41c   :  { %v896_v59 = vsel %vm862_vm1, %v4709_v58, 0.0 }
 0x41d   :  { %897 = vadd.xlane.f32.xlu1 %v896_v59 }
 0x49e   :  { %v889_v7 = vpop.xlane.xlu0 %888 }
 0x49f   :  { %4710 = vrcp.f32 %v889_v7 }
 0x4a2   :  { %v892_v9 = vpop.xlane.xlu1 %891 }
 0x4a3   :  { %4712 = vrcp.f32 %v892_v9  ;;  %v895_v52 = vpop.xlane.xlu0 %894 }
 0x4a4   :  { %4714 = vrcp.f32 %v895_v52 }
 0x4a6   :  { %v898_v13 = vpop.xlane.xlu1 %897 }
 0x4a7   :  { %4716 = vrcp.f32 %v898_v13 }
 0x4ac   :  { %v4711_v16 = vpop.eup %4710 }
 0x4ad   :  { %v903_v18 = vmul.f32 %v4711_v16, %v4703_v44 }
 0x4b0   :  { %v4713_v17 = vpop.eup %4712 }
 0x4b1   :  { %v904_v19 = vmul.f32 %v4713_v17, %v4705_v55  ;;  %v4715_v20 = vpop.eup %4714 }
 0x4b2   :  { %v905_v30 = vmul.f32 %v4715_v20, %v4707_v56 }
 0x4b3   :  { %v907_v21 = vpack.c.bf16 %v904_v19, %v903_v18  ;;  %v4502_v19 = vld [vmem:[#allocation6 + $0x78] sm:$0xff]  }
 0x4b4   :  { %v4717_v26 = vpop.eup %4716 }
 0x4b5   :  { %4161 = vmatprep.mubr.msk.bf16.mxu1 %vm862_vm1, %v907_v21  ;;  %v906_v31 = vmul.f32 %v4717_v26, %v4709_v58 }
 0x4b7   :  { %v908_v28 = vpack.c.bf16 %v906_v31, %v905_v30 }
 0x4b9   :  { %4162 = vmatmul.mubr.msk.bf16.vlgmr.msra.gmra.mxu1 %vm862_vm1, %v908_v28 }
 0x4ba   :  { %4166 = vmatpush3.bf16.xpose.msra.mxu1 %v5358_v50  ;;  %4169 = vmatprep.mubr.bf16.mxu1 %v984_v10 }
 0x4bb   :  { %4167 = vmatprep.subr.bf16.mxu1 %v5332_v11 }
 0x4c2   :  { %4168 = vmatpush3.bf16.xpose.msra.mxu1 %v5332_v11 }
 0x4c3   :  { %4173 = vmatprep.subr.bf16.mxu1 %v1084_v37 }
 0x4c9   :  { %4170 = vmatmul.mubr.bf16.vlgmr.msra.gmra.mxu1 %v985_v32 }
 0x4ca   :  { %4174 = vmatpush3.bf16.msra.mxu1 %v1084_v37 }
 0x4cb   :  { %4175 = vmatprep.subr.bf16.mxu1 %v5350_v45 }
 0x4ce   :  { %4176 = vmatpush3.bf16.msra.mxu1 %v5350_v45 }
 0x4cf   :  { %4181 = vmatprep.subr.bf16.mxu1 %v4502_v19 }
 0x579   :  { %v4163_v10 = vpop.f32.mrf.mxu1 }
 0x57b   :  { %v951_v38 = vpop.f32.mrf.mxu1 }
 0x57d   :  { %v4164_v46 = vpop.f32.mrf.mxu1 }
 0x57e   :  { %v967_v39 = vpack.c.bf16 %v4164_v46, %v4163_v10  ;;  %v4503_v46 = vld [vmem:[#allocation6 + $0x70] sm:$0xff]  }
 0x57f   :  { %v954_v11 = vpop.f32.mrf.mxu1 }
 0x580   :  { %v966_v50 = vpack.c.bf16 %v954_v11, %v951_v38  ;;  %v4504_v11 = vld [vmem:[#allocation6 + $0x68] sm:$0xff]  }
 0x582   :  { %4217 = vmatprep.mubr.bf16.mxu0 %v966_v50  ;;  %v4505_v50 = vld [vmem:[#allocation6 + $0x60] sm:$0xff]  }
 0x583   :  { %4218 = vmatmul.mubr.bf16.vlgmr.msra.gmra.mxu0 %v967_v39  ;;  %v4506_v39 = vld [vmem:[#allocation6 + $0x58] sm:$0xff]  }
 0x589   :  { %v4171_v27 = vpop.f32.mrf.mxu1 }
 0x58a   :  { %v1031_v45 = vadd.f32 %v4171_v27, %v5365_v4  ;;  %v4507_v27 = vld [vmem:[#allocation6 + $0x50] sm:$0xff]  }
 0x58b   :  { %v1022_v22 = vpop.f32.mrf.mxu1 }
 0x58c   :  { %v1023_v32 = vadd.f32 %v1022_v22, %v5362_v2  ;;  %v1043_v56 = vsel %vm862_vm1, %v1031_v45, -inf  ;;  %v4508_v22 = vld [vmem:[#allocation6 + $0x48] sm:$0xff]  }
 0x58d   :  { %v4172_v40 = vpop.f32.mrf.mxu1 }
 0x58e   :  { %v1037_v42 = vsel %vm862_vm1, %v1023_v32, -inf  ;;  %v1034_v53 = vadd.f32 %v4172_v40, %v5374_v14 }
 0x58f   :  { %v1025_v43 = vpop.f32.mrf.mxu1  ;;  %1038 = vmax.xlane.f32.xlu0 %v1037_v42 }
 0x590   :  { %v1026_v44 = vadd.f32 %v1025_v43, %v5369_v12  ;;  %v1046_v57 = vsel %vm862_vm1, %v1034_v53, -inf }
 0x592   :  { %v1040_v55 = vsel %vm862_vm1, %v1026_v44, -inf }
 0x593   :  { %1041 = vmax.xlane.f32.xlu1 %v1040_v55  ;;  %1044 = vmax.xlane.f32.xlu0 %v1043_v56 }
 0x597   :  { %1047 = vmax.xlane.f32.xlu1 %v1046_v57 }
 0x618   :  { %v1039_v2 = vpop.xlane.xlu0 %1038 }
 0x619   :  { %v1049_v8 = vsub.f32 %v1023_v32, %v1039_v2  ;;  %v4509_v32 = vld [vmem:[#allocation6 + $0x40] sm:$0xff]  }
 0x61b   :  { %v1053_v4 = vmul.f32 1.442695, %v1049_v8 }
 0x61c   :  { %v1042_v58 = vpop.xlane.xlu1 %1041  ;;  %v1045_v59 = vpop.xlane.xlu0 %1044 }
 0x61d   :  { %4718 = vpow2.f32 %v1053_v4  ;;  %v1050_v60 = vsub.f32 %v1026_v44, %v1042_v58  ;;  %v1051_v61 = vsub.f32 %v1031_v45, %v1045_v59  ;;  %v3852_v59 = vld [vmem:[%s5102_s3] ss:$0 sm:$0xff]  ;;  %s5729_s3 = sld [smem:[#allocation27_spill]] }
 0x61f   :  { %v1055_v12 = vmul.f32 1.442695, %v1050_v60  ;;  %v1057_v62 = vmul.f32 1.442695, %v1051_v61 }
 0x620   :  { %v1048_v14 = vpop.xlane.xlu1 %1047 }
 0x621   :  { %4720 = vpow2.f32 %v1055_v12  ;;  %v1052_v63 = vsub.f32 %v1034_v53, %v1048_v14 }
 0x622   :  { %4722 = vpow2.f32 %v1057_v62 }
 0x623   :  { %v1059_v1 = vmul.f32 1.442695, %v1052_v63 }
 0x625   :  { %4724 = vpow2.f32 %v1059_v1 }
 0x62a   :  { %v4719_v6 = vpop.eup %4718 }
 0x62b   :  { %v1061_v7 = vsel %vm862_vm1, %v4719_v6, 0.0 }
 0x62c   :  { %1062 = vadd.xlane.f32.xlu0 %v1061_v7 }
 0x62e   :  { %v4721_v9 = vpop.eup %4720 }
 0x62f   :  { %v4723_v52 = vpop.eup %4722  ;;  %v1064_v13 = vsel %vm862_vm1, %v4721_v9, 0.0 }
 0x630   :  { %1065 = vadd.xlane.f32.xlu1 %v1064_v13  ;;  %v1067_v16 = vsel %vm862_vm1, %v4723_v52, 0.0 }
 0x631   :  { %1068 = vadd.xlane.f32.xlu0 %v1067_v16 }
 0x632   :  { %v4725_v17 = vpop.eup %4724 }
 0x633   :  { %v1070_v18 = vsel %vm862_vm1, %v4725_v17, 0.0 }
 0x634   :  { %1071 = vadd.xlane.f32.xlu1 %v1070_v18 }
 0x643   :  { %v4219_v55 = vpop.f32.mrf.mxu0 }
 0x645   :  { %v1337_v56 = vpop.f32.mrf.mxu0 }
 0x647   :  { %v4220_v2 = vpop.f32.mrf.mxu0 }
 0x649   :  { %v1340_v12 = vpop.f32.mrf.mxu0 }
 0x6b5   :  { %v1063_v20 = vpop.xlane.xlu0 %1062 }
 0x6b6   :  { %4726 = vrcp.f32 %v1063_v20 }
 0x6b9   :  { %v1066_v21 = vpop.xlane.xlu1 %1065 }
 0x6ba   :  { %4728 = vrcp.f32 %v1066_v21  ;;  %v1069_v26 = vpop.xlane.xlu0 %1068 }
 0x6bb   :  { %4730 = vrcp.f32 %v1069_v26 }
 0x6bd   :  { %v1072_v30 = vpop.xlane.xlu1 %1071 }
 0x6be   :  { %4732 = vrcp.f32 %v1072_v30 }
 0x6c3   :  { %v4727_v31 = vpop.eup %4726 }
 0x6c4   :  { %v1077_v33 = vmul.f32 %v4727_v31, %v4719_v6 }
 0x6c7   :  { %v4729_v28 = vpop.eup %4728 }
 0x6c8   :  { %v1078_v34 = vmul.f32 %v4729_v28, %v4721_v9  ;;  %v4731_v36 = vpop.eup %4730 }
 0x6c9   :  { %v1079_v5 = vmul.f32 %v4731_v36, %v4723_v52 }
 0x6ca   :  { %v1081_v37 = vpack.c.bf16 %v1078_v34, %v1077_v33 }
 0x6cb   :  { %v4733_v3 = vpop.eup %4732 }
 0x6cc   :  { %4177 = vmatprep.mubr.msk.bf16.mxu1 %vm862_vm1, %v1081_v37  ;;  %v1080_v10 = vmul.f32 %v4733_v3, %v4725_v17 }
 0x6ce   :  { %v1082_v38 = vpack.c.bf16 %v1080_v10, %v1079_v5 }
 0x6d0   :  { %4178 = vmatmul.mubr.msk.bf16.vlgmr.msra.gmra.mxu1 %vm862_vm1, %v1082_v38  ;;  %v4510_v38 = vld [vmem:[#allocation8 + $0x38] sm:$0xff]  }
 0x6d1   :  { %4182 = vmatpush3.bf16.msra.mxu1 %v4502_v19 }
 0x6d2   :  { %4183 = vmatprep.subr.bf16.mxu1 %v4503_v46 }
 0x6d5   :  { %4184 = vmatpush3.bf16.msra.mxu1 %v4503_v46  ;;  %v4511_v46 = vld [vmem:[#allocation8 + $0x30] sm:$0xff]  }
 0x6d6   :  { %4185 = vmatprep.subr.bf16.mxu1 %v4504_v11 }
 0x6d9   :  { %4186 = vmatpush3.bf16.msra.mxu1 %v4504_v11  ;;  %v4512_v11 = vld [vmem:[#allocation8 + $0x28] sm:$0xff]  }
 0x6da   :  { %4187 = vmatprep.subr.bf16.mxu1 %v4505_v50 }
 0x6dd   :  { %4188 = vmatpush3.bf16.msra.mxu1 %v4505_v50  ;;  %v4513_v50 = vld [vmem:[#allocation8 + $0x20] sm:$0xff]  }
 0x6de   :  { %4189 = vmatprep.subr.bf16.mxu1 %v4506_v39 }
 0x6e1   :  { %4190 = vmatpush3.bf16.msra.mxu1 %v4506_v39  ;;  %v4514_v39 = vld [vmem:[#allocation8 + $0x18] sm:$0xff]  }
 0x6e2   :  { %4191 = vmatprep.subr.bf16.mxu1 %v4507_v27 }
 0x6e5   :  { %4192 = vmatpush3.bf16.msra.mxu1 %v4507_v27  ;;  %v4515_v27 = vld [vmem:[#allocation8 + $0x10] sm:$0xff]  }
 0x6e6   :  { %4193 = vmatprep.subr.bf16.mxu1 %v4508_v22 }
 0x6e9   :  { %4194 = vmatpush3.bf16.msra.mxu1 %v4508_v22  ;;  %v4516_v22 = vld [vmem:[#allocation8 + $0x8] sm:$0xff]  }
 0x6ea   :  { %4195 = vmatprep.subr.bf16.mxu1 %v4509_v32 }
 0x6ed   :  { %4196 = vmatpush3.bf16.msra.mxu1 %v4509_v32  ;;  %v4517_v32 = vld [vmem:[#allocation8] sm:$0xff]  }
 0x6ee   :  { %4221 = vmatprep.subr.bf16.mxu1 %v4510_v38 }
 0x790   :  { %v4179_v40 = vpop.f32.mrf.mxu1 }
 0x792   :  { %v1125_v45 = vpop.f32.mrf.mxu1 }
 0x794   :  { %v4180_v42 = vpop.f32.mrf.mxu1 }
 0x795   :  { %v1141_v53 = vpack.c.bf16 %v4180_v42, %v4179_v40 }
 0x796   :  { %v1128_v43 = vpop.f32.mrf.mxu1 }
 0x797   :  { %v1140_v44 = vpack.c.bf16 %v1128_v43, %v1125_v45 }
 0x799   :  { %4197 = vmatprep.mubr.bf16.mxu1 %v1140_v44 }
 0x79a   :  { %4198 = vmatmul.mubr.bf16.vlgmr.msra.gmra.mxu1 %v1141_v53 }
 0x79b   :  { %4222 = vmatpush3.bf16.msra.mxu1 %v4510_v38 }
 0x79c   :  { %4223 = vmatprep.subr.bf16.mxu1 %v4511_v46 }
 0x79f   :  { %4224 = vmatpush3.bf16.msra.mxu1 %v4511_v46 }
 0x7a0   :  { %4225 = vmatprep.subr.bf16.mxu1 %v4512_v11 }
 0x7a3   :  { %4226 = vmatpush3.bf16.msra.mxu1 %v4512_v11 }
 0x7a4   :  { %4227 = vmatprep.subr.bf16.mxu1 %v4513_v50 }
 0x7a7   :  { %4228 = vmatpush3.bf16.msra.mxu1 %v4513_v50 }
 0x7a8   :  { %4229 = vmatprep.subr.bf16.mxu1 %v4514_v39 }
 0x7ab   :  { %4230 = vmatpush3.bf16.msra.mxu1 %v4514_v39 }
 0x7ac   :  { %4231 = vmatprep.subr.bf16.mxu1 %v4515_v27 }
 0x7af   :  { %4232 = vmatpush3.bf16.msra.mxu1 %v4515_v27 }
 0x7b0   :  { %4233 = vmatprep.subr.bf16.mxu1 %v4516_v22 }
 0x7b3   :  { %4234 = vmatpush3.bf16.msra.mxu1 %v4516_v22 }
 0x7b4   :  { %4235 = vmatprep.subr.bf16.mxu1 %v4517_v32 }
 0x7b7   :  { %4236 = vmatpush3.bf16.msra.mxu1 %v4517_v32 }
 0x85a   :  { %v4199_v57 = vpop.f32.mrf.mxu1 }
 0x85b   :  { %v1346_v4 = vadd.f32 %v4219_v55, %v4199_v57 }
 0x85c   :  { %v1240_v8 = vpop.f32.mrf.mxu1 }
 0x85d   :  { %v1338_v58 = vadd.f32 %v1337_v56, %v1240_v8  ;;  %v1361_v14 = vadd.f32 %v3852_v59, %v1346_v4 }
 0x85e   :  { %v4200_v60 = vpop.f32.mrf.mxu1 }
 0x85f   :  { %v1359_v61 = vadd.f32 %v3852_v59, %v1338_v58  ;;  %v1349_v63 = vadd.f32 %v4220_v2, %v4200_v60  ;;  %v1365_v13 = vadd.f32 %v1361_v14, %v5300_v29  ;;  %v3853_v60 = vld [vmem:[%s5107_s8] ss:$0 sm:$0xff]  ;;  %s5730_s8 = sld [smem:[#allocation28_spill]] }
 0x860   :  { %v1243_v62 = vpop.f32.mrf.mxu1 }
 0x861   :  { %v1341_v1 = vadd.f32 %v1340_v12, %v1243_v62  ;;  %v1363_v6 = vadd.f32 %v1359_v61, %v5288_v24  ;;  %v1362_v9 = vadd.f32 %v3852_v59, %v1349_v63  ;;  %v3854_v63 = vld [vmem:[%s5725_s5] ss:$0 sm:$0xff] }
 0x863   :  { %v1360_v7 = vadd.f32 %v3852_v59, %v1341_v1  ;;  %1369 = vadd.xlane.f32.xlu0 %v1363_v6  ;;  %v1366_v16 = vadd.f32 %v1362_v9, %v5298_v23 }
 0x865   :  { %v1364_v52 = vadd.f32 %v1360_v7, %v5290_v25 }
 0x867   :  { %1371 = vadd.xlane.f32.xlu1 %v1364_v52  ;;  %1373 = vadd.xlane.f32.xlu0 %v1365_v13 }
 0x86b   :  { %1375 = vadd.xlane.f32.xlu1 %v1366_v16 }
 0x8ec   :  { %v1370_v17 = vpop.xlane.xlu0 %1369 }
 0x8ed   :  { %v1377_v18 = vmul.f32 0.015625, %v1370_v17 }
 0x8ef   :  { %v1381_v19 = vsub.f32 %v1363_v6, %v1377_v18 }
 0x8f0   :  { %v1372_v20 = vpop.xlane.xlu1 %1371  ;;  %v1374_v21 = vpop.xlane.xlu0 %1373 }
 0x8f1   :  { %v1378_v26 = vmul.f32 0.015625, %v1372_v20  ;;  %v1379_v30 = vmul.f32 0.015625, %v1374_v21  ;;  %v1385_v24 = vmul.f32 %v5260_v15, %v1381_v19 }
 0x8f3   :  { %v1382_v31 = vsub.f32 %v1364_v52, %v1378_v26  ;;  %v1383_v28 = vsub.f32 %v1365_v13, %v1379_v30  ;;  %v1389_v33 = vmul.f32 %v1385_v24, %v1385_v24  ;;  %v4518_v26 = vld [vmem:[#allocation9 + $0x38] sm:$0xff]   ;;  %v4519_v30 = vld [vmem:[#allocation9 + $0x30] sm:$0xff]  }
 0x8f4   :  { %v1376_v25 = vpop.xlane.xlu1 %1375  ;;  %4241 = vmatprep.subr.bf16.mxu0 %v4518_v26 }
 0x8f5   :  { %v1380_v34 = vmul.f32 0.015625, %v1376_v25  ;;  %1393 = vadd.xlane.f32.xlu0 %v1389_v33  ;;  %v1386_v29 = vmul.f32 %v5260_v15, %v1382_v31  ;;  %v1387_v23 = vmul.f32 %v5260_v15, %v1383_v28  ;;  %4242 = vmatpush3.bf16.msra.mxu0 %v4518_v26  ;;  %v4521_v31 = vld [vmem:[#allocation9 + $0x20] sm:$0xff]   ;;  %v4522_v28 = vld [vmem:[#allocation9 + $0x18] sm:$0xff]   ;;  %v4523_v33 = vld [vmem:[#allocation9 + $0x10] sm:$0xff]  }
 0x8f6   :  { %4243 = vmatprep.subr.bf16.mxu0 %v4519_v30  ;;  %v4524_v25 = vld [vmem:[#allocation9 + $0x8] sm:$0xff]  }
 0x8f7   :  { %v1384_v36 = vsub.f32 %v1366_v16, %v1380_v34  ;;  %v1390_v37 = vmul.f32 %v1386_v29, %v1386_v29  ;;  %v1391_v3 = vmul.f32 %v1387_v23, %v1387_v23  ;;  %v4525_v34 = vld [vmem:[#allocation9] sm:$0xff]  }
 0x8f9   :  { %1395 = vadd.xlane.f32.xlu1 %v1390_v37  ;;  %1397 = vadd.xlane.f32.xlu0 %v1391_v3  ;;  %v1388_v5 = vmul.f32 %v5260_v15, %v1384_v36 }
 0x8fa   :  { %4244 = vmatpush3.bf16.msra.mxu0 %v4519_v30 }
 0x8fb   :  { %v1392_v10 = vmul.f32 %v1388_v5, %v1388_v5 }
 0x8fd   :  { %1399 = vadd.xlane.f32.xlu1 %v1392_v10 }
 0x97e   :  { %v1394_v40 = vpop.xlane.xlu0 %1393 }
 0x97f   :  { %v1401_v45 = vmul.f32 0.015625, %v1394_v40 }
 0x981   :  { %v1405_v42 = vadd.f32 1e-12, %v1401_v45 }
 0x982   :  { %v1396_v43 = vpop.xlane.xlu1 %1395  ;;  %v1398_v44 = vpop.xlane.xlu0 %1397 }
 0x983   :  { %4734 = vrsqrt.f32 %v1405_v42  ;;  %v1402_v53 = vmul.f32 0.015625, %v1396_v43  ;;  %v1403_v55 = vmul.f32 0.015625, %v1398_v44 }
 0x985   :  { %v1406_v56 = vadd.f32 1e-12, %v1402_v53  ;;  %v1407_v57 = vadd.f32 1e-12, %v1403_v55 }
 0x986   :  { %v1400_v2 = vpop.xlane.xlu1 %1399 }
 0x987   :  { %4736 = vrsqrt.f32 %v1406_v56  ;;  %v1404_v8 = vmul.f32 0.015625, %v1400_v2 }
 0x988   :  { %4738 = vrsqrt.f32 %v1407_v57 }
 0x989   :  { %v1408_v4 = vadd.f32 1e-12, %v1404_v8 }
 0x98b   :  { %4740 = vrsqrt.f32 %v1408_v4 }
 0x990   :  { %v4735_v58 = vpop.eup %4734 }
 0x991   :  { %v1413_v59 = vmul.f32 %v4735_v58, %v1385_v24  ;;  %v4520_v24 = vld [vmem:[#allocation9 + $0x28] sm:$0xff]  }
 0x992   :  { %4245 = vmatprep.subr.bf16.mxu0 %v4520_v24 }
 0x993   :  { %v1423_v14 = vmul.f32 %v3853_v60, %v1413_v59  ;;  %4246 = vmatpush3.bf16.msra.mxu0 %v4520_v24 }
 0x994   :  { %v4737_v61 = vpop.eup %4736  ;;  %4247 = vmatprep.subr.bf16.mxu0 %v4521_v31 }
 0x995   :  { %v4739_v12 = vpop.eup %4738  ;;  %v1414_v62 = vmul.f32 %v4737_v61, %v1386_v29  ;;  %v5426_v9 = vadd.f32 %v3854_v63, %v1423_v14  ;;  %v3855_v29 = vld [vmem:[%s5726_s13] ss:$0 sm:$0xff] }
 0x996   :  { %v1415_v1 = vmul.f32 %v4739_v12, %v1387_v23 }
 0x997   :  { %v1424_v6 = vmul.f32 %v3853_v60, %v1414_v62  ;;  %4248 = vmatpush3.bf16.msra.mxu0 %v4521_v31 }
 0x998   :  { %v4741_v7 = vpop.eup %4740  ;;  %v1425_v16 = vmul.f32 %v3853_v60, %v1415_v1  ;;  %4249 = vmatprep.subr.bf16.mxu0 %v4522_v28 }
 0x999   :  { %v5428_v52 = vadd.f32 %v3854_v63, %v1424_v6  ;;  %v1416_v13 = vmul.f32 %v4741_v7, %v1388_v5 }
 0x99a   :  { %v5432_v19 = vadd.f32 %v3854_v63, %v1425_v16 }
 0x99b   :  { %v1453_v17 = vpack.c.bf16 %v5428_v52, %v5426_v9  ;;  %v1426_v18 = vmul.f32 %v3853_v60, %v1416_v13  ;;  %4250 = vmatpush3.bf16.msra.mxu0 %v4522_v28 }
 0x99c   :  { %4251 = vmatprep.subr.bf16.mxu0 %v4523_v33 }
 0x99d   :  { %4237 = vmatprep.mubr.bf16.mxu1 %v1453_v17  ;;  %v5434_v20 = vadd.f32 %v3854_v63, %v1426_v18 }
 0x99f   :  { %v1454_v21 = vpack.c.bf16 %v5434_v20, %v5432_v19  ;;  %4252 = vmatpush3.bf16.msra.mxu0 %v4523_v33  ;;  %v3864_v33 = vld [vmem:[%s5727_s17] ss:$0 sm:$0xff] }
 0x9a0   :  { %4253 = vmatprep.subr.bf16.mxu0 %v4524_v25 }
 0x9a1   :  { %4238 = vmatmul.mubr.bf16.vlgmr.msra.gmra.mxu1 %v1454_v21 }
 0x9a2   :  { %2145 = vmatprep.mubr.bf16.mxu1 %v5057_v54 }
 0x9a3   :  { %4254 = vmatpush3.bf16.msra.mxu0 %v4524_v25 }
 0x9a4   :  { %4255 = vmatprep.subr.bf16.mxu0 %v4525_v34 }
 0x9a7   :  { %4256 = vmatpush3.bf16.msra.mxu0 %v4525_v34 }
 0xa61   :  { %v4239_v23 = vpop.f32.mrf.mxu1 }
 0xa62   :  { %v1553_v36 = vadd.f32 %v4239_v23, %v3855_v29 }
 0xa63   :  { %v1544_v37 = vpop.f32.mrf.mxu1 }
 0xa64   :  { %v1561_v3 = vmul.f32 %v1553_v36, %v1553_v36  ;;  %v1545_v5 = vadd.f32 %v3855_v29, %v1544_v37 }
 0xa65   :  { %v4240_v10 = vpop.f32.mrf.mxu1 }
 0xa66   :  { %v1565_v38 = vmul.f32 %v1561_v3, %v1553_v36  ;;  %v1559_v46 = vmul.f32 %v1545_v5, %v1545_v5  ;;  %v1556_v11 = vadd.f32 %v4240_v10, %v3855_v29 }
 0xa67   :  { %v1547_v50 = vpop.f32.mrf.mxu1 }
 0xa68   :  { %v1569_v39 = vmul.f32 0.044715, %v1565_v38  ;;  %v1563_v27 = vmul.f32 %v1559_v46, %v1545_v5  ;;  %v1562_v22 = vmul.f32 %v1556_v11, %v1556_v11  ;;  %v1548_v32 = vadd.f32 %v3855_v29, %v1547_v50  ;;  %v4528_v50 = vld [vmem:[%s5728_s25 + $0x154] ss:$24 sps:$4 sm:$0xff]  }
 0xa69   :  { %2113 = vmatprep.subr.bf16.mxu1 %v4528_v50 }
 0xa6a   :  { %v1573_v40 = vadd.f32 %v1569_v39, %v1553_v36  ;;  %v1567_v45 = vmul.f32 0.044715, %v1563_v27  ;;  %v1566_v42 = vmul.f32 %v1562_v22, %v1556_v11  ;;  %v1560_v43 = vmul.f32 %v1548_v32, %v1548_v32  ;;  %v4529_v39 = vld [vmem:[%s5728_s25 + $0x158] ss:$24 sps:$4 sm:$0xff]   ;;  %v4531_v27 = vld [vmem:[%s5728_s25 + $0x15c] ss:$24 sps:$4 sm:$0xff]  }
 0xa6b   :  { %2166 = vmatprep.subr.bf16.mxu0 %v4531_v27 }
 0xa6c   :  { %v1577_v44 = vmul.f32 0.7978846, %v1573_v40  ;;  %v1571_v53 = vadd.f32 %v1567_v45, %v1545_v5  ;;  %v1570_v55 = vmul.f32 0.044715, %v1566_v42  ;;  %v1564_v56 = vmul.f32 %v1560_v43, %v1548_v32 }
 0xa6e   :  { %v1575_v57 = vmul.f32 0.7978846, %v1571_v53  ;;  %v1574_v2 = vadd.f32 %v1570_v55, %v1556_v11  ;;  %v1568_v8 = vmul.f32 0.044715, %v1564_v56  ;;  %4742 = vtanh.f32 %v1577_v44 }
 0xa70   :  { %4744 = vtanh.f32 %v1575_v57  ;;  %v1578_v4 = vmul.f32 0.7978846, %v1574_v2  ;;  %v1572_v58 = vadd.f32 %v1568_v8, %v1548_v32 }
 0xa72   :  { %4746 = vtanh.f32 %v1578_v4  ;;  %v1576_v59 = vmul.f32 0.7978846, %v1572_v58 }
 0xa74   :  { %4748 = vtanh.f32 %v1576_v59 }
 0xa7b   :  { %v4743_v60 = vpop.eup %4742 }
 0xa7c   :  { %v1585_v14 = vadd.f32 1.0, %v4743_v60  ;;  %v4534_v60 = vld [vmem:[%s5728_s25 + $0x124] ss:$24 sps:$4 sm:$0xff]  }
 0xa7d   :  { %v4745_v61 = vpop.eup %4744 }
 0xa7e   :  { %v1583_v12 = vadd.f32 1.0, %v4745_v61  ;;  %v1589_v16 = vmul.f32 0.5, %v1585_v14  ;;  %v4532_v61 = vld [vmem:[%s5728_s25 + $0x120] ss:$24 sps:$4 sm:$0xff]   ;;  %v4540_v14 = vld [vmem:[%s5728_s25 + $0xf4] ss:$24 sps:$4 sm:$0xff]  }
 0xa7f   :  { %v4747_v62 = vpop.eup %4746 }
 0xa80   :  { %v1586_v63 = vadd.f32 1.0, %v4747_v62  ;;  %v1587_v13 = vmul.f32 0.5, %v1583_v12  ;;  %v1593_v30 = vmul.f32 %v1589_v16, %v1553_v36  ;;  %v4537_v12 = vld [vmem:[%s5728_s25 + $0x12c] ss:$24 sps:$4 sm:$0xff]   ;;  %v4535_v62 = vld [vmem:[%s5728_s25 + $0x128] ss:$24 sps:$4 sm:$0xff]  }
 0xa81   :  { %v4749_v1 = vpop.eup %4748  ;;  %v4549_v16 = vld [vmem:[%s5728_s25 + $0xcc] ss:$24 sps:$4 sm:$0xff]  }
 0xa82   :  { %v1590_v6 = vmul.f32 0.5, %v1586_v63  ;;  %v1584_v7 = vadd.f32 1.0, %v4749_v1  ;;  %v1591_v21 = vmul.f32 %v1587_v13, %v1545_v5  ;;  %v4538_v63 = vld [vmem:[%s5728_s25 + $0xf0] ss:$24 sps:$4 sm:$0xff]   ;;  %v4543_v1 = vld [vmem:[%s5728_s25 + $0xfc] ss:$24 sps:$4 sm:$0xff]  }
 0xa83   :  { %v4544_v13 = vld [vmem:[%s5728_s25 + $0xc0] ss:$24 sps:$4 sm:$0xff]  }
 0xa84   :  { %v1588_v17 = vmul.f32 0.5, %v1584_v7  ;;  %v1594_v18 = vmul.f32 %v1590_v6, %v1556_v11  ;;  %v4526_v11 = vld [vmem:[%s5728_s25 + $0x150] ss:$24 sps:$4 sm:$0xff]   ;;  %v4546_v7 = vld [vmem:[%s5728_s25 + $0xc4] ss:$24 sps:$4 sm:$0xff]  }
 0xa85   :  { %2114 = vmatpush1.bf16.msra.mxu1 %v4526_v11  ;;  %v4541_v6 = vld [vmem:[%s5728_s25 + $0xf8] ss:$24 sps:$4 sm:$0xff]  }
 0xa86   :  { %v1592_v26 = vmul.f32 %v1588_v17, %v1548_v32  ;;  %v1612_v31 = vpack.c.bf16 %v1594_v18, %v1593_v30  ;;  %2115 = vmatprep.subr.bf16.mxu1 %v4534_v60  ;;  %v4547_v17 = vld [vmem:[%s5728_s25 + $0xc8] ss:$24 sps:$4 sm:$0xff]   ;;  %v4555_v30 = vld [vmem:[%s5728_s25 + $0x9c] ss:$24 sps:$4 sm:$0xff]  }
 0xa87   :  { %v4550_v18 = vld [vmem:[%s5728_s25 + $0x90] ss:$24 sps:$4 sm:$0xff]  }
 0xa88   :  { %v1611_v24 = vpack.c.bf16 %v1592_v26, %v1591_v21  ;;  %v4552_v21 = vld [vmem:[%s5728_s25 + $0x94] ss:$24 sps:$4 sm:$0xff]   ;;  %v4553_v26 = vld [vmem:[%s5728_s25 + $0x98] ss:$24 sps:$4 sm:$0xff]  }
 0xa89   :  { %2116 = vmatpush1.bf16.msra.mxu1 %v4532_v61 }
 0xa8a   :  { %4257 = vmatprep.mubr.bf16.mxu0 %v1611_v24  ;;  %2117 = vmatprep.subr.bf16.mxu1 %v4540_v14  ;;  %v4558_v24 = vld [vmem:[%s5728_s25 + $0x64] ss:$24 sps:$4 sm:$0xff]   ;;  %v4579_v14 = vld [vmem:[%s5728_s25 + $0x134] ss:$24 sps:$4 sm:$0xff]  }
 0xa8b   :  { %4258 = vmatmul.mubr.bf16.vlgmr.msra.gmra.mxu0 %v1612_v31  ;;  %v4561_v31 = vld [vmem:[%s5728_s25 + $0x6c] ss:$24 sps:$4 sm:$0xff]  }
 0xa8c   :  { %2198 = vmatprep.mubr.bf16.mxu0 %v5057_v54  ;;  %2167 = vmatpush1.bf16.msra.mxu0 %v4529_v39 }
 0xa8d   :  { %2168 = vmatprep.subr.bf16.mxu0 %v4537_v12  ;;  %2118 = vmatpush1.bf16.msra.mxu1 %v4538_v63 }
 0xa8e   :  { %2119 = vmatprep.subr.bf16.mxu1 %v4546_v7 }
 0xa90   :  { %2169 = vmatpush1.bf16.msra.mxu0 %v4535_v62 }
 0xa91   :  { %2170 = vmatprep.subr.bf16.mxu0 %v4543_v1  ;;  %2120 = vmatpush1.bf16.msra.mxu1 %v4544_v13  ;;  %v4580_v13 = vld [vmem:[%s5728_s25 + $0x100] ss:$24 sps:$4 sm:$0xff]  }
 0xa92   :  { %2121 = vmatprep.subr.bf16.mxu1 %v4552_v21  ;;  %v4588_v21 = vld [vmem:[%s5728_s25 + $0xa4] ss:$24 sps:$4 sm:$0xff]  }
 0xa94   :  { %2171 = vmatpush1.bf16.msra.mxu0 %v4541_v6  ;;  %v4577_v6 = vld [vmem:[%s5728_s25 + $0x130] ss:$24 sps:$4 sm:$0xff]  }
 0xa95   :  { %2172 = vmatprep.subr.bf16.mxu0 %v4549_v16  ;;  %2122 = vmatpush1.bf16.msra.mxu1 %v4550_v18  ;;  %v4583_v18 = vld [vmem:[%s5728_s25 + $0xd0] ss:$24 sps:$4 sm:$0xff]  }
 0xa96   :  { %2123 = vmatprep.subr.bf16.mxu1 %v4558_v24  ;;  %v4589_v24 = vld [vmem:[%s5728_s25 + $0x70] ss:$24 sps:$4 sm:$0xff]  }
 0xa98   :  { %2173 = vmatpush1.bf16.msra.mxu0 %v4547_v17  ;;  %v4585_v17 = vld [vmem:[%s5728_s25 + $0xd4] ss:$24 sps:$4 sm:$0xff]  }
 0xa99   :  { %2174 = vmatprep.subr.bf16.mxu0 %v4555_v30  ;;  %v4591_v30 = vld [vmem:[%s5728_s25 + $0x74] ss:$24 sps:$4 sm:$0xff]  }
 0xa9c   :  { %2175 = vmatpush1.bf16.msra.mxu0 %v4553_v26  ;;  %v4586_v26 = vld [vmem:[%s5728_s25 + $0xa0] ss:$24 sps:$4 sm:$0xff]  }
 0xa9d   :  { %2176 = vmatprep.subr.bf16.mxu0 %v4561_v31  ;;  %v4594_v31 = vld [vmem:[%s5728_s25 + $0x44] ss:$24 sps:$4 sm:$0xff]  }
 0xb4b   :  { %v4259_v28 = vpop.f32.mrf.mxu0 }
 0xb4c   :  { %v1711_v23 = vadd.f32 %v4259_v28, %v3864_v33  ;;  %v4556_v28 = vld [vmem:[%s5728_s25 + $0x60] ss:$24 sps:$4 sm:$0xff]  }
 0xb4d   :  { %v1702_v25 = vpop.f32.mrf.mxu0  ;;  %2124 = vmatpush1.bf16.msra.mxu1 %v4556_v28  ;;  %v4592_v28 = vld [vmem:[%s5728_s25 + $0x40] ss:$24 sps:$4 sm:$0xff]  }
 0xb4e   :  { %v1703_v34 = vadd.f32 %v3864_v33, %v1702_v25  ;;  %v1719_v38 = vadd.f32 %v1711_v23, %v5432_v19  ;;  %v4564_v25 = vld [vmem:[%s5728_s25 + $0x34] ss:$24 sps:$4 sm:$0xff]   ;;  %v4565_v23 = vld [vmem:[%s5728_s25 + $0x38] ss:$24 sps:$4 sm:$0xff]  }
 0xb4f   :  { %v4260_v29 = vpop.f32.mrf.mxu0  ;;  %2125 = vmatprep.subr.bf16.mxu1 %v4564_v25  ;;  %v4595_v25 = vld [vmem:[%s5728_s25 + $0x10] ss:$24 sps:$4 sm:$0xff]  }
 0xb50   :  { %v1717_v37 = vadd.f32 %v1703_v34, %v5426_v9  ;;  %v1714_v5 = vadd.f32 %v4260_v29, %v3864_v33  ;;  %v4567_v34 = vld [vmem:[%s5728_s25 + $0x3c] ss:$24 sps:$4 sm:$0xff]   ;;  %v4562_v29 = vld [vmem:[%s5728_s25 + $0x30] ss:$24 sps:$4 sm:$0xff]  }
 0xb51   :  { %v1705_v3 = vpop.f32.mrf.mxu0  ;;  %2126 = vmatpush1.bf16.msra.mxu1 %v4562_v29 }
 0xb52   :  { %v1706_v36 = vadd.f32 %v3864_v33, %v1705_v3  ;;  %1723 = vadd.xlane.f32.xlu0 %v1717_v37  ;;  %v1720_v46 = vadd.f32 %v1714_v5, %v5434_v20  ;;  %v4559_v33 = vld [vmem:[%s5728_s25 + $0x68] ss:$24 sps:$4 sm:$0xff]   ;;  %v4573_v3 = vld [vmem:[%s5728_s25 + $0xc] ss:$24 sps:$4 sm:$0xff]  }
 0xb53   :  { %2177 = vmatpush1.bf16.msra.mxu0 %v4559_v33  ;;  %v4571_v5 = vld [vmem:[%s5728_s25 + $0x8] ss:$24 sps:$4 sm:$0xff]   ;;  %v4597_v33 = vld [vmem:[%s5728_s25 + $0x14] ss:$24 sps:$4 sm:$0xff]  }
 0xb54   :  { %v1718_v10 = vadd.f32 %v1706_v36, %v5428_v52  ;;  %2178 = vmatprep.subr.bf16.mxu0 %v4567_v34  ;;  %v4568_v36 = vld [vmem:[%s5728_s25] ss:$24 sps:$4 sm:$0xff]  }
 0xb55   :  { %v1841_v34 = vld [vmem:[%s5731_s24] sm:$0x3f] }
 0xb56   :  { %1725 = vadd.xlane.f32.xlu1 %v1718_v10  ;;  %1727 = vadd.xlane.f32.xlu0 %v1719_v38  ;;  %v5539_v29 = vrot.slane %v1841_v34, %v394_v48 }
 0xb57   :  { %2179 = vmatpush1.bf16.msra.mxu0 %v4565_v23 }
 0xb58   :  { %2180 = vmatprep.subr.bf16.mxu0 %v4573_v3  ;;  %v1846_v3 = vrot.slane %v1841_v34, %v5311_v49 }
 0xb5a   :  { %1729 = vadd.xlane.f32.xlu1 %v1720_v46 }
 0xb5b   :  { %2181 = vmatpush1.bf16.msra.mxu0 %v4571_v5 }
 0xbdb   :  { %v1724_v9 = vpop.xlane.xlu0 %1723 }
 0xbdc   :  { %v1731_v22 = vmul.f32 0.015625, %v1724_v9 }
 0xbde   :  { %v1735_v32 = vsub.f32 %v1717_v37, %v1731_v22  ;;  %v4570_v37 = vld [vmem:[%s5728_s25 + $0x4] ss:$24 sps:$4 sm:$0xff]  }
 0xbdf   :  { %v1726_v40 = vpop.xlane.xlu1 %1725  ;;  %v1728_v52 = vpop.xlane.xlu0 %1727  ;;  %2127 = vmatprep.subr.bf16.mxu1 %v4570_v37 }
 0xbe0   :  { %v1732_v45 = vmul.f32 0.015625, %v1726_v40  ;;  %v1733_v19 = vmul.f32 0.015625, %v1728_v52  ;;  %v5451_v42 = vmul.f32 %v5260_v15, %v1735_v32  ;;  %2128 = vmatpush1.bf16.msra.mxu1 %v4568_v36 }
 0xbe2   :  { %v1736_v20 = vsub.f32 %v1718_v10, %v1732_v45  ;;  %v1737_v43 = vsub.f32 %v1719_v38, %v1733_v19  ;;  %v1743_v44 = vmul.f32 %v5451_v42, %v5451_v42  ;;  %v4576_v10 = vld [vmem:[%s5728_s25 + $0x164] ss:$24 sps:$4 sm:$0xff]  }
 0xbe3   :  { %v1730_v53 = vpop.xlane.xlu1 %1729  ;;  %2219 = vmatprep.subr.bf16.mxu1 %v4576_v10  ;;  %v1850_v10 = vrot.slane %v1841_v34, %v5315_v51 }
 0xbe4   :  { %v1734_v55 = vmul.f32 0.015625, %v1730_v53  ;;  %1747 = vadd.xlane.f32.xlu0 %v1743_v44  ;;  %v5456_v56 = vmul.f32 %v5260_v15, %v1736_v20  ;;  %v5459_v57 = vmul.f32 %v5260_v15, %v1737_v43  ;;  %v3873_v43 = vld [vmem:[%s5729_s3] ss:$0 sm:$0xff] }
 0xbe6   :  { %v1738_v2 = vsub.f32 %v1720_v46, %v1734_v55  ;;  %v1744_v8 = vmul.f32 %v5456_v56, %v5456_v56  ;;  %v1745_v4 = vmul.f32 %v5459_v57, %v5459_v57 }
 0xbe8   :  { %1749 = vadd.xlane.f32.xlu1 %v1744_v8  ;;  %1751 = vadd.xlane.f32.xlu0 %v1745_v4  ;;  %v5466_v58 = vmul.f32 %v5260_v15, %v1738_v2  ;;  %v3874_v8 = vld [vmem:[%s5730_s8] ss:$0 sm:$0xff] }
 0xbea   :  { %v1746_v59 = vmul.f32 %v5466_v58, %v5466_v58 }
 0xbec   :  { %1753 = vadd.xlane.f32.xlu1 %v1746_v59 }
 0xc6d   :  { %v1748_v38 = vpop.xlane.xlu0 %1747 }
 0xc6e   :  { %v1755_v46 = vmul.f32 0.015625, %v1748_v38 }
 0xc70   :  { %v1759_v11 = vadd.f32 1e-12, %v1755_v46 }
 0xc71   :  { %v1750_v50 = vpop.xlane.xlu1 %1749  ;;  %v1752_v39 = vpop.xlane.xlu0 %1751 }
 0xc72   :  { %4750 = vrsqrt.f32 %v1759_v11  ;;  %v1756_v27 = vmul.f32 0.015625, %v1750_v50  ;;  %v1757_v9 = vmul.f32 0.015625, %v1752_v39 }
 0xc74   :  { %v1760_v22 = vadd.f32 1e-12, %v1756_v27  ;;  %v1761_v32 = vadd.f32 1e-12, %v1757_v9 }
 0xc75   :  { %v1754_v40 = vpop.xlane.xlu1 %1753 }
 0xc76   :  { %4752 = vrsqrt.f32 %v1760_v22  ;;  %v1758_v52 = vmul.f32 0.015625, %v1754_v40 }
 0xc77   :  { %4754 = vrsqrt.f32 %v1761_v32 }
 0xc78   :  { %v1762_v45 = vadd.f32 1e-12, %v1758_v52 }
 0xc7a   :  { %4756 = vrsqrt.f32 %v1762_v45 }
 0xc7f   :  { %v4751_v19 = vpop.eup %4750 }
 0xc80   :  { %v1767_v20 = vmul.f32 %v4751_v19, %v5451_v42  ;;  %v4574_v42 = vld [vmem:[%s5728_s25 + $0x160] ss:$24 sps:$4 sm:$0xff]  }
 0xc82   :  { %v1777_v55 = vmul.f32 %v3873_v43, %v1767_v20 }
 0xc83   :  { %v4753_v44 = vpop.eup %4752 }
 0xc84   :  { %v1768_v53 = vmul.f32 %v4753_v44, %v5456_v56  ;;  %v4755_v2 = vpop.eup %4754  ;;  %v5503_v60 = vadd.f32 %v3874_v8, %v1777_v55 }
 0xc85   :  { %v1769_v12 = vmul.f32 %v4755_v2, %v5459_v57  ;;  %v4582_v57 = vld [vmem:[%s5728_s25 + $0x104] ss:$24 sps:$4 sm:$0xff]  }
 0xc86   :  { %v1778_v4 = vmul.f32 %v3873_v43, %v1768_v53  ;;  %v1854_v53 = vrot.slane %v1841_v34, %v390_v0 }
 0xc87   :  { %v4757_v59 = vpop.eup %4756  ;;  %v1779_v1 = vmul.f32 %v3873_v43, %v1769_v12 }
 0xc88   :  { %v5505_v61 = vadd.f32 %v3874_v8, %v1778_v4  ;;  %v1770_v62 = vmul.f32 %v4757_v59, %v5466_v58 }
 0xc89   :  { %v5519_v7 = vadd.f32 %v3874_v8, %v1779_v1 }
 0xc8a   :  { %v1839_v56 = vpack.c.bf16 %v5505_v61, %v5503_v60  ;;  %v1780_v63 = vmul.f32 %v3873_v43, %v1770_v62 }
 0xc8c   :  { %2146 = vmatmul.mubr.bf16.vlgmr.msra.gmra.mxu1 %v1839_v56  ;;  %2199 = vmatmul.mubr.bf16.vlgmr.msra.gmra.mxu0 %v1839_v56  ;;  %v5517_v58 = vadd.f32 %v3874_v8, %v1780_v63 }
 0xc8d   :  { %2220 = vmatpush1.bf16.msra.mxu1 %v4574_v42  ;;  %2155 = vmatprep.mubr.bf16.mxu1 %v5057_v54 }
 0xc8e   :  { %2221 = vmatprep.subr.bf16.mxu1 %v4579_v14  ;;  %2208 = vmatprep.mubr.bf16.mxu0 %v5057_v54  ;;  %v1840_v16 = vpack.c.bf16 %v5517_v58, %v5519_v7 }
 0xc91   :  { %2222 = vmatpush1.bf16.msra.mxu1 %v4577_v6 }
 0xc92   :  { %2223 = vmatprep.subr.bf16.mxu1 %v4582_v57 }
 0xc94   :  { %2156 = vmatmul.mubr.bf16.gmra.mxu1 %v1840_v16  ;;  %2209 = vmatmul.mubr.bf16.gmra.mxu0 %v1840_v16 }
 0xc95   :  { %2224 = vmatpush1.bf16.msra.mxu1 %v4580_v13  ;;  %2251 = vmatprep.mubr.bf16.mxu1 %v5057_v54 }
 0xc96   :  { %2225 = vmatprep.subr.bf16.mxu1 %v4585_v17 }
 0xc99   :  { %2226 = vmatpush1.bf16.msra.mxu1 %v4583_v18 }
 0xc9a   :  { %2227 = vmatprep.subr.bf16.mxu1 %v4588_v21 }
 0xc9d   :  { %2228 = vmatpush1.bf16.msra.mxu1 %v4586_v26  ;;  %v1862_v26 = vrot.slane %v1841_v34, %v398_v41 }
 0xc9e   :  { %2229 = vmatprep.subr.bf16.mxu1 %v4591_v30 }
 0xca1   :  { %2230 = vmatpush1.bf16.msra.mxu1 %v4589_v24 }
 0xca2   :  { %2231 = vmatprep.subr.bf16.mxu1 %v4594_v31  ;;  %v1866_v31 = vrot.slane %v1841_v34, %v402_v35 }
 0xca5   :  { %2232 = vmatpush1.bf16.msra.mxu1 %v4592_v28 }
 0xca6   :  { %2233 = vmatprep.subr.bf16.mxu1 %v4597_v33 }
 0xca9   :  { %2234 = vmatpush1.bf16.msra.mxu1 %v4595_v25 }
 0xcac   :  { %2252 = vmatmul.mubr.bf16.vlgmr.msra.gmra.mxu1 %v1839_v56 }
 0xcad   :  { %2261 = vmatprep.mubr.bf16.mxu1 %v5057_v54 }
 0xcb4   :  { %2262 = vmatmul.mubr.bf16.gmra.mxu1 %v1840_v16 }
 0xd4c   :  { %v2147_v23 = vpop.f32.mrf.mxu1  ;;  %v2200_v37 = vpop.f32.mrf.mxu0 }
 0xd4d   :  { %v2148_v50 = vadd.f32 %v2147_v23, %v1846_v3  ;;  %v2201_v62 = vadd.f32 %v2200_v37, %v1854_v53 }
 0xd4e   :  { %v2149_v36 = vpop.f32.mrf.mxu1  ;;  %v2202_v5 = vpop.f32.mrf.mxu0 }
 0xd4f   :  { %v2203_v38 = vadd.f32 %v2202_v5, %v5539_v29  ;;  %v5544_v22 = vadd.f32 %v2149_v36, %v1850_v10 }
 0xd50   :  { %v2151_v46 = vpop.f32.mrf.mxu1  ;;  %v2204_v11 = vpop.f32.mrf.mxu0 }
 0xd51   :  { %v2152_v39 = vadd.f32 %v2151_v46, %v1846_v3  ;;  %v2205_v8 = vadd.f32 %v2204_v11, %v1854_v53 }
 0xd52   :  { %v2153_v27 = vpop.f32.mrf.mxu1  ;;  %v2206_v9 = vpop.f32.mrf.mxu0 }
 0xd53   :  { %v2272_v48 = vpack.c.bf16 %v2152_v39, %v2148_v50  ;;  %v5546_v32 = vadd.f32 %v2153_v27, %v1850_v10  ;;  %v2207_v40 = vadd.f32 %v2206_v9, %v5539_v29  ;;  %v2274_v63 = vpack.c.bf16 %v2205_v8, %v2201_v62  ;;  %v5571_v9 = vld [vmem:[%s5072_s9] sm:$0xff] }
 0xd54   :  { %v2157_v52 = vpop.f32.mrf.mxu1  ;;  %v2210_v45 = vpop.f32.mrf.mxu0 }
 0xd55   :  { %v2446_v19 = vpack.c.bf16 %v5546_v32, %v5544_v22  ;;  %v5551_v20 = vpack.c.bf16 %v2207_v40, %v2203_v38  ;;  %4265 = vmatprep.mubr.bf16.mxu0 %v2272_v48  ;;  %v2211_v4 = vadd.f32 %v2210_v45, %v1854_v53  ;;  %v2158_v6 = vadd.f32 %v2157_v52, %v1846_v3  ;;  %v5575_v40 = vld [vmem:[%s5072_s9 + $0x10] sm:$0xff] }
 0xd56   :  { %v2159_v43 = vpop.f32.mrf.mxu1  ;;  %v2212_v44 = vpop.f32.mrf.mxu0 }
 0xd57   :  { %v5555_v42 = vadd.f32 %v2159_v43, %v1850_v10  ;;  %v2213_v47 = vadd.f32 %v2212_v44, %v5539_v29  ;;  %v5580_v44 = vld [vmem:[%s5072_s9 + $0x8] sm:$0xff] }
 0xd58   :  { %v2161_v55 = vpop.f32.mrf.mxu1  ;;  %v2214_v2 = vpop.f32.mrf.mxu0 }
 0xd59   :  { %v2215_v59 = vadd.f32 %v2214_v2, %v1854_v53  ;;  %v2162_v0 = vadd.f32 %v2161_v55, %v1846_v3  ;;  %v5584_v55 = vld [vmem:[%s5072_s9 + $0x18] sm:$0xff]  ;;  %s5732_s9 = sld [smem:[#allocation31_spill]] }
 0xd5a   :  { %v2163_v12 = vpop.f32.mrf.mxu1  ;;  %v2216_v23 = vpop.f32.mrf.mxu0 }
 0xd5b   :  { %v2275_v56 = vpack.c.bf16 %v2215_v59, %v2211_v4  ;;  %v5557_v14 = vadd.f32 %v2163_v12, %v1850_v10  ;;  %v2273_v57 = vpack.c.bf16 %v2162_v0, %v2158_v6  ;;  %v2217_v46 = vadd.f32 %v2216_v23, %v5539_v29 }
 0xd5d   :  { %v2447_v1 = vpack.c.bf16 %v5557_v14, %v5555_v42  ;;  %4261 = vmatprep.subr.bf16.mxu0 %v2275_v56  ;;  %v5567_v34 = vpack.c.bf16 %v2217_v46, %v2213_v47 }
 0xd5e   :  { %4262 = vmatpush3.bf16.xpose.msra.mxu0 %v2275_v56 }
 0xd5f   :  { %4263 = vmatprep.subr.bf16.mxu0 %v2274_v63 }
 0xd66   :  { %4264 = vmatpush3.bf16.xpose.msra.mxu0 %v2274_v63 }
 0xd6c   :  { %v2253_v13 = vpop.f32.mrf.mxu1 }
 0xd6d   :  { %4266 = vmatmul.mubr.bf16.vlgmr.msra.gmra.mxu0 %v2273_v57  ;;  %v2254_v37 = vadd.f32 %v2253_v13, %v1862_v26 }
 0xd6e   :  { %v2255_v16 = vpop.f32.mrf.mxu1 }
 0xd6f   :  { %v2256_v11 = vadd.f32 %v2255_v16, %v1866_v31 }
 0xd70   :  { %v2257_v17 = vpop.f32.mrf.mxu1 }
 0xd71   :  { %v2258_v28 = vadd.f32 %v2257_v17, %v1862_v26 }
 0xd72   :  { %v2259_v18 = vpop.f32.mrf.mxu1 }
 0xd73   :  { %v2260_v36 = vadd.f32 %v2259_v18, %v1866_v31  ;;  %v2371_v50 = vpack.c.bf16 %v2258_v28, %v2254_v37 }
 0xd74   :  { %v2263_v21 = vpop.f32.mrf.mxu1 }
 0xd75   :  { %v2264_v33 = vadd.f32 %v2263_v21, %v1862_v26  ;;  %v2545_v35 = vpack.c.bf16 %v2260_v36, %v2256_v11 }
 0xd76   :  { %v2265_v30 = vpop.f32.mrf.mxu1 }
 0xd77   :  { %v2266_v5 = vadd.f32 %v2265_v30, %v1866_v31 }
 0xd78   :  { %v2267_v24 = vpop.f32.mrf.mxu1 }
 0xd79   :  { %v2268_v25 = vadd.f32 %v2267_v24, %v1862_v26 }
 0xd7a   :  { %v2269_v3 = vpop.f32.mrf.mxu1 }
 0xd7b   :  { %v2372_v10 = vpack.c.bf16 %v2268_v25, %v2264_v33  ;;  %v2270_v38 = vadd.f32 %v2269_v3, %v1866_v31 }
 0xd7d   :  { %v2546_v41 = vpack.c.bf16 %v2270_v38, %v2266_v5  ;;  %4269 = vmatprep.subr.bf16.mxu0 %v2372_v10 }
 0xd7e   :  { %4270 = vmatpush3.bf16.msra.mxu0 %v2372_v10 }
 0xd7f   :  { %4271 = vmatprep.subr.bf16.mxu0 %v2371_v50  ;;  %4285 = vmatprep.subr.bf16.mxu1 %v2546_v41 }
 0xd80   :  { %4286 = vmatpush3.bf16.msra.mxu1 %v2546_v41 }
 0xd81   :  { %4287 = vmatprep.subr.bf16.mxu1 %v2545_v35 }
 0xd82   :  { %4272 = vmatpush3.bf16.msra.mxu0 %v2371_v50 }
 0xd83   :  { %4277 = vmatprep.subr.bf16.mxu0 %v5567_v34 }
 0xd84   :  { %4288 = vmatpush3.bf16.msra.mxu1 %v2545_v35 }
 0xe2d   :  { %v4267_v39 = vpop.f32.mrf.mxu0 }
 0xe2e   :  { %v2319_v52 = vadd.f32 %v5575_v40, %v4267_v39 }
 0xe2f   :  { %v2310_v27 = vpop.f32.mrf.mxu0 }
 0xe30   :  { %v2311_v48 = vadd.f32 %v5571_v9, %v2310_v27  ;;  %v2331_v4 = vsel %vm862_vm1, %v2319_v52, -inf }
 0xe31   :  { %v4268_v29 = vpop.f32.mrf.mxu0 }
 0xe32   :  { %v2325_v45 = vsel %vm862_vm1, %v2311_v48, -inf  ;;  %v2322_v2 = vadd.f32 %v5584_v55, %v4268_v29 }
 0xe33   :  { %v2313_v43 = vpop.f32.mrf.mxu0  ;;  %2326 = vmax.xlane.f32.xlu0 %v2325_v45 }
 0xe34   :  { %v2314_v53 = vadd.f32 %v5580_v44, %v2313_v43  ;;  %v2334_v59 = vsel %vm862_vm1, %v2322_v2, -inf }
 0xe36   :  { %v2328_v8 = vsel %vm862_vm1, %v2314_v53, -inf }
 0xe37   :  { %2329 = vmax.xlane.f32.xlu1 %v2328_v8  ;;  %2332 = vmax.xlane.f32.xlu0 %v2331_v4 }
 0xe3b   :  { %2335 = vmax.xlane.f32.xlu1 %v2334_v59 }
 0xebc   :  { %v2327_v12 = vpop.xlane.xlu0 %2326 }
 0xebd   :  { %v2337_v62 = vsub.f32 %v2311_v48, %v2327_v12 }
 0xebf   :  { %v2341_v56 = vmul.f32 1.442695, %v2337_v62 }
 0xec0   :  { %v2330_v63 = vpop.xlane.xlu1 %2329  ;;  %v2333_v0 = vpop.xlane.xlu0 %2332 }
 0xec1   :  { %4758 = vpow2.f32 %v2341_v56  ;;  %v2338_v6 = vsub.f32 %v2314_v53, %v2330_v63  ;;  %v2339_v57 = vsub.f32 %v2319_v52, %v2333_v0 }
 0xec3   :  { %v2343_v13 = vmul.f32 1.442695, %v2338_v6  ;;  %v2345_v16 = vmul.f32 1.442695, %v2339_v57 }
 0xec4   :  { %v2336_v17 = vpop.xlane.xlu1 %2335 }
 0xec5   :  { %4760 = vpow2.f32 %v2343_v13  ;;  %v2340_v18 = vsub.f32 %v2322_v2, %v2336_v17 }
 0xec6   :  { %4762 = vpow2.f32 %v2345_v16 }
 0xec7   :  { %v2347_v21 = vmul.f32 1.442695, %v2340_v18 }
 0xec9   :  { %4764 = vpow2.f32 %v2347_v21 }
 0xece   :  { %v4759_v26 = vpop.eup %4758 }
 0xecf   :  { %v2349_v30 = vsel %vm862_vm1, %v4759_v26, 0.0 }
 0xed0   :  { %2350 = vadd.xlane.f32.xlu0 %v2349_v30 }
 0xed2   :  { %v4761_v24 = vpop.eup %4760 }
 0xed3   :  { %v4763_v31 = vpop.eup %4762  ;;  %v2352_v28 = vsel %vm862_vm1, %v4761_v24, 0.0 }
 0xed4   :  { %2353 = vadd.xlane.f32.xlu1 %v2352_v28  ;;  %v2355_v33 = vsel %vm862_vm1, %v4763_v31, 0.0  ;;  %v4598_v28 = vld [vmem:[#allocation11 + $0x38] sm:$0xff]  }
 0xed5   :  { %2356 = vadd.xlane.f32.xlu0 %v2355_v33  ;;  %4313 = vmatprep.subr.bf16.mxu1 %v4598_v28  ;;  %v4606_v33 = vld [vmem:[#allocation11 + $0x78] sm:$0xff]  }
 0xed6   :  { %v4765_v25 = vpop.eup %4764 }
 0xed7   :  { %v2358_v23 = vsel %vm862_vm1, %v4765_v25, 0.0 }
 0xed8   :  { %2359 = vadd.xlane.f32.xlu1 %v2358_v23  ;;  %v4608_v23 = vld [vmem:[#allocation11 + $0x68] sm:$0xff]  }
 0xf59   :  { %v2351_v37 = vpop.xlane.xlu0 %2350 }
 0xf5a   :  { %4766 = vrcp.f32 %v2351_v37  ;;  %v4609_v37 = vld [vmem:[#allocation11 + $0x60] sm:$0xff]  }
 0xf5d   :  { %v2354_v3 = vpop.xlane.xlu1 %2353 }
 0xf5e   :  { %4768 = vrcp.f32 %v2354_v3  ;;  %v2357_v36 = vpop.xlane.xlu0 %2356  ;;  %v4610_v3 = vld [vmem:[#allocation11 + $0x58] sm:$0xff]  }
 0xf5f   :  { %4770 = vrcp.f32 %v2357_v36  ;;  %v4611_v36 = vld [vmem:[#allocation11 + $0x50] sm:$0xff]  }
 0xf61   :  { %v2360_v5 = vpop.xlane.xlu1 %2359 }
 0xf62   :  { %4772 = vrcp.f32 %v2360_v5 }
 0xf67   :  { %v4767_v10 = vpop.eup %4766 }
 0xf68   :  { %v2365_v46 = vmul.f32 %v4767_v10, %v4759_v26 }
 0xf6b   :  { %v4769_v38 = vpop.eup %4768 }
 0xf6c   :  { %v2366_v11 = vmul.f32 %v4769_v38, %v4761_v24  ;;  %v4771_v50 = vpop.eup %4770 }
 0xf6d   :  { %v2367_v35 = vmul.f32 %v4771_v50, %v4763_v31 }
 0xf6e   :  { %v2369_v41 = vpack.c.bf16 %v2366_v11, %v2365_v46 }
 0xf6f   :  { %v4773_v47 = vpop.eup %4772 }
 0xf70   :  { %4273 = vmatprep.mubr.msk.bf16.mxu0 %vm862_vm1, %v2369_v41  ;;  %v2368_v39 = vmul.f32 %v4773_v47, %v4765_v25  ;;  %v4607_v25 = vld [vmem:[#allocation11 + $0x70] sm:$0xff]  }
 0xf72   :  { %v2370_v27 = vpack.c.bf16 %v2368_v39, %v2367_v35 }
 0xf74   :  { %4274 = vmatmul.mubr.msk.bf16.vlgmr.msra.gmra.mxu0 %vm862_vm1, %v2370_v27 }
 0xf75   :  { %4278 = vmatpush3.bf16.xpose.msra.mxu0 %v5567_v34  ;;  %4281 = vmatprep.mubr.bf16.mxu0 %v2446_v19 }
 0xf76   :  { %4279 = vmatprep.subr.bf16.mxu0 %v5551_v20 }
 0xf7d   :  { %4280 = vmatpush3.bf16.xpose.msra.mxu0 %v5551_v20 }
 0xf7e   :  { %4293 = vmatprep.subr.bf16.mxu0 %v4606_v33 }
 0xf84   :  { %4282 = vmatmul.mubr.bf16.vlgmr.msra.gmra.mxu0 %v2447_v1 }
 0xf85   :  { %4294 = vmatpush3.bf16.msra.mxu0 %v4606_v33 }
 0xf86   :  { %4295 = vmatprep.subr.bf16.mxu0 %v4607_v25 }
 0xf89   :  { %4296 = vmatpush3.bf16.msra.mxu0 %v4607_v25 }
 0xf8a   :  { %4297 = vmatprep.subr.bf16.mxu0 %v4608_v23 }
 0xf8d   :  { %4298 = vmatpush3.bf16.msra.mxu0 %v4608_v23 }
 0xf8e   :  { %4299 = vmatprep.subr.bf16.mxu0 %v4609_v37 }
 0xf91   :  { %4300 = vmatpush3.bf16.msra.mxu0 %v4609_v37 }
 0xf92   :  { %4301 = vmatprep.subr.bf16.mxu0 %v4610_v3 }
 0xf95   :  { %4302 = vmatpush3.bf16.msra.mxu0 %v4610_v3 }
 0xf96   :  { %4303 = vmatprep.subr.bf16.mxu0 %v4611_v36 }
 0xf99   :  { %4304 = vmatpush3.bf16.msra.mxu0 %v4611_v36 }
0x1034   :  { %v5605_v48 = vpop.f32.mrf.mxu0 }
0x1036   :  { %v5607_v29 = vpop.f32.mrf.mxu0 }
0x1038   :  { %v5609_v52 = vpop.f32.mrf.mxu0 }
0x1039   :  { %v2429_v34 = vpack.c.bf16 %v5609_v52, %v5605_v48 }
0x103a   :  { %v5613_v45 = vpop.f32.mrf.mxu0 }
0x103b   :  { %v2428_v22 = vpack.c.bf16 %v5613_v45, %v5607_v29  ;;  %v4612_v29 = vld [vmem:[#allocation11 + $0x48] sm:$0xff]   ;;  %v4613_v45 = vld [vmem:[#allocation11 + $0x40] sm:$0xff]  }
0x103c   :  { %4305 = vmatprep.subr.bf16.mxu0 %v4612_v29 }
0x103d   :  { %4306 = vmatpush3.bf16.msra.mxu0 %v4612_v29 }
0x103e   :  { %4307 = vmatprep.subr.bf16.mxu0 %v4613_v45 }
0x1041   :  { %4308 = vmatpush3.bf16.msra.mxu0 %v4613_v45 }
0x1044   :  { %v4283_v32 = vpop.f32.mrf.mxu0 }
0x1045   :  { %v2493_v14 = vadd.f32 %v5575_v40, %v4283_v32 }
0x1046   :  { %v2484_v19 = vpop.f32.mrf.mxu0 }
0x1047   :  { %v2485_v20 = vadd.f32 %v5571_v9, %v2484_v19  ;;  %v2505_v4 = vsel %vm862_vm1, %v2493_v14, -inf }
0x1048   :  { %v4284_v42 = vpop.f32.mrf.mxu0 }
0x1049   :  { %v2499_v1 = vsel %vm862_vm1, %v2485_v20, -inf  ;;  %v2496_v2 = vadd.f32 %v5584_v55, %v4284_v42  ;;  %v4599_v42 = vld [vmem:[#allocation11 + $0x30] sm:$0xff]  }
0x104a   :  { %v2487_v43 = vpop.f32.mrf.mxu0  ;;  %2500 = vmax.xlane.f32.xlu0 %v2499_v1  ;;  %v4601_v1 = vld [vmem:[#allocation11 + $0x20] sm:$0xff]  }
0x104b   :  { %v2488_v53 = vadd.f32 %v5580_v44, %v2487_v43  ;;  %v2508_v59 = vsel %vm862_vm1, %v2496_v2, -inf  ;;  %v4602_v43 = vld [vmem:[#allocation11 + $0x18] sm:$0xff]  }
0x104d   :  { %v2502_v8 = vsel %vm862_vm1, %v2488_v53, -inf }
0x104e   :  { %2503 = vmax.xlane.f32.xlu1 %v2502_v8  ;;  %2506 = vmax.xlane.f32.xlu0 %v2505_v4  ;;  %v4605_v8 = vld [vmem:[#allocation11] sm:$0xff]  }
0x1052   :  { %2509 = vmax.xlane.f32.xlu1 %v2508_v59 }
0x10d3   :  { %v2501_v9 = vpop.xlane.xlu0 %2500 }
0x10d4   :  { %v2511_v12 = vsub.f32 %v2485_v20, %v2501_v9 }
0x10d6   :  { %v2515_v40 = vmul.f32 1.442695, %v2511_v12 }
0x10d7   :  { %v2504_v62 = vpop.xlane.xlu1 %2503  ;;  %v2507_v56 = vpop.xlane.xlu0 %2506 }
0x10d8   :  { %4774 = vpow2.f32 %v2515_v40  ;;  %v2512_v63 = vsub.f32 %v2488_v53, %v2504_v62  ;;  %v2513_v0 = vsub.f32 %v2493_v14, %v2507_v56  ;;  %v4600_v14 = vld [vmem:[#allocation11 + $0x28] sm:$0xff]   ;;  %v4603_v53 = vld [vmem:[#allocation11 + $0x10] sm:$0xff]  }
0x10da   :  { %v2517_v44 = vmul.f32 1.442695, %v2512_v63  ;;  %v2519_v6 = vmul.f32 1.442695, %v2513_v0 }
0x10db   :  { %v2510_v55 = vpop.xlane.xlu1 %2509 }
0x10dc   :  { %4776 = vpow2.f32 %v2517_v44  ;;  %v2514_v57 = vsub.f32 %v2496_v2, %v2510_v55  ;;  %v4604_v2 = vld [vmem:[#allocation11 + $0x8] sm:$0xff]   ;;  %v3943_v44 = vld [vmem:[%s5732_s9] ss:$0 sm:$0xff] }
0x10dd   :  { %4778 = vpow2.f32 %v2519_v6 }
0x10de   :  { %v2521_v13 = vmul.f32 1.442695, %v2514_v57 }
0x10e0   :  { %4780 = vpow2.f32 %v2521_v13 }
0x10e5   :  { %v4775_v16 = vpop.eup %4774 }
0x10e6   :  { %v2523_v17 = vsel %vm862_vm1, %v4775_v16, 0.0 }
0x10e7   :  { %2524 = vadd.xlane.f32.xlu0 %v2523_v17 }
0x10e9   :  { %v4777_v18 = vpop.eup %4776 }
0x10ea   :  { %v4779_v21 = vpop.eup %4778  ;;  %v2526_v26 = vsel %vm862_vm1, %v4777_v18, 0.0 }
0x10eb   :  { %2527 = vadd.xlane.f32.xlu1 %v2526_v26  ;;  %v2529_v30 = vsel %vm862_vm1, %v4779_v21, 0.0 }
0x10ec   :  { %2530 = vadd.xlane.f32.xlu0 %v2529_v30 }
0x10ed   :  { %v4781_v24 = vpop.eup %4780 }
0x10ee   :  { %v2532_v31 = vsel %vm862_vm1, %v4781_v24, 0.0 }
0x10ef   :  { %2533 = vadd.xlane.f32.xlu1 %v2532_v31 }
0x1170   :  { %v2525_v5 = vpop.xlane.xlu0 %2524 }
0x1171   :  { %4782 = vrcp.f32 %v2525_v5 }
0x1174   :  { %v2528_v10 = vpop.xlane.xlu1 %2527 }
0x1175   :  { %4784 = vrcp.f32 %v2528_v10  ;;  %v2531_v38 = vpop.xlane.xlu0 %2530 }
0x1176   :  { %4786 = vrcp.f32 %v2531_v38 }
0x1178   :  { %v2534_v46 = vpop.xlane.xlu1 %2533 }
0x1179   :  { %4788 = vrcp.f32 %v2534_v46 }
0x117e   :  { %v4783_v11 = vpop.eup %4782 }
0x117f   :  { %v2539_v41 = vmul.f32 %v4783_v11, %v4775_v16 }
0x1182   :  { %v4785_v50 = vpop.eup %4784 }
0x1183   :  { %v2540_v47 = vmul.f32 %v4785_v50, %v4777_v18  ;;  %v4787_v35 = vpop.eup %4786 }
0x1184   :  { %v2541_v32 = vmul.f32 %v4787_v35, %v4779_v21 }
0x1185   :  { %v2543_v39 = vpack.c.bf16 %v2540_v47, %v2539_v41 }
0x1186   :  { %v4789_v27 = vpop.eup %4788 }
0x1187   :  { %v2542_v19 = vmul.f32 %v4789_v27, %v4781_v24  ;;  %4289 = vmatprep.mubr.msk.bf16.mxu1 %vm862_vm1, %v2543_v39  ;;  %v4614_v27 = vld [vmem:[#allocation12 + $0x38] sm:$0xff]  }
0x1188   :  { %4333 = vmatprep.subr.bf16.mxu0 %v4614_v27 }
0x1189   :  { %v2544_v20 = vpack.c.bf16 %v2542_v19, %v2541_v32  ;;  %v4615_v32 = vld [vmem:[#allocation12 + $0x30] sm:$0xff]   ;;  %v4616_v19 = vld [vmem:[#allocation12 + $0x28] sm:$0xff]  }
0x118b   :  { %4290 = vmatmul.mubr.msk.bf16.vlgmr.msra.gmra.mxu1 %vm862_vm1, %v2544_v20  ;;  %v4617_v20 = vld [vmem:[#allocation12 + $0x20] sm:$0xff]  }
0x118c   :  { %4314 = vmatpush3.bf16.msra.mxu1 %v4598_v28  ;;  %4329 = vmatprep.mubr.bf16.mxu1 %v2428_v22 }
0x118d   :  { %4315 = vmatprep.subr.bf16.mxu1 %v4599_v42 }
0x1190   :  { %4316 = vmatpush3.bf16.msra.mxu1 %v4599_v42  ;;  %v4618_v42 = vld [vmem:[#allocation12 + $0x18] sm:$0xff]  }
0x1191   :  { %4317 = vmatprep.subr.bf16.mxu1 %v4600_v14 }
0x1194   :  { %4318 = vmatpush3.bf16.msra.mxu1 %v4600_v14  ;;  %v4619_v14 = vld [vmem:[#allocation12 + $0x10] sm:$0xff]  }
0x1195   :  { %4319 = vmatprep.subr.bf16.mxu1 %v4601_v1 }
0x1198   :  { %4320 = vmatpush3.bf16.msra.mxu1 %v4601_v1  ;;  %v4620_v1 = vld [vmem:[#allocation12 + $0x8] sm:$0xff]  }
0x1199   :  { %4321 = vmatprep.subr.bf16.mxu1 %v4602_v43 }
0x119c   :  { %4322 = vmatpush3.bf16.msra.mxu1 %v4602_v43  ;;  %v4621_v43 = vld [vmem:[#allocation12] sm:$0xff]  }
0x119d   :  { %4323 = vmatprep.subr.bf16.mxu1 %v4603_v53 }
0x11a0   :  { %4324 = vmatpush3.bf16.msra.mxu1 %v4603_v53 }
0x11a1   :  { %4325 = vmatprep.subr.bf16.mxu1 %v4604_v2 }
0x11a4   :  { %4326 = vmatpush3.bf16.msra.mxu1 %v4604_v2 }
0x11a5   :  { %4327 = vmatprep.subr.bf16.mxu1 %v4605_v8 }
0x11a8   :  { %4328 = vmatpush3.bf16.msra.mxu1 %v4605_v8 }
0x11ab   :  { %4330 = vmatmul.mubr.bf16.vlgmr.msra.gmra.mxu1 %v2429_v34 }
0x124b   :  { %v4291_v22 = vpop.f32.mrf.mxu1 }
0x124d   :  { %v2587_v4 = vpop.f32.mrf.mxu1 }
0x124f   :  { %v4292_v59 = vpop.f32.mrf.mxu1 }
0x1250   :  { %v2603_v40 = vpack.c.bf16 %v4292_v59, %v4291_v22 }
0x1251   :  { %v2590_v9 = vpop.f32.mrf.mxu1 }
0x1252   :  { %v2602_v12 = vpack.c.bf16 %v2590_v9, %v2587_v4 }
0x1254   :  { %4309 = vmatprep.mubr.bf16.mxu0 %v2602_v12 }
0x1255   :  { %4310 = vmatmul.mubr.bf16.vlgmr.msra.gmra.mxu0 %v2603_v40 }
0x1256   :  { %4334 = vmatpush3.bf16.msra.mxu0 %v4614_v27 }
0x1257   :  { %4335 = vmatprep.subr.bf16.mxu0 %v4615_v32 }
0x125a   :  { %4336 = vmatpush3.bf16.msra.mxu0 %v4615_v32 }
0x125b   :  { %4337 = vmatprep.subr.bf16.mxu0 %v4616_v19 }
0x125e   :  { %4338 = vmatpush3.bf16.msra.mxu0 %v4616_v19 }
0x125f   :  { %4339 = vmatprep.subr.bf16.mxu0 %v4617_v20 }
0x1262   :  { %4340 = vmatpush3.bf16.msra.mxu0 %v4617_v20 }
0x1263   :  { %4341 = vmatprep.subr.bf16.mxu0 %v4618_v42 }
0x1266   :  { %4342 = vmatpush3.bf16.msra.mxu0 %v4618_v42 }
0x1267   :  { %4343 = vmatprep.subr.bf16.mxu0 %v4619_v14 }
0x126a   :  { %4344 = vmatpush3.bf16.msra.mxu0 %v4619_v14 }
0x126b   :  { %v4331_v62 = vpop.f32.mrf.mxu1  ;;  %4345 = vmatprep.subr.bf16.mxu0 %v4620_v1 }
0x126d   :  { %v2799_v56 = vpop.f32.mrf.mxu1 }
0x126e   :  { %4346 = vmatpush3.bf16.msra.mxu0 %v4620_v1 }
0x126f   :  { %v4332_v48 = vpop.f32.mrf.mxu1  ;;  %4347 = vmatprep.subr.bf16.mxu0 %v4621_v43 }
0x1271   :  { %v2802_v57 = vpop.f32.mrf.mxu1 }
0x1272   :  { %4348 = vmatpush3.bf16.msra.mxu0 %v4621_v43 }
0x1315   :  { %v4311_v63 = vpop.f32.mrf.mxu0 }
0x1316   :  { %v2808_v34 = vadd.f32 %v4331_v62, %v4311_v63 }
0x1317   :  { %v2702_v52 = vpop.f32.mrf.mxu0 }
0x1318   :  { %v2800_v0 = vadd.f32 %v2799_v56, %v2702_v52  ;;  %v2823_v16 = vadd.f32 %v3943_v44, %v2808_v34 }
0x1319   :  { %v4312_v6 = vpop.f32.mrf.mxu0 }
0x131a   :  { %v2821_v55 = vadd.f32 %v3943_v44, %v2800_v0  ;;  %v2811_v17 = vadd.f32 %v4332_v48, %v4312_v6  ;;  %v2827_v31 = vadd.f32 %v2823_v16, %v5519_v7  ;;  %v3944_v48 = vld [vmem:[%s5733_s12] ss:$0 sm:$0xff] }
0x131b   :  { %v2705_v13 = vpop.f32.mrf.mxu0  ;;  %v3945_v6 = vld [vmem:[%s5734_s27] ss:$0 sm:$0xff] }
0x131c   :  { %v2803_v18 = vadd.f32 %v2802_v57, %v2705_v13  ;;  %v2825_v21 = vadd.f32 %v2821_v55, %v5503_v60  ;;  %v2824_v30 = vadd.f32 %v3943_v44, %v2811_v17 }
0x131e   :  { %v2822_v26 = vadd.f32 %v3943_v44, %v2803_v18  ;;  %2831 = vadd.xlane.f32.xlu0 %v2825_v21  ;;  %v2828_v28 = vadd.f32 %v2824_v30, %v5517_v58 }
0x1320   :  { %v2826_v24 = vadd.f32 %v2822_v26, %v5505_v61 }
0x1322   :  { %2833 = vadd.xlane.f32.xlu1 %v2826_v24  ;;  %2835 = vadd.xlane.f32.xlu0 %v2827_v31 }
0x1326   :  { %2837 = vadd.xlane.f32.xlu1 %v2828_v28 }
0x13a7   :  { %v2832_v33 = vpop.xlane.xlu0 %2831 }
0x13a8   :  { %v2839_v25 = vmul.f32 0.015625, %v2832_v33  ;;  %v4622_v33 = vld [vmem:[%s5735_s7 + $0x38] sm:$0xff]  }
0x13a9   :  { %4353 = vmatprep.subr.bf16.mxu1 %v4622_v33 }
0x13aa   :  { %v2843_v23 = vsub.f32 %v2825_v21, %v2839_v25  ;;  %4354 = vmatpush3.bf16.msra.mxu1 %v4622_v33  ;;  %v4623_v25 = vld [vmem:[%s5735_s7 + $0x30] sm:$0xff]   ;;  %v3955_v33 = vld [vmem:[%s5737_s30] ss:$0 sm:$0xff] }
0x13ab   :  { %v2834_v37 = vpop.xlane.xlu1 %2833  ;;  %v2836_v3 = vpop.xlane.xlu0 %2835  ;;  %4355 = vmatprep.subr.bf16.mxu1 %v4623_v25 }
0x13ac   :  { %v2840_v36 = vmul.f32 0.015625, %v2834_v37  ;;  %v2841_v5 = vmul.f32 0.015625, %v2836_v3  ;;  %v2847_v60 = vmul.f32 %v5260_v15, %v2843_v23  ;;  %v4624_v23 = vld [vmem:[%s5735_s7 + $0x28] sm:$0xff]   ;;  %v4625_v37 = vld [vmem:[%s5735_s7 + $0x20] sm:$0xff]   ;;  %v4626_v3 = vld [vmem:[%s5735_s7 + $0x18] sm:$0xff]  }
0x13ae   :  { %v2844_v10 = vsub.f32 %v2826_v24, %v2840_v36  ;;  %v2845_v38 = vsub.f32 %v2827_v31, %v2841_v5  ;;  %v2851_v46 = vmul.f32 %v2847_v60, %v2847_v60  ;;  %4356 = vmatpush3.bf16.msra.mxu1 %v4623_v25  ;;  %v4627_v36 = vld [vmem:[%s5735_s7 + $0x10] sm:$0xff]   ;;  %v4628_v5 = vld [vmem:[%s5735_s7 + $0x8] sm:$0xff]  }
0x13af   :  { %v2838_v61 = vpop.xlane.xlu1 %2837  ;;  %4357 = vmatprep.subr.bf16.mxu1 %v4624_v23 }
0x13b0   :  { %v2842_v11 = vmul.f32 0.015625, %v2838_v61  ;;  %2855 = vadd.xlane.f32.xlu0 %v2851_v46  ;;  %v2848_v7 = vmul.f32 %v5260_v15, %v2844_v10  ;;  %v2849_v58 = vmul.f32 %v5260_v15, %v2845_v38  ;;  %v3946_v10 = vld [vmem:[%s5736_s0] ss:$0 sm:$0xff] }
0x13b2   :  { %v2846_v50 = vsub.f32 %v2828_v28, %v2842_v11  ;;  %v2852_v41 = vmul.f32 %v2848_v7, %v2848_v7  ;;  %v2853_v47 = vmul.f32 %v2849_v58, %v2849_v58  ;;  %4358 = vmatpush3.bf16.msra.mxu1 %v4624_v23 }
0x13b3   :  { %4359 = vmatprep.subr.bf16.mxu1 %v4625_v37 }
0x13b4   :  { %2857 = vadd.xlane.f32.xlu1 %v2852_v41  ;;  %2859 = vadd.xlane.f32.xlu0 %v2853_v47  ;;  %v2850_v35 = vmul.f32 %v5260_v15, %v2846_v50 }
0x13b6   :  { %v2854_v39 = vmul.f32 %v2850_v35, %v2850_v35  ;;  %4360 = vmatpush3.bf16.msra.mxu1 %v4625_v37 }
0x13b7   :  { %4361 = vmatprep.subr.bf16.mxu1 %v4626_v3 }
0x13b8   :  { %2861 = vadd.xlane.f32.xlu1 %v2854_v39 }
0x13ba   :  { %4362 = vmatpush3.bf16.msra.mxu1 %v4626_v3 }
0x13bb   :  { %4363 = vmatprep.subr.bf16.mxu1 %v4627_v36 }
0x13be   :  { %4364 = vmatpush3.bf16.msra.mxu1 %v4627_v36 }
0x13bf   :  { %4365 = vmatprep.subr.bf16.mxu1 %v4628_v5 }
0x13c2   :  { %4366 = vmatpush3.bf16.msra.mxu1 %v4628_v5 }
0x1439   :  { %v2856_v53 = vpop.xlane.xlu0 %2855 }
0x143a   :  { %v2863_v2 = vmul.f32 0.015625, %v2856_v53 }
0x143c   :  { %v2867_v8 = vadd.f32 1e-12, %v2863_v2 }
0x143d   :  { %v2858_v29 = vpop.xlane.xlu1 %2857  ;;  %v2860_v45 = vpop.xlane.xlu0 %2859 }
0x143e   :  { %4790 = vrsqrt.f32 %v2867_v8  ;;  %v2864_v22 = vmul.f32 0.015625, %v2858_v29  ;;  %v2865_v4 = vmul.f32 0.015625, %v2860_v45 }
0x1440   :  { %v2868_v59 = vadd.f32 1e-12, %v2864_v22  ;;  %v2869_v9 = vadd.f32 1e-12, %v2865_v4 }
0x1441   :  { %v2862_v12 = vpop.xlane.xlu1 %2861 }
0x1442   :  { %4792 = vrsqrt.f32 %v2868_v59  ;;  %v2866_v40 = vmul.f32 0.015625, %v2862_v12 }
0x1443   :  { %4794 = vrsqrt.f32 %v2869_v9 }
0x1444   :  { %v2870_v62 = vadd.f32 1e-12, %v2866_v40 }
0x1446   :  { %4796 = vrsqrt.f32 %v2870_v62 }
0x144b   :  { %v4791_v56 = vpop.eup %4790 }
0x144c   :  { %v2875_v63 = vmul.f32 %v4791_v56, %v2847_v60  ;;  %v4629_v60 = vld [vmem:[%s5735_s7] sm:$0xff]  }
0x144d   :  { %4367 = vmatprep.subr.bf16.mxu1 %v4629_v60 }
0x144e   :  { %v2885_v44 = vmul.f32 %v3944_v48, %v2875_v63  ;;  %4368 = vmatpush3.bf16.msra.mxu1 %v4629_v60 }
0x144f   :  { %v4793_v52 = vpop.eup %4792 }
0x1450   :  { %v4795_v34 = vpop.eup %4794  ;;  %v2876_v0 = vmul.f32 %v4793_v52, %v2848_v7  ;;  %v5648_v16 = vadd.f32 %v3945_v6, %v2885_v44 }
0x1451   :  { %v2877_v55 = vmul.f32 %v4795_v34, %v2849_v58 }
0x1452   :  { %v2886_v57 = vmul.f32 %v3944_v48, %v2876_v0 }
0x1453   :  { %v4797_v13 = vpop.eup %4796  ;;  %v2887_v21 = vmul.f32 %v3944_v48, %v2877_v55 }
0x1454   :  { %v5650_v17 = vadd.f32 %v3945_v6, %v2886_v57  ;;  %v2878_v18 = vmul.f32 %v4797_v13, %v2850_v35 }
0x1455   :  { %v5654_v24 = vadd.f32 %v3945_v6, %v2887_v21 }
0x1456   :  { %v2915_v26 = vpack.c.bf16 %v5650_v17, %v5648_v16  ;;  %v2888_v30 = vmul.f32 %v3944_v48, %v2878_v18 }
0x1458   :  { %4349 = vmatprep.mubr.bf16.mxu0 %v2915_v26  ;;  %v5656_v31 = vadd.f32 %v3945_v6, %v2888_v30 }
0x145a   :  { %v2916_v28 = vpack.c.bf16 %v5656_v31, %v5654_v24 }
0x145c   :  { %4350 = vmatmul.mubr.bf16.vlgmr.msra.gmra.mxu0 %v2916_v28 }
0x145d   :  { %3406 = vmatprep.mubr.bf16.mxu0 %v5057_v54 }
0x151c   :  { %v4351_v38 = vpop.f32.mrf.mxu0 }
0x151d   :  { %v3015_v46 = vadd.f32 %v4351_v38, %v3946_v10 }
0x151e   :  { %v3006_v61 = vpop.f32.mrf.mxu0 }
0x151f   :  { %v3023_v11 = vmul.f32 %v3015_v46, %v3015_v46  ;;  %v3007_v7 = vadd.f32 %v3946_v10, %v3006_v61 }
0x1520   :  { %v4352_v58 = vpop.f32.mrf.mxu0 }
0x1521   :  { %v3027_v50 = vmul.f32 %v3023_v11, %v3015_v46  ;;  %v3021_v41 = vmul.f32 %v3007_v7, %v3007_v7  ;;  %v3018_v47 = vadd.f32 %v4352_v58, %v3946_v10 }
0x1522   :  { %v3009_v35 = vpop.f32.mrf.mxu0 }
0x1523   :  { %v3031_v39 = vmul.f32 0.044715, %v3027_v50  ;;  %v3025_v27 = vmul.f32 %v3021_v41, %v3007_v7  ;;  %v3024_v32 = vmul.f32 %v3018_v47, %v3018_v47  ;;  %v3010_v19 = vadd.f32 %v3946_v10, %v3009_v35 }
0x1525   :  { %v3035_v20 = vadd.f32 %v3031_v39, %v3015_v46  ;;  %v3029_v42 = vmul.f32 0.044715, %v3025_v27  ;;  %v3028_v14 = vmul.f32 %v3024_v32, %v3018_v47  ;;  %v3022_v1 = vmul.f32 %v3010_v19, %v3010_v19 }
0x1527   :  { %v3039_v43 = vmul.f32 0.7978846, %v3035_v20  ;;  %v3033_v53 = vadd.f32 %v3029_v42, %v3007_v7  ;;  %v3032_v2 = vmul.f32 0.044715, %v3028_v14  ;;  %v3026_v8 = vmul.f32 %v3022_v1, %v3010_v19 }
0x1529   :  { %v3037_v29 = vmul.f32 0.7978846, %v3033_v53  ;;  %v3036_v45 = vadd.f32 %v3032_v2, %v3018_v47  ;;  %v3030_v22 = vmul.f32 0.044715, %v3026_v8  ;;  %4798 = vtanh.f32 %v3039_v43  ;;  %v4632_v43 = vld [vmem:[#allocation14 + $0x74] ss:$8 sps:$4 sm:$0xff]  }
0x152a   :  { %v4630_v53 = vld [vmem:[#allocation14 + $0x70] ss:$8 sps:$4 sm:$0xff]   ;;  %3495 = vmatprep.subr.bf16.mxu1 %v4632_v43  ;;  %v4635_v2 = vld [vmem:[#allocation14 + $0xf4] ss:$8 sps:$4 sm:$0xff]   ;;  %v4638_v8 = vld [vmem:[#allocation14 + $0x64] ss:$8 sps:$4 sm:$0xff]  }
0x152b   :  { %4800 = vtanh.f32 %v3037_v29  ;;  %v3040_v4 = vmul.f32 0.7978846, %v3036_v45  ;;  %v3034_v59 = vadd.f32 %v3030_v22, %v3010_v19  ;;  %v4633_v29 = vld [vmem:[#allocation14 + $0xf0] ss:$8 sps:$4 sm:$0xff]   ;;  %v4636_v45 = vld [vmem:[#allocation14 + $0x60] ss:$8 sps:$4 sm:$0xff]   ;;  %3374 = vmatprep.subr.bf16.mxu0 %v4635_v2 }
0x152c   :  { %3375 = vmatpush1.bf16.msra.mxu0 %v4633_v29  ;;  %v4641_v22 = vld [vmem:[#allocation14 + $0xe4] ss:$8 sps:$4 sm:$0xff]  }
0x152d   :  { %4802 = vtanh.f32 %v3040_v4  ;;  %v3038_v9 = vmul.f32 0.7978846, %v3034_v59  ;;  %v4644_v4 = vld [vmem:[#allocation14 + $0x54] ss:$8 sps:$4 sm:$0xff]   ;;  %v4642_v59 = vld [vmem:[#allocation14 + $0x50] ss:$8 sps:$4 sm:$0xff]   ;;  %3376 = vmatprep.subr.bf16.mxu0 %v4641_v22 }
0x152f   :  { %4804 = vtanh.f32 %v3038_v9  ;;  %v4647_v9 = vld [vmem:[#allocation14 + $0xd4] ss:$8 sps:$4 sm:$0xff]  }
0x1536   :  { %v4799_v12 = vpop.eup %4798 }
0x1537   :  { %v3047_v63 = vadd.f32 1.0, %v4799_v12  ;;  %v4650_v12 = vld [vmem:[#allocation14 + $0x44] ss:$8 sps:$4 sm:$0xff]  }
0x1538   :  { %v4801_v40 = vpop.eup %4800 }
0x1539   :  { %v3045_v62 = vadd.f32 1.0, %v4801_v40  ;;  %v3051_v6 = vmul.f32 0.5, %v3047_v63  ;;  %v4645_v40 = vld [vmem:[#allocation14 + $0xd0] ss:$8 sps:$4 sm:$0xff]   ;;  %v4656_v63 = vld [vmem:[#allocation14 + $0x34] ss:$8 sps:$4 sm:$0xff]  }
0x153a   :  { %v4803_v56 = vpop.eup %4802 }
0x153b   :  { %v3048_v48 = vadd.f32 1.0, %v4803_v56  ;;  %v3049_v44 = vmul.f32 0.5, %v3045_v62  ;;  %v3055_v21 = vmul.f32 %v3051_v6, %v3015_v46  ;;  %v4648_v62 = vld [vmem:[#allocation14 + $0x40] ss:$8 sps:$4 sm:$0xff]   ;;  %v4653_v56 = vld [vmem:[#allocation14 + $0xc4] ss:$8 sps:$4 sm:$0xff]  }
0x153c   :  { %v4805_v52 = vpop.eup %4804  ;;  %v4660_v6 = vld [vmem:[#allocation14 + $0x20] ss:$8 sps:$4 sm:$0xff]  }
0x153d   :  { %v3052_v34 = vmul.f32 0.5, %v3048_v48  ;;  %v3046_v0 = vadd.f32 1.0, %v4805_v52  ;;  %v3053_v13 = vmul.f32 %v3049_v44, %v3007_v7  ;;  %v4651_v48 = vld [vmem:[#allocation14 + $0xc0] ss:$8 sps:$4 sm:$0xff]   ;;  %v4654_v52 = vld [vmem:[#allocation14 + $0x30] ss:$8 sps:$4 sm:$0xff]  }
0x153e   :  { %v4657_v44 = vld [vmem:[#allocation14 + $0xb0] ss:$8 sps:$4 sm:$0xff]  }
0x153f   :  { %v3050_v55 = vmul.f32 0.5, %v3046_v0  ;;  %v3056_v57 = vmul.f32 %v3052_v34, %v3018_v47  ;;  %v4659_v34 = vld [vmem:[#allocation14 + $0xb4] ss:$8 sps:$4 sm:$0xff]   ;;  %v4662_v0 = vld [vmem:[#allocation14 + $0x24] ss:$8 sps:$4 sm:$0xff]  }
0x1541   :  { %v3054_v18 = vmul.f32 %v3050_v55, %v3010_v19  ;;  %v3074_v30 = vpack.c.bf16 %v3056_v57, %v3055_v21  ;;  %v4665_v55 = vld [vmem:[#allocation14 + $0xa4] ss:$8 sps:$4 sm:$0xff]   ;;  %v4668_v57 = vld [vmem:[#allocation14 + $0x14] ss:$8 sps:$4 sm:$0xff]   ;;  %v4669_v21 = vld [vmem:[#allocation14 + $0x90] ss:$8 sps:$4 sm:$0xff]  }
0x1543   :  { %v3073_v26 = vpack.c.bf16 %v3054_v18, %v3053_v13  ;;  %v4663_v13 = vld [vmem:[#allocation14 + $0xa0] ss:$8 sps:$4 sm:$0xff]   ;;  %v4666_v18 = vld [vmem:[#allocation14 + $0x10] ss:$8 sps:$4 sm:$0xff]  }
0x1545   :  { %4369 = vmatprep.mubr.bf16.mxu1 %v3073_v26  ;;  %v4671_v26 = vld [vmem:[#allocation14 + $0x94] ss:$8 sps:$4 sm:$0xff]  }
0x1546   :  { %4370 = vmatmul.mubr.bf16.vlgmr.msra.gmra.mxu1 %v3074_v30  ;;  %v4672_v30 = vld [vmem:[#allocation14] ss:$8 sps:$4 sm:$0xff]  }
0x1547   :  { %3527 = vmatprep.mubr.bf16.mxu1 %v5057_v54  ;;  %3496 = vmatpush1.bf16.msra.mxu1 %v4630_v53 }
0x1548   :  { %3497 = vmatprep.subr.bf16.mxu1 %v4638_v8 }
0x154b   :  { %3498 = vmatpush1.bf16.msra.mxu1 %v4636_v45 }
0x154c   :  { %3499 = vmatprep.subr.bf16.mxu1 %v4644_v4 }
0x154f   :  { %3500 = vmatpush1.bf16.msra.mxu1 %v4642_v59  ;;  %v4682_v59 = vld [vmem:[#allocation15 + $0x68] sm:$0xff]  }
0x1550   :  { %3501 = vmatprep.subr.bf16.mxu1 %v4650_v12  ;;  %v4685_v12 = vld [vmem:[#allocation15 + $0x20] sm:$0xff]  }
0x1553   :  { %3502 = vmatpush1.bf16.msra.mxu1 %v4648_v62  ;;  %v4687_v62 = vld [vmem:[#allocation15 + $0x18] sm:$0xff]  }
0x1554   :  { %3503 = vmatprep.subr.bf16.mxu1 %v4656_v63  ;;  %v4689_v63 = vld [vmem:[#allocation15 + $0x10] sm:$0xff]  }
0x1557   :  { %3504 = vmatpush1.bf16.msra.mxu1 %v4654_v52  ;;  %v4691_v52 = vld [vmem:[#allocation15 + $0x8] sm:$0xff]  }
0x1558   :  { %3505 = vmatprep.subr.bf16.mxu1 %v4662_v0  ;;  %v4693_v0 = vld [vmem:[#allocation15] sm:$0xff]  }
0x155b   :  { %3506 = vmatpush1.bf16.msra.mxu1 %v4660_v6  ;;  %v3536_v6 = vld [vmem:[%s5212_s4] sm:$0x3]  ;;  %s5058_s4 = smov [#allocation17]  }
0x155c   :  { %3507 = vmatprep.subr.bf16.mxu1 %v4668_v57  ;;  %v3541_v57 = vrot.slane %v3536_v6, %v5311_v49  ;;  %s3736_s2 = sshll.u32 %s5058_s4, 4  ;;  %s3737_s2 = int_to_ptr.vmem [resolvable:$true] %s3736_s2 }
0x155d   :  { %s4978_s10 = scalar_lea.vmem %s3737_s2, 32  ;;  %p4983_p13 = scmp.lt.s32.totalorder %s3737_s2, %s3737_s2 }
0x155e   :  { %p4979_p12 = scmp.ne.s32.totalorder %s3737_s2, %s4978_s10  ;;  %p4984_p0 = scmp.lt.s32.totalorder %s4978_s10, %s4978_s10 }
0x155f   :  { %3508 = vmatpush1.bf16.msra.mxu1 %v4666_v18 }
0x1560   :  { %p4985_p1 = por %p4984_p0, %p4983_p13 }
0x1562   :  { %p4986_p2 = pnand %p4985_p1, %p4979_p12 }
0x1606   :  { %v4371_v28 = vpop.f32.mrf.mxu1 }
0x1607   :  { %v3173_v3 = vadd.f32 %v4371_v28, %v3955_v33  ;;  %v4674_v28 = vld [vmem:[#allocation14 + $0x4] ss:$8 sps:$4 sm:$0xff]  }
0x1608   :  { %v3164_v25 = vpop.f32.mrf.mxu1  ;;  %3509 = vmatprep.subr.bf16.mxu1 %v4674_v28 }
0x1609   :  { %v3165_v23 = vadd.f32 %v3955_v33, %v3164_v25  ;;  %v3181_v46 = vadd.f32 %v3173_v3, %v5654_v24  ;;  %3510 = vmatpush1.bf16.msra.mxu1 %v4672_v30  ;;  %v4675_v25 = vld [vmem:[#allocation14 + $0x80] ss:$8 sps:$4 sm:$0xff]  }
0x160a   :  { %v4372_v37 = vpop.f32.mrf.mxu1 }
0x160b   :  { %v3179_v36 = vadd.f32 %v3165_v23, %v5648_v16  ;;  %v3176_v10 = vadd.f32 %v4372_v37, %v3955_v33  ;;  %v4678_v23 = vld [vmem:[#allocation15 + $0x78] sm:$0xff]  }
0x160c   :  { %v3167_v5 = vpop.f32.mrf.mxu1 }
0x160d   :  { %v3168_v60 = vadd.f32 %v3955_v33, %v3167_v5  ;;  %3185 = vadd.xlane.f32.xlu0 %v3179_v36  ;;  %v3182_v54 = vadd.f32 %v3176_v10, %v5656_v31  ;;  %v4677_v33 = vld [vmem:[#allocation14 + $0x84] ss:$8 sps:$4 sm:$0xff]  }
0x160f   :  { %v3180_v38 = vadd.f32 %v3168_v60, %v5650_v17 }
0x1611   :  { %3187 = vadd.xlane.f32.xlu1 %v3180_v38  ;;  %3189 = vadd.xlane.f32.xlu0 %v3181_v46 }
0x1615   :  { %3191 = vadd.xlane.f32.xlu1 %v3182_v54 }
0x1696   :  { %v3186_v61 = vpop.xlane.xlu0 %3185 }
0x1697   :  { %v3193_v11 = vmul.f32 0.015625, %v3186_v61 }
0x1699   :  { %v3197_v7 = vsub.f32 %v3179_v36, %v3193_v11 }
0x169a   :  { %v3188_v58 = vpop.xlane.xlu1 %3187  ;;  %v3190_v50 = vpop.xlane.xlu0 %3189 }
0x169b   :  { %v3194_v41 = vmul.f32 0.015625, %v3188_v58  ;;  %v3195_v16 = vmul.f32 0.015625, %v3190_v50  ;;  %v5677_v47 = vmul.f32 %v5260_v15, %v3197_v7  ;;  %v3964_v50 = vld [vmem:[%s5738_s28] ss:$0 sm:$0xff] }
0x169d   :  { %v3198_v35 = vsub.f32 %v3180_v38, %v3194_v41  ;;  %v3199_v39 = vsub.f32 %v3181_v46, %v3195_v16  ;;  %v3205_v17 = vmul.f32 %v5677_v47, %v5677_v47  ;;  %v3965_v16 = vld [vmem:[%s5739_s1] ss:$0 sm:$0xff] }
0x169e   :  { %v3192_v24 = vpop.xlane.xlu1 %3191 }
0x169f   :  { %v3196_v27 = vmul.f32 0.015625, %v3192_v24  ;;  %3209 = vadd.xlane.f32.xlu0 %v3205_v17  ;;  %v5682_v31 = vmul.f32 %v5260_v15, %v3198_v35  ;;  %v5685_v32 = vmul.f32 %v5260_v15, %v3199_v39 }
0x16a1   :  { %v3200_v19 = vsub.f32 %v3182_v54, %v3196_v27  ;;  %v3206_v20 = vmul.f32 %v5682_v31, %v5682_v31  ;;  %v3207_v42 = vmul.f32 %v5685_v32, %v5685_v32 }
0x16a3   :  { %3211 = vadd.xlane.f32.xlu1 %v3206_v20  ;;  %3213 = vadd.xlane.f32.xlu0 %v3207_v42  ;;  %v5692_v14 = vmul.f32 %v5260_v15, %v3200_v19  ;;  %v4639_v15 = vld [vmem:[#allocation14 + $0xe0] ss:$8 sps:$4 sm:$0xff]  }
0x16a4   :  { %3377 = vmatpush1.bf16.msra.mxu0 %v4639_v15  ;;  %v4681_v15 = vld [vmem:[#allocation15 + $0x30] sm:$0xff]  }
0x16a5   :  { %v3208_v1 = vmul.f32 %v5692_v14, %v5692_v14  ;;  %3378 = vmatprep.subr.bf16.mxu0 %v4647_v9  ;;  %v4684_v9 = vld [vmem:[#allocation15 + $0x60] sm:$0xff]  }
0x16a7   :  { %3215 = vadd.xlane.f32.xlu1 %v3208_v1 }
0x16a8   :  { %3379 = vmatpush1.bf16.msra.mxu0 %v4645_v40  ;;  %v4686_v40 = vld [vmem:[#allocation15 + $0x58] sm:$0xff]  }
0x16a9   :  { %3380 = vmatprep.subr.bf16.mxu0 %v4653_v56  ;;  %v4688_v56 = vld [vmem:[#allocation15 + $0x50] sm:$0xff]  }
0x16ac   :  { %3381 = vmatpush1.bf16.msra.mxu0 %v4651_v48  ;;  %v4690_v48 = vld [vmem:[#allocation15 + $0x48] sm:$0xff]  }
0x16ad   :  { %3382 = vmatprep.subr.bf16.mxu0 %v4659_v34  ;;  %v4692_v34 = vld [vmem:[#allocation15 + $0x40] sm:$0xff]  }
0x16b0   :  { %3383 = vmatpush1.bf16.msra.mxu0 %v4657_v44 }
0x16b1   :  { %3384 = vmatprep.subr.bf16.mxu0 %v4665_v55 }
0x16b4   :  { %3385 = vmatpush1.bf16.msra.mxu0 %v4663_v13 }
0x16b5   :  { %3386 = vmatprep.subr.bf16.mxu0 %v4671_v26  ;;  %v3545_v26 = vrot.slane %v3536_v6, %v5315_v51 }
0x16b8   :  { %3387 = vmatpush1.bf16.msra.mxu0 %v4669_v21 }
0x16b9   :  { %3388 = vmatprep.subr.bf16.mxu0 %v4677_v33 }
0x16bc   :  { %3389 = vmatpush1.bf16.msra.mxu0 %v4675_v25 }
0x16bd   :  { %4127 = vmatprep.subr.bf16.mxu0 %v4678_v23 }
0x1728   :  { %v3210_v37 = vpop.xlane.xlu0 %3209 }
0x1729   :  { %v3217_v3 = vmul.f32 0.015625, %v3210_v37 }
0x172b   :  { %v3221_v36 = vadd.f32 1e-12, %v3217_v3 }
0x172c   :  { %v3212_v5 = vpop.xlane.xlu1 %3211  ;;  %v3214_v60 = vpop.xlane.xlu0 %3213 }
0x172d   :  { %4806 = vrsqrt.f32 %v3221_v36  ;;  %v3218_v10 = vmul.f32 0.015625, %v3212_v5  ;;  %v3219_v38 = vmul.f32 0.015625, %v3214_v60 }
0x172f   :  { %v3222_v46 = vadd.f32 1e-12, %v3218_v10  ;;  %v3223_v54 = vadd.f32 1e-12, %v3219_v38  ;;  %v3998_v38 = vld [vmem:[%s5222_s20] ss:$0 sm:$0xff] }
0x1730   :  { %v3216_v61 = vpop.xlane.xlu1 %3215 }
0x1731   :  { %4808 = vrsqrt.f32 %v3222_v46  ;;  %v3220_v11 = vmul.f32 0.015625, %v3216_v61 }
0x1732   :  { %4810 = vrsqrt.f32 %v3223_v54 }
0x1733   :  { %v3224_v7 = vadd.f32 1e-12, %v3220_v11 }
0x1735   :  { %4812 = vrsqrt.f32 %v3224_v7 }
0x173a   :  { %v4807_v58 = vpop.eup %4806 }
0x173b   :  { %v3229_v41 = vmul.f32 %v4807_v58, %v5677_v47 }
0x173d   :  { %v3239_v35 = vmul.f32 %v3964_v50, %v3229_v41 }
0x173e   :  { %v4809_v39 = vpop.eup %4808 }
0x173f   :  { %v4811_v17 = vpop.eup %4810  ;;  %v3249_v24 = vadd.f32 %v3965_v16, %v3239_v35  ;;  %v3230_v27 = vmul.f32 %v4809_v39, %v5682_v31  ;;  %v4679_v31 = vld [vmem:[#allocation15 + $0x38] sm:$0xff]  }
0x1740   :  { %v3231_v19 = vmul.f32 %v4811_v17, %v5685_v32  ;;  %v4680_v32 = vld [vmem:[#allocation15 + $0x70] sm:$0xff]  }
0x1741   :  { %3253 = vst [vmem:[#allocation2] sm:$0xff] %v3249_v24  ;;  %v3240_v20 = vmul.f32 %v3964_v50, %v3230_v27 }
0x1742   :  { %v4813_v42 = vpop.eup %4812  ;;  %v3241_v1 = vmul.f32 %v3964_v50, %v3231_v19 }
0x1743   :  { %v3250_v43 = vadd.f32 %v3965_v16, %v3240_v20  ;;  %v3232_v53 = vmul.f32 %v4813_v42, %v5692_v14  ;;  %v4683_v14 = vld [vmem:[#allocation15 + $0x28] sm:$0xff]  }
0x1744   :  { %v3251_v2 = vadd.f32 %v3965_v16, %v3241_v1 }
0x1745   :  { %3254 = vst [vmem:[#allocation2 + $0x8] sm:$0xff] %v3250_v43  ;;  %v3242_v8 = vmul.f32 %v3964_v50, %v3232_v53 }
0x1746   :  { %3255 = vst [vmem:[#allocation2 + $0x10] sm:$0xff] %v3251_v2 }
0x1747   :  { %v3252_v47 = vadd.f32 %v3965_v16, %v3242_v8 }
0x1749   :  { %3256 = vst [vmem:[#allocation2 + $0x18] sm:$0xff] %v3252_v47 }
0x174c   :  { %v3257_v29 = vld [vmem:[#allocation2] ss:$8 sm:$0x3] }
0x174d   :  { %v3260_v45 = vpack.c.bf16 %v3257_v29, %v3257_v29 }
0x174f   :  { %3528 = vmatmul.mubr.bf16.vlgmr.msra.gmra.mxu1 %v3260_v45 }
0x1750   :  { %v3259_v22 = vld [vmem:[#allocation2 + $0x10] ss:$8 sm:$0x3] }
0x1751   :  { %v3277_v4 = vpack.c.bf16 %v3259_v22, %v3259_v22 }
0x1753   :  { %3407 = vmatmul.mubr.bf16.vlgmr.msra.gmra.mxu0 %v3277_v4 }
0x1754   :  { %4128 = vmatpush3.bf16.msra.mxu0 %v4679_v31 }
0x1755   :  { %4129 = vmatprep.subr.bf16.mxu0 %v4680_v32 }
0x1758   :  { %4130 = vmatpush3.bf16.msra.mxu0 %v4681_v15 }
0x1759   :  { %4131 = vmatprep.subr.bf16.mxu0 %v4682_v59 }
0x175c   :  { %4132 = vmatpush3.bf16.msra.mxu0 %v4683_v14 }
0x175d   :  { %4133 = vmatprep.subr.bf16.mxu0 %v4684_v9 }
0x1760   :  { %4134 = vmatpush3.bf16.msra.mxu0 %v4685_v12 }
0x1761   :  { %4135 = vmatprep.subr.bf16.mxu0 %v4686_v40 }
0x1764   :  { %4136 = vmatpush3.bf16.msra.mxu0 %v4687_v62 }
0x1765   :  { %4137 = vmatprep.subr.bf16.mxu0 %v4688_v56 }
0x1768   :  { %4138 = vmatpush3.bf16.msra.mxu0 %v4689_v63 }
0x1769   :  { %4139 = vmatprep.subr.bf16.mxu0 %v4690_v48 }
0x176c   :  { %4140 = vmatpush3.bf16.msra.mxu0 %v4691_v52 }
0x176d   :  { %4141 = vmatprep.subr.bf16.mxu0 %v4692_v34 }
0x1770   :  { %4142 = vmatpush3.bf16.msra.mxu0 %v4693_v0 }
0x180f   :  { %v3529_v44 = vpop.f32.mrf.mxu1 }
0x1811   :  { %v3531_v55 = vpop.f32.mrf.mxu1 }
0x1813   :  { %v3408_v13 = vpop.f32.mrf.mxu0  ;;  %v3533_v18 = vpop.f32.mrf.mxu1 }
0x1814   :  { %v3530_v21 = vadd.f32 %v3529_v44, %v3408_v13 }
0x1815   :  { %v3410_v30 = vpop.f32.mrf.mxu0  ;;  %v3534_v28 = vpop.f32.mrf.mxu1 }
0x1816   :  { %v3548_v33 = vadd.f32 %v3541_v57, %v3530_v21  ;;  %v3532_v25 = vadd.f32 %v3531_v55, %v3410_v30 }
0x1817   :  { %v3412_v23 = vpop.f32.mrf.mxu0 }
0x1818   :  { %v3549_v37 = vadd.f32 %v3545_v26, %v3532_v25  ;;  %v3550_v3 = vmax.f32 %v3548_v33, 0.0 }
0x1819   :  { %v3413_v36 = vpop.f32.mrf.mxu0 }
0x181a   :  { %v3551_v5 = vmax.f32 %v3549_v37, 0.0  ;;  %v3584_v10 = vpack.c.bf16 %v3550_v3, %v3550_v3 }
0x181c   :  { %v3585_v60 = vpack.c.bf16 %v3551_v5, %v3551_v5 }
0x181e   :  { %3721 = vmatprep.mubr.bf16.mxu0 %v3585_v60 }
0x181f   :  { %3722 = vmatmul.mubr.bf16.vlgmr.msra.gmra.mxu0 %v3584_v10 }
0x18df   :  { %v4143_v49 = vpop.f32.mrf.mxu0 }
0x18e1   :  { %v4144_v46 = vpop.f32.mrf.mxu0 }
0x18e2   :  { %v4145_v54 = vadd.f32 %v4144_v46, %v4143_v49 }
0x18e3   :  { %v4146_v51 = vpop.f32.mrf.mxu0 }
0x18e4   :  { %v3724_v61 = vadd.f32 %v4145_v54, %v3998_v38 }
0x18e5   :  { %v4147_v11 = vpop.f32.mrf.mxu0 }
0x18e6   :  { %3729 = vst [vmem:[#allocation17] sm:$0x3] %v3724_v61 }
0x18e7   :  { %4989 = shalt.err (!%p4986_p2)
}
0x18e8   :  { %3739 = dma.vmem_to_hbm [thread:$0]  %s3737_s2, 32, %s5227_s14, [#allocation5]  }
0x18e9   :  { %5008 = dma.done.wait [#allocation5], 32  }
0x18ea   :  { %5009 = vsyncadd [#allocation5], 4294967264 }
0x18eb   :  { %3743 = vsyncpa [#allocation4], 1 }
0x18ec   :  { %3744 = vsyncpa [#allocation7], 1 }
0x18ed   :  { %3745 = vsyncpa [#allocation10], 1 }
0x18ee   :  { %3746 = vsyncpa [#allocation13], 1 }
0x18ef   :  { %3747 = vsyncpa [#allocation16], 1 }
0x18f0   :  { %3748 = vsyncpa [#allocation5], 1 }

</bundles_post_ra>
